<compile_context>
chip_gen: v7x
topology: tpu7x:2x2x1
jax: 0.10.0
libtpu: 0.0.40
codegen_flags: <defaults>
</compile_context>

<pallas_src>
import functools

import jax
import jax.numpy as jnp
from jax.experimental import pallas as pl
from jax.experimental.pallas import tpu as pltpu


_PPARAMS = pltpu.CompilerParams(dimension_semantics=("parallel",))


def _resident(arr):
    """Full-array BlockSpec with constant index_map: loaded into VMEM once and
    kept resident across all batch tiles (no per-tile re-DMA)."""
    nd = arr.ndim
    return pl.BlockSpec(arr.shape, lambda i, _nd=nd: (0,) * _nd)


# ---------------------------------------------------------------------------
# Kernels
# ---------------------------------------------------------------------------

def _vae_encoder_kernel(x_ref, eps_ref,
                        w1_ref, b1_ref, w2_ref, b2_ref, wh_ref, bh_ref,
                        out_ref, *, latent_dim):
    """VAE encoder for one batch tile.

    Trunk (2 hidden ReLU layers) + FUSED mean/log_var heads: since there is no
    nonlinearity between the trunk's last Linear and the two head Linears,
    w3/wm/wv are pre-folded into one [hidden, 2*latent] matrix (1 MXU push
    instead of 3).  The four results are packed into a single output slab
    out[k] with k = 0:z, 1:mean, 2:std, 3:log_var.
    """
    x = x_ref[...]
    h = jnp.maximum(
        jnp.dot(x, w1_ref[...], preferred_element_type=jnp.float32) + b1_ref[...], 0.0)
    h = jnp.maximum(
        jnp.dot(h, w2_ref[...], preferred_element_type=jnp.float32) + b2_ref[...], 0.0)
    heads = jnp.dot(h, wh_ref[...], preferred_element_type=jnp.float32) + bh_ref[...]
    mean = heads[:, :latent_dim]
    log_var = heads[:, latent_dim:]
    std = jnp.exp(0.5 * log_var)            # torch code names this "var"
    z = mean + eps_ref[...] * std           # reparameterization trick
    out_ref[0] = z
    out_ref[1] = mean
    out_ref[2] = std
    out_ref[3] = log_var


def _mlp_decoder_kernel(z_ref, w1_ref, b1_ref, w2_ref, b2_ref, w3_ref, b3_ref,
                        out_ref):
    h = jnp.maximum(
        jnp.dot(z_ref[...], w1_ref[...], preferred_element_type=jnp.float32) + b1_ref[...], 0.0)
    h = jnp.maximum(
        jnp.dot(h, w2_ref[...], preferred_element_type=jnp.float32) + b2_ref[...], 0.0)
    out_ref[...] = jnp.dot(h, w3_ref[...], preferred_element_type=jnp.float32) + b3_ref[...]


def _coeff_chain_kernel(x_ref, zy_ref,
                        w1_ref, b1_ref, w2_ref, b2_ref, w3_ref, b3_ref,
                        z_out_ref, *, depth):
    """NNCoefficients / nn_bias heads + the depth-chained recursion, per tile.

    Stacked weights have leading dim 2*depth: heads [0, depth) are
    nn_coefficients, heads [depth, 2*depth) are nn_bias.
    """
    x = x_ref[...]
    heads = []
    for d in range(2 * depth):
        h = jnp.maximum(
            jnp.dot(x, w1_ref[d], preferred_element_type=jnp.float32) + b1_ref[d], 0.0)
        h = jnp.maximum(
            jnp.dot(h, w2_ref[d], preferred_element_type=jnp.float32) + b2_ref[d], 0.0)
        heads.append(jnp.dot(h, w3_ref[d], preferred_element_type=jnp.float32) + b3_ref[d])
    coeff, bias = heads[:depth], heads[depth:]

    z = zy_ref[...]                                       # [tile_b, 1]
    for i in range(depth):
        z1 = jnp.maximum(coeff[i] * z + bias[i], 0.0)
        if i < depth - 1:
            z = coeff[i + 1] * z1 + bias[i + 1] + z
        # (last iteration's z1 is dead, exactly as in the torch loop)
    z_out_ref[...] = z


def _idw_interp_kernel(xr_ref, xc_ref, ls_ref, pw_ref, z_ref,
                       covar_ref, zint_ref):
    """InverseDistanceWithParam row tile: ARD-scaled pairwise distances,
    IDW weights, L1 row-normalization, and z_int = normalize(K, p=1) @ z."""
    inv_ls = 1.0 / ls_ref[...]                            # [1, D]
    xr = xr_ref[...] * inv_ls                             # [tile_b, D]
    xc = xc_ref[...] * inv_ls                             # [N, D]
    diff = xr[:, None, :] - xc[None, :, :]                # [tile_b, N, D]
    dist = jnp.sqrt(jnp.sum(diff * diff, axis=-1))        # exact 0 on diagonal
    # dist ** power, guarded against log(0); power broadcast from a [1,1] tile.
    dpow = jnp.exp(pw_ref[...] * jnp.log(jnp.maximum(dist, 1e-12)))
    w = 1.0 / (dpow + 1e-6)
    covar_ref[...] = w
    w_norm = w / jnp.sum(jnp.abs(w), axis=-1, keepdims=True)   # F.normalize(p=1, dim=1)
    zint_ref[...] = jnp.dot(w_norm, z_ref[...], preferred_element_type=jnp.float32)


# ---------------------------------------------------------------------------
# pallas_call wrappers
# ---------------------------------------------------------------------------

def vae_encode(x, eps, enc, *, tile_b):
    n, in_dim = x.shape
    hid = enc["w1"].shape[1]
    lat = eps.shape[1]
    kernel = functools.partial(_vae_encoder_kernel, latent_dim=lat)
    packed = pl.pallas_call(
        kernel,
        grid=(n // tile_b,),
        in_specs=[
            pl.BlockSpec((tile_b, in_dim), lambda i: (i, 0)),
            pl.BlockSpec((tile_b, lat), lambda i: (i, 0)),
            _resident(enc["w1"]), _resident(enc["b1"]),
            _resident(enc["w2"]), _resident(enc["b2"]),
            _resident(enc["wh"]), _resident(enc["bh"]),
        ],
        # single packed output slab [4, N, lat]; split in the wrapper
        out_specs=pl.BlockSpec((4, tile_b, lat), lambda i: (0, i, 0)),
        out_shape=jax.ShapeDtypeStruct((4, n, lat), jnp.float32),
        compiler_params=_PPARAMS,
        cost_estimate=pl.CostEstimate(
            flops=2 * n * (in_dim * hid + hid * hid + hid * 2 * lat),
            transcendentals=n * lat,
            bytes_accessed=4 * (n * (in_dim + 5 * lat)
                                + in_dim * hid + hid * hid + 2 * hid * lat
                                + 2 * hid + 2 * lat),
        ),
    )(x, eps, enc["w1"], enc["b1"], enc["w2"], enc["b2"], enc["wh"], enc["bh"])
    return packed[0], packed[1], packed[2], packed[3]     # z, mean, std, log_var


def mlp_decode(z, dec, *, tile_b):
    n, lat = z.shape
    hid = dec["w1"].shape[1]
    out_dim = dec["w3"].shape[1]
    return pl.pallas_call(
        _mlp_decoder_kernel,
        grid=(n // tile_b,),
        in_specs=[
            pl.BlockSpec((tile_b, lat), lambda i: (i, 0)),
            _resident(dec["w1"]), _resident(dec["b1"]),
            _resident(dec["w2"]), _resident(dec["b2"]),
            _resident(dec["w3"]), _resident(dec["b3"]),
        ],
        out_specs=pl.BlockSpec((tile_b, out_dim), lambda i: (i, 0)),
        out_shape=jax.ShapeDtypeStruct((n, out_dim), jnp.float32),
        compiler_params=_PPARAMS,
        cost_estimate=pl.CostEstimate(
            flops=2 * n * (lat * hid + hid * hid + hid * out_dim),
            transcendentals=0,
            bytes_accessed=4 * (n * (lat + out_dim)
                                + lat * hid + hid * hid + hid * out_dim
                                + 2 * hid + out_dim),
        ),
    )(z, dec["w1"], dec["b1"], dec["w2"], dec["b2"], dec["w3"], dec["b3"])


def coeff_chain(x, z_y, coef, *, depth, tile_b):
    n, in_dim = x.shape
    kernel = functools.partial(_coeff_chain_kernel, depth=depth)
    return pl.pallas_call(
        kernel,
        grid=(n // tile_b,),
        in_specs=[
            pl.BlockSpec((tile_b, in_dim), lambda i: (i, 0)),
            pl.BlockSpec((tile_b, 1), lambda i: (i, 0)),
            _resident(coef["w1"]), _resident(coef["b1"]),
            _resident(coef["w2"]), _resident(coef["b2"]),
            _resident(coef["w3"]), _resident(coef["b3"]),
        ],
        out_specs=pl.BlockSpec((tile_b, 1), lambda i: (i, 0)),
        out_shape=jax.ShapeDtypeStruct((n, 1), jnp.float32),
        compiler_params=_PPARAMS,
    )(x, z_y, coef["w1"], coef["b1"], coef["w2"], coef["b2"], coef["w3"], coef["b3"])


def idw_interpolate(x, z_col, lengthscale, power, *, tile_b):
    n, d = x.shape
    covar, z_int = pl.pallas_call(
        _idw_interp_kernel,
        grid=(n // tile_b,),
        in_specs=[
            pl.BlockSpec((tile_b, d), lambda i: (i, 0)),   # row tile of x
            pl.BlockSpec((n, d), lambda i: (0, 0)),        # full x, VMEM-resident
            _resident(lengthscale),
            _resident(power),
            pl.BlockSpec((n, 1), lambda i: (0, 0)),        # full z, VMEM-resident
        ],
        out_specs=(
            pl.BlockSpec((tile_b, n), lambda i: (i, 0)),
            pl.BlockSpec((tile_b, 1), lambda i: (i, 0)),
        ),
        out_shape=(
            jax.ShapeDtypeStruct((n, n), jnp.float32),
            jax.ShapeDtypeStruct((n, 1), jnp.float32),
        ),
        compiler_params=_PPARAMS,
    )(x, x, lengthscale, power, z_col)
    return covar, z_int


def deep_idw_forward(x, y, params, eps_x, eps_y, *, depth, tile_b):
    """Full DeepIdwAutoEncoderBatch.forward, assembled from Pallas kernels."""
    # --- CorVAE: vae_x on x, vae_y on y ------------------------------------
    z_x, mean_x, var_x, log_var_x = vae_encode(x, eps_x, params["enc_x"], tile_b=tile_b)
    output_x = mlp_decode(z_x, params["dec_x"], tile_b=tile_b)
    z_y, mean_y, var_y, log_var_y = vae_encode(y, eps_y, params["enc_y"], tile_b=tile_b)
    output_y = mlp_decode(z_y, params["dec_y"], tile_b=tile_b)

    # --- depth-chained coefficient / bias recursion on z = z_y.flatten() ---
    z_col = coeff_chain(x, z_y, params["coef"], depth=depth, tile_b=tile_b)

    # --- IDW covariance, L1 row-normalization, interpolation ---------------
    covar, z_int_col = idw_interpolate(x, z_col, params["lengthscale"],
                                       params["power"], tile_b=tile_b)

    # --- y_hat = cor_vae.vae_y.decoder(z_int.reshape(-1, 1)) ---------------
    y_hat = mlp_decode(z_int_col, params["dec_y"], tile_b=tile_b)

    return (y_hat, z_int_col[:, 0], covar, z_col[:, 0],
            output_x, z_x, mean_x, var_x, log_var_x,
            output_y, z_y, mean_y, var_y, log_var_y)


# ---------------------------------------------------------------------------
# Parameter construction (deterministic synthetic init, no checkpoint load)
# ---------------------------------------------------------------------------

def _linear_init(key, fan_in, fan_out):
    kw, kb = jax.random.split(key)
    s = 1.0 / jnp.sqrt(jnp.float32(fan_in))
    w = jax.random.uniform(kw, (fan_in, fan_out), jnp.float32, -s, s)
    b = jax.random.uniform(kb, (1, fan_out), jnp.float32, -s, s)
    return w, b


def _enc_init(key, in_dim, hid, lat):
    ks = jax.random.split(key, 5)
    w1, b1 = _linear_init(ks[0], in_dim, hid)
    w2, b2 = _linear_init(ks[1], hid, hid)
    w3, b3 = _linear_init(ks[2], hid, lat)
    wm, bm = _linear_init(ks[3], lat, lat)
    wv, bv = _linear_init(ks[4], lat, lat)
    return dict(w1=w1, b1=b1, w2=w2, b2=b2, w3=w3, b3=b3, wm=wm, bm=bm, wv=wv, bv=bv)


def _dec_init(key, lat, hid, out_dim):
    ks = jax.random.split(key, 3)
    w1, b1 = _linear_init(ks[0], lat, hid)
    w2, b2 = _linear_init(ks[1], hid, hid)
    w3, b3 = _linear_init(ks[2], hid, out_dim)
    return dict(w1=w1, b1=b1, w2=w2, b2=b2, w3=w3, b3=b3)


def _coeff_init(key, in_dim, hid, depth):
    n_heads = 2 * depth                      # nn_coefficients heads + nn_bias heads
    ks = jax.random.split(key, 3 * n_heads)
    w1, b1, w2, b2, w3, b3 = [], [], [], [], [], []
    idx = 0
    for _ in range(n_heads):
        w, b = _linear_init(ks[idx], in_dim, hid); idx += 1; w1.append(w); b1.append(b)
        w, b = _linear_init(ks[idx], hid, hid);    idx += 1; w2.append(w); b2.append(b)
        w, b = _linear_init(ks[idx], hid, 1);      idx += 1; w3.append(w); b3.append(b)
    stack = lambda xs: jnp.stack(xs, axis=0)
    return dict(w1=stack(w1), b1=stack(b1), w2=stack(w2), b2=stack(b2),
                w3=stack(w3), b3=stack(b3))


def init_params(key, in_x, in_y, hid_vae, lat_x, lat_y, hid_nn, depth):
    ks = jax.random.split(key, 7)
    return dict(
        enc_x=_enc_init(ks[0], in_x, hid_vae, lat_x),
        dec_x=_dec_init(ks[1], lat_x, hid_vae, in_x),
        enc_y=_enc_init(ks[2], in_y, hid_vae, lat_y),
        dec_y=_dec_init(ks[3], lat_y, hid_vae, in_y),
        coef=_coeff_init(ks[4], in_x, hid_nn, depth),
        lengthscale=jax.random.uniform(ks[5], (1, in_x), jnp.float32, 0.5, 1.5),
        power=jnp.full((1, 1), 2.0, jnp.float32),
    )


def fold_encoder_heads(enc):
    """Fold trunk-last-linear + mean/log_var heads into one [hid, 2*lat] matmul."""
    wh = jnp.concatenate([enc["w3"] @ enc["wm"], enc["w3"] @ enc["wv"]], axis=1)
    bh = jnp.concatenate([enc["b3"] @ enc["wm"] + enc["bm"],
                          enc["b3"] @ enc["wv"] + enc["bv"]], axis=1)
    return dict(w1=enc["w1"], b1=enc["b1"], w2=enc["w2"], b2=enc["b2"], wh=wh, bh=bh)


def prepare_kernel_params(raw):
    return dict(enc_x=fold_encoder_heads(raw["enc_x"]),
                enc_y=fold_encoder_heads(raw["enc_y"]),
                dec_x=raw["dec_x"], dec_y=raw["dec_y"], coef=raw["coef"],
                lengthscale=raw["lengthscale"], power=raw["power"])


# ---------------------------------------------------------------------------
# Plain-JAX reference (uses the raw, un-fused parameters)
# ---------------------------------------------------------------------------

def reference_forward(x, y, raw, eps_x, eps_y, *, depth):
    def encode(v, p, eps):
        h = jnp.maximum(v @ p["w1"] + p["b1"], 0.0)
        h = jnp.maximum(h @ p["w2"] + p["b2"], 0.0)
        h = h @ p["w3"] + p["b3"]
        mean = h @ p["wm"] + p["bm"]
        log_var = h @ p["wv"] + p["bv"]
        std = jnp.exp(0.5 * log_var)
        return mean + eps * std, mean, std, log_var

    def decode(v, p):
        h = jnp.maximum(v @ p["w1"] + p["b1"], 0.0)
        h = jnp.maximum(h @ p["w2"] + p["b2"], 0.0)
        return h @ p["w3"] + p["b3"]

    def head(p, d, v):
        h = jnp.maximum(v @ p["w1"][d] + p["b1"][d], 0.0)
        h = jnp.maximum(h @ p["w2"][d] + p["b2"][d], 0.0)
        return (h @ p["w3"][d] + p["b3"][d])[:, 0]

    z_x, mean_x, var_x, log_var_x = encode(x, raw["enc_x"], eps_x)
    output_x = decode(z_x, raw["dec_x"])
    z_y, mean_y, var_y, log_var_y = encode(y, raw["enc_y"], eps_y)
    output_y = decode(z_y, raw["dec_y"])

    cp = raw["coef"]
    z = z_y[:, 0]
    for i in range(depth):
        z1 = jnp.maximum(head(cp, i, x) * z + head(cp, depth + i, x), 0.0)
        if i < depth - 1:
            z = head(cp, i + 1, x) * z1 + head(cp, depth + i + 1, x) + z

    xs = x * (1.0 / raw["lengthscale"])
    diff = xs[:, None, :] - xs[None, :, :]
    dist = jnp.sqrt(jnp.sum(diff * diff, axis=-1))
    covar = 1.0 / (jnp.exp(raw["power"][0, 0] * jnp.log(jnp.maximum(dist, 1e-12))) + 1e-6)
    z_int = (covar / jnp.sum(jnp.abs(covar), axis=1, keepdims=True)) @ z
    y_hat = decode(z_int[:, None], raw["dec_y"])
    return (y_hat, z_int, covar, z,
            output_x, z_x, mean_x, var_x, log_var_x,
            output_y, z_y, mean_y, var_y, log_var_y)


# ---------------------------------------------------------------------------
# Demo / correctness check
# ---------------------------------------------------------------------------

if __name__ == "__main__":
    # Small shapes consistent with the module (real CorVAE uses hidden=100).
    N = 16          # batch
    IN_X = 16       # input_dim_x
    IN_Y = 4        # input_dim_y
    HID_VAE = 32    # CorVAE hidden dim (toy; real = 100)
    LAT_X = 3       # latent_dim_x (from CorVAE ctor)
    LAT_Y = 1       # latent_dim_y (from CorVAE ctor)
    HID_NN = 32     # NNCoefficients hidden_dim
    DEPTH = 3
    TILE_B = 8      # batch tile; size for ~48 MiB VMEM on v7x at real scales

    key = jax.random.PRNGKey(0)
    k_x, k_y, k_ex, k_ey, k_p = jax.random.split(key, 5)
    x = jax.random.normal(k_x, (N, IN_X), jnp.float32)
    y = jax.random.normal(k_y, (N, IN_Y), jnp.float32)
    eps_x = jax.random.normal(k_ex, (N, LAT_X), jnp.float32)   # torch.randn_like
    eps_y = jax.random.normal(k_ey, (N, LAT_Y), jnp.float32)   # torch.randn_like

    raw_params = init_params(k_p, IN_X, IN_Y, HID_VAE, LAT_X, LAT_Y, HID_NN, DEPTH)
    kernel_params = prepare_kernel_params(raw_params)

    fwd = jax.jit(functools.partial(deep_idw_forward, depth=DEPTH, tile_b=TILE_B))
    outs = fwd(x, y, kernel_params, eps_x, eps_y)
    jax.block_until_ready(outs)

    refs = reference_forward(x, y, raw_params, eps_x, eps_y, depth=DEPTH)
    names = ["y_hat", "z_int", "covar", "z",
             "output_x", "z_x", "mean_x", "var_x", "log_var_x",
             "output_y", "z_y", "mean_y", "var_y", "log_var_y"]
    for name, got, want in zip(names, outs, refs):
        assert got.shape == want.shape, f"{name}: shape {got.shape} != {want.shape}"
        err = jnp.max(jnp.abs(got - want))
        assert jnp.allclose(got, want, rtol=1e-3, atol=1e-4), f"{name}: max abs err {err}"

    print("KERNEL_OK")
</pallas_src>

<mosaic_0001>
module attributes {stable_mosaic.version = 11 : i64} {
  func.func @_vae_encoder_kernel(%arg0: i32, %arg1: memref<8x4xf32, #tpu.memory_space<vmem>>, %arg2: memref<8x1xf32, #tpu.memory_space<vmem>>, %arg3: memref<4x32xf32, #tpu.memory_space<vmem>>, %arg4: memref<1x32xf32, #tpu.memory_space<vmem>>, %arg5: memref<32x32xf32, #tpu.memory_space<vmem>>, %arg6: memref<1x32xf32, #tpu.memory_space<vmem>>, %arg7: memref<32x2xf32, #tpu.memory_space<vmem>>, %arg8: memref<1x2xf32, #tpu.memory_space<vmem>>, %arg9: memref<4x8x1xf32, #tpu.memory_space<vmem>>) attributes {dimension_semantics = [#tpu.dimension_semantics<parallel>], iteration_bounds = array<i64: 2>, scalar_prefetch = 0 : i64, scratch_operands = 0 : i64, tpu.core_type = #tpu.core_type<tc>, window_params = [{transform_indices = @transform_0, window_bounds = array<i64: 8, 4>}, {transform_indices = @transform_1, window_bounds = array<i64: 8, 1>}, {pipeline_mode = #tpu.pipeline_mode<synchronous>, transform_indices = @transform_2, window_bounds = array<i64: 4, 32>}, {pipeline_mode = #tpu.pipeline_mode<synchronous>, transform_indices = @transform_3, window_bounds = array<i64: 1, 32>}, {pipeline_mode = #tpu.pipeline_mode<synchronous>, transform_indices = @transform_4, window_bounds = array<i64: 32, 32>}, {pipeline_mode = #tpu.pipeline_mode<synchronous>, transform_indices = @transform_5, window_bounds = array<i64: 1, 32>}, {pipeline_mode = #tpu.pipeline_mode<synchronous>, transform_indices = @transform_6, window_bounds = array<i64: 32, 2>}, {pipeline_mode = #tpu.pipeline_mode<synchronous>, transform_indices = @transform_7, window_bounds = array<i64: 1, 2>}, {transform_indices = @transform_8, window_bounds = array<i64: 4, 8, 1>}]} {
    %c0 = arith.constant 0 : index
    %c0_0 = arith.constant 0 : index
    %0 = vector.load %arg1[%c0, %c0_0] : memref<8x4xf32, #tpu.memory_space<vmem>>, vector<8x4xf32>
    %c0_1 = arith.constant 0 : index
    %c0_2 = arith.constant 0 : index
    %1 = vector.load %arg3[%c0_1, %c0_2] : memref<4x32xf32, #tpu.memory_space<vmem>>, vector<4x32xf32>
    %cst = arith.constant dense<0.000000e+00> : vector<8x32xf32>
    %2 = tpu.matmul %0, %1, %cst {dimension_numbers = #tpu.dot_dimension_numbers<[1], [0], [0], [1], [0, 0, 1, 1], [], []>} : vector<8x4xf32>, vector<4x32xf32>, vector<8x32xf32> -> vector<8x32xf32>
    %c0_3 = arith.constant 0 : index
    %c0_4 = arith.constant 0 : index
    %3 = vector.load %arg4[%c0_3, %c0_4] : memref<1x32xf32, #tpu.memory_space<vmem>>, vector<1x32xf32>
    %4 = vector.broadcast %3 : vector<1x32xf32> to vector<8x32xf32>
    %5 = arith.addf %2, %4 : vector<8x32xf32>
    %cst_5 = arith.constant 0.000000e+00 : f32
    %6 = vector.broadcast %cst_5 : f32 to vector<8x32xf32>
    %7 = arith.maximumf %5, %6 : vector<8x32xf32>
    %c0_6 = arith.constant 0 : index
    %c0_7 = arith.constant 0 : index
    %8 = vector.load %arg5[%c0_6, %c0_7] : memref<32x32xf32, #tpu.memory_space<vmem>>, vector<32x32xf32>
    %cst_8 = arith.constant dense<0.000000e+00> : vector<8x32xf32>
    %9 = tpu.matmul %7, %8, %cst_8 {dimension_numbers = #tpu.dot_dimension_numbers<[1], [0], [0], [1], [0, 0, 1, 1], [], []>} : vector<8x32xf32>, vector<32x32xf32>, vector<8x32xf32> -> vector<8x32xf32>
    %c0_9 = arith.constant 0 : index
    %c0_10 = arith.constant 0 : index
    %10 = vector.load %arg6[%c0_9, %c0_10] : memref<1x32xf32, #tpu.memory_space<vmem>>, vector<1x32xf32>
    %11 = vector.broadcast %10 : vector<1x32xf32> to vector<8x32xf32>
    %12 = arith.addf %9, %11 : vector<8x32xf32>
    %cst_11 = arith.constant 0.000000e+00 : f32
    %13 = vector.broadcast %cst_11 : f32 to vector<8x32xf32>
    %14 = arith.maximumf %12, %13 : vector<8x32xf32>
    %c0_12 = arith.constant 0 : index
    %c0_13 = arith.constant 0 : index
    %15 = vector.load %arg7[%c0_12, %c0_13] : memref<32x2xf32, #tpu.memory_space<vmem>>, vector<32x2xf32>
    %cst_14 = arith.constant dense<0.000000e+00> : vector<8x2xf32>
    %16 = tpu.matmul %14, %15, %cst_14 {dimension_numbers = #tpu.dot_dimension_numbers<[1], [0], [0], [1], [0, 0, 1, 1], [], []>} : vector<8x32xf32>, vector<32x2xf32>, vector<8x2xf32> -> vector<8x2xf32>
    %c0_15 = arith.constant 0 : index
    %c0_16 = arith.constant 0 : index
    %17 = vector.load %arg8[%c0_15, %c0_16] : memref<1x2xf32, #tpu.memory_space<vmem>>, vector<1x2xf32>
    %18 = vector.broadcast %17 : vector<1x2xf32> to vector<8x2xf32>
    %19 = arith.addf %16, %18 : vector<8x2xf32>
    %20 = vector.extract_strided_slice %19 {offsets = [0, 0], sizes = [8, 1], strides = [1, 1]} : vector<8x2xf32> to vector<8x1xf32>
    %21 = vector.extract_strided_slice %19 {offsets = [0, 1], sizes = [8, 1], strides = [1, 1]} : vector<8x2xf32> to vector<8x1xf32>
    %cst_17 = arith.constant 5.000000e-01 : f32
    %22 = vector.broadcast %cst_17 : f32 to vector<8x1xf32>
    %23 = arith.mulf %22, %21 : vector<8x1xf32>
    %24 = math.exp %23 : vector<8x1xf32>
    %c0_18 = arith.constant 0 : index
    %c0_19 = arith.constant 0 : index
    %25 = vector.load %arg2[%c0_18, %c0_19] : memref<8x1xf32, #tpu.memory_space<vmem>>, vector<8x1xf32>
    %26 = arith.mulf %25, %24 : vector<8x1xf32>
    %27 = arith.addf %20, %26 : vector<8x1xf32>
    %c0_20 = arith.constant 0 : index
    %c0_21 = arith.constant 0 : index
    %c0_22 = arith.constant 0 : index
    %28 = vector.load %arg9[%c0_20, %c0_21, %c0_22] : memref<4x8x1xf32, #tpu.memory_space<vmem>>, vector<1x8x1xf32>
    %29 = vector.shape_cast %28 : vector<1x8x1xf32> to vector<8x1xf32>
    %30 = vector.shape_cast %27 : vector<8x1xf32> to vector<1x8x1xf32>
    tpu.vector_store %arg9[%c0_20, %c0_21, %c0_22], %30 {strides = array<i32>} : memref<4x8x1xf32, #tpu.memory_space<vmem>>, vector<1x8x1xf32>,
    %c1 = arith.constant 1 : index
    %c0_23 = arith.constant 0 : index
    %c0_24 = arith.constant 0 : index
    %31 = vector.load %arg9[%c1, %c0_23, %c0_24] : memref<4x8x1xf32, #tpu.memory_space<vmem>>, vector<1x8x1xf32>
    %32 = vector.shape_cast %31 : vector<1x8x1xf32> to vector<8x1xf32>
    %33 = vector.shape_cast %20 : vector<8x1xf32> to vector<1x8x1xf32>
    tpu.vector_store %arg9[%c1, %c0_23, %c0_24], %33 {strides = array<i32>} : memref<4x8x1xf32, #tpu.memory_space<vmem>>, vector<1x8x1xf32>,
    %c2 = arith.constant 2 : index
    %c0_25 = arith.constant 0 : index
    %c0_26 = arith.constant 0 : index
    %34 = vector.load %arg9[%c2, %c0_25, %c0_26] : memref<4x8x1xf32, #tpu.memory_space<vmem>>, vector<1x8x1xf32>
    %35 = vector.shape_cast %34 : vector<1x8x1xf32> to vector<8x1xf32>
    %36 = vector.shape_cast %24 : vector<8x1xf32> to vector<1x8x1xf32>
    tpu.vector_store %arg9[%c2, %c0_25, %c0_26], %36 {strides = array<i32>} : memref<4x8x1xf32, #tpu.memory_space<vmem>>, vector<1x8x1xf32>,
    %c3 = arith.constant 3 : index
    %c0_27 = arith.constant 0 : index
    %c0_28 = arith.constant 0 : index
    %37 = vector.load %arg9[%c3, %c0_27, %c0_28] : memref<4x8x1xf32, #tpu.memory_space<vmem>>, vector<1x8x1xf32>
    %38 = vector.shape_cast %37 : vector<1x8x1xf32> to vector<8x1xf32>
    %39 = vector.shape_cast %21 : vector<8x1xf32> to vector<1x8x1xf32>
    tpu.vector_store %arg9[%c3, %c0_27, %c0_28], %39 {strides = array<i32>} : memref<4x8x1xf32, #tpu.memory_space<vmem>>, vector<1x8x1xf32>,
    return
  }
  func.func @transform_0(%arg0: i32) -> (i32, i32) {
    %c0_i32 = arith.constant 0 : i32
    %c0_i32_0 = arith.constant 0 : i32
    return %arg0, %c0_i32 : i32, i32
  }
  func.func @transform_1(%arg0: i32) -> (i32, i32) {
    %c0_i32 = arith.constant 0 : i32
    %c0_i32_0 = arith.constant 0 : i32
    return %arg0, %c0_i32 : i32, i32
  }
  func.func @transform_2(%arg0: i32) -> (i32, i32) {
    %c0_i32 = arith.constant 0 : i32
    %c0_i32_0 = arith.constant 0 : i32
    %c0_i32_1 = arith.constant 0 : i32
    return %c0_i32, %c0_i32_0 : i32, i32
  }
  func.func @transform_3(%arg0: i32) -> (i32, i32) {
    %c0_i32 = arith.constant 0 : i32
    %c0_i32_0 = arith.constant 0 : i32
    %c0_i32_1 = arith.constant 0 : i32
    return %c0_i32, %c0_i32_0 : i32, i32
  }
  func.func @transform_4(%arg0: i32) -> (i32, i32) {
    %c0_i32 = arith.constant 0 : i32
    %c0_i32_0 = arith.constant 0 : i32
    %c0_i32_1 = arith.constant 0 : i32
    return %c0_i32, %c0_i32_0 : i32, i32
  }
  func.func @transform_5(%arg0: i32) -> (i32, i32) {
    %c0_i32 = arith.constant 0 : i32
    %c0_i32_0 = arith.constant 0 : i32
    %c0_i32_1 = arith.constant 0 : i32
    return %c0_i32, %c0_i32_0 : i32, i32
  }
  func.func @transform_6(%arg0: i32) -> (i32, i32) {
    %c0_i32 = arith.constant 0 : i32
    %c0_i32_0 = arith.constant 0 : i32
    %c0_i32_1 = arith.constant 0 : i32
    return %c0_i32, %c0_i32_0 : i32, i32
  }
  func.func @transform_7(%arg0: i32) -> (i32, i32) {
    %c0_i32 = arith.constant 0 : i32
    %c0_i32_0 = arith.constant 0 : i32
    %c0_i32_1 = arith.constant 0 : i32
    return %c0_i32, %c0_i32_0 : i32, i32
  }
  func.func @transform_8(%arg0: i32) -> (i32, i32, i32) {
    %c0_i32 = arith.constant 0 : i32
    %c0_i32_0 = arith.constant 0 : i32
    %c0_i32_1 = arith.constant 0 : i32
    return %c0_i32, %arg0, %c0_i32_0 : i32, i32, i32
  }
}

module attributes {stable_mosaic.version = 11 : i64} {
  func.func @_coeff_chain_kernel(%arg0: i32, %arg1: memref<8x16xf32, #tpu.memory_space<vmem>>, %arg2: memref<8x1xf32, #tpu.memory_space<vmem>>, %arg3: memref<6x16x32xf32, #tpu.memory_space<vmem>>, %arg4: memref<6x1x32xf32, #tpu.memory_space<vmem>>, %arg5: memref<6x32x32xf32, #tpu.memory_space<vmem>>, %arg6: memref<6x1x32xf32, #tpu.memory_space<vmem>>, %arg7: memref<6x32x1xf32, #tpu.memory_space<vmem>>, %arg8: memref<6x1x1xf32, #tpu.memory_space<vmem>>, %arg9: memref<8x1xf32, #tpu.memory_space<vmem>>) attributes {dimension_semantics = [#tpu.dimension_semantics<parallel>], iteration_bounds = array<i64: 2>, scalar_prefetch = 0 : i64, scratch_operands = 0 : i64, tpu.core_type = #tpu.core_type<tc>, window_params = [{transform_indices = @transform_0, window_bounds = array<i64: 8, 16>}, {transform_indices = @transform_1, window_bounds = array<i64: 8, 1>}, {pipeline_mode = #tpu.pipeline_mode<synchronous>, transform_indices = @transform_2, window_bounds = array<i64: 6, 16, 32>}, {pipeline_mode = #tpu.pipeline_mode<synchronous>, transform_indices = @transform_3, window_bounds = array<i64: 6, 1, 32>}, {pipeline_mode = #tpu.pipeline_mode<synchronous>, transform_indices = @transform_4, window_bounds = array<i64: 6, 32, 32>}, {pipeline_mode = #tpu.pipeline_mode<synchronous>, transform_indices = @transform_5, window_bounds = array<i64: 6, 1, 32>}, {pipeline_mode = #tpu.pipeline_mode<synchronous>, transform_indices = @transform_6, window_bounds = array<i64: 6, 32, 1>}, {pipeline_mode = #tpu.pipeline_mode<synchronous>, transform_indices = @transform_7, window_bounds = array<i64: 6, 1, 1>}, {transform_indices = @transform_8, window_bounds = array<i64: 8, 1>}]} {
    %c0 = arith.constant 0 : index
    %c0_0 = arith.constant 0 : index
    %0 = vector.load %arg1[%c0, %c0_0] : memref<8x16xf32, #tpu.memory_space<vmem>>, vector<8x16xf32>
    %c0_1 = arith.constant 0 : index
    %c0_2 = arith.constant 0 : index
    %c0_3 = arith.constant 0 : index
    %1 = vector.load %arg3[%c0_1, %c0_2, %c0_3] : memref<6x16x32xf32, #tpu.memory_space<vmem>>, vector<1x16x32xf32>
    %2 = vector.shape_cast %1 : vector<1x16x32xf32> to vector<16x32xf32>
    %cst = arith.constant dense<0.000000e+00> : vector<8x32xf32>
    %3 = tpu.matmul %0, %2, %cst {dimension_numbers = #tpu.dot_dimension_numbers<[1], [0], [0], [1], [0, 0, 1, 1], [], []>} : vector<8x16xf32>, vector<16x32xf32>, vector<8x32xf32> -> vector<8x32xf32>
    %c0_4 = arith.constant 0 : index
    %c0_5 = arith.constant 0 : index
    %c0_6 = arith.constant 0 : index
    %4 = vector.load %arg4[%c0_4, %c0_5, %c0_6] : memref<6x1x32xf32, #tpu.memory_space<vmem>>, vector<1x1x32xf32>
    %5 = vector.shape_cast %4 : vector<1x1x32xf32> to vector<1x32xf32>
    %6 = vector.broadcast %5 : vector<1x32xf32> to vector<8x32xf32>
    %7 = arith.addf %3, %6 : vector<8x32xf32>
    %cst_7 = arith.constant 0.000000e+00 : f32
    %8 = vector.broadcast %cst_7 : f32 to vector<8x32xf32>
    %9 = arith.maximumf %7, %8 : vector<8x32xf32>
    %c0_8 = arith.constant 0 : index
    %c0_9 = arith.constant 0 : index
    %c0_10 = arith.constant 0 : index
    %10 = vector.load %arg5[%c0_8, %c0_9, %c0_10] : memref<6x32x32xf32, #tpu.memory_space<vmem>>, vector<1x32x32xf32>
    %11 = vector.shape_cast %10 : vector<1x32x32xf32> to vector<32x32xf32>
    %cst_11 = arith.constant dense<0.000000e+00> : vector<8x32xf32>
    %12 = tpu.matmul %9, %11, %cst_11 {dimension_numbers = #tpu.dot_dimension_numbers<[1], [0], [0], [1], [0, 0, 1, 1], [], []>} : vector<8x32xf32>, vector<32x32xf32>, vector<8x32xf32> -> vector<8x32xf32>
    %c0_12 = arith.constant 0 : index
    %c0_13 = arith.constant 0 : index
    %c0_14 = arith.constant 0 : index
    %13 = vector.load %arg6[%c0_12, %c0_13, %c0_14] : memref<6x1x32xf32, #tpu.memory_space<vmem>>, vector<1x1x32xf32>
    %14 = vector.shape_cast %13 : vector<1x1x32xf32> to vector<1x32xf32>
    %15 = vector.broadcast %14 : vector<1x32xf32> to vector<8x32xf32>
    %16 = arith.addf %12, %15 : vector<8x32xf32>
    %cst_15 = arith.constant 0.000000e+00 : f32
    %17 = vector.broadcast %cst_15 : f32 to vector<8x32xf32>
    %18 = arith.maximumf %16, %17 : vector<8x32xf32>
    %c0_16 = arith.constant 0 : index
    %c0_17 = arith.constant 0 : index
    %c0_18 = arith.constant 0 : index
    %19 = vector.load %arg7[%c0_16, %c0_17, %c0_18] : memref<6x32x1xf32, #tpu.memory_space<vmem>>, vector<1x32x1xf32>
    %20 = vector.shape_cast %19 : vector<1x32x1xf32> to vector<32x1xf32>
    %cst_19 = arith.constant dense<0.000000e+00> : vector<8x1xf32>
    %21 = tpu.matmul %18, %20, %cst_19 {dimension_numbers = #tpu.dot_dimension_numbers<[1], [0], [0], [1], [0, 0, 1, 1], [], []>} : vector<8x32xf32>, vector<32x1xf32>, vector<8x1xf32> -> vector<8x1xf32>
    %c0_20 = arith.constant 0 : index
    %c0_21 = arith.constant 0 : index
    %c0_22 = arith.constant 0 : index
    %22 = vector.load %arg8[%c0_20, %c0_21, %c0_22] : memref<6x1x1xf32, #tpu.memory_space<vmem>>, vector<1x1x1xf32>
    %23 = vector.shape_cast %22 : vector<1x1x1xf32> to vector<1x1xf32>
    %24 = vector.broadcast %23 : vector<1x1xf32> to vector<8x1xf32>
    %25 = arith.addf %21, %24 : vector<8x1xf32>
    %c1 = arith.constant 1 : index
    %c0_23 = arith.constant 0 : index
    %c0_24 = arith.constant 0 : index
    %26 = vector.load %arg3[%c1, %c0_23, %c0_24] : memref<6x16x32xf32, #tpu.memory_space<vmem>>, vector<1x16x32xf32>
    %27 = vector.shape_cast %26 : vector<1x16x32xf32> to vector<16x32xf32>
    %cst_25 = arith.constant dense<0.000000e+00> : vector<8x32xf32>
    %28 = tpu.matmul %0, %27, %cst_25 {dimension_numbers = #tpu.dot_dimension_numbers<[1], [0], [0], [1], [0, 0, 1, 1], [], []>} : vector<8x16xf32>, vector<16x32xf32>, vector<8x32xf32> -> vector<8x32xf32>
    %c1_26 = arith.constant 1 : index
    %c0_27 = arith.constant 0 : index
    %c0_28 = arith.constant 0 : index
    %29 = vector.load %arg4[%c1_26, %c0_27, %c0_28] : memref<6x1x32xf32, #tpu.memory_space<vmem>>, vector<1x1x32xf32>
    %30 = vector.shape_cast %29 : vector<1x1x32xf32> to vector<1x32xf32>
    %31 = vector.broadcast %30 : vector<1x32xf32> to vector<8x32xf32>
    %32 = arith.addf %28, %31 : vector<8x32xf32>
    %cst_29 = arith.constant 0.000000e+00 : f32
    %33 = vector.broadcast %cst_29 : f32 to vector<8x32xf32>
    %34 = arith.maximumf %32, %33 : vector<8x32xf32>
    %c1_30 = arith.constant 1 : index
    %c0_31 = arith.constant 0 : index
    %c0_32 = arith.constant 0 : index
    %35 = vector.load %arg5[%c1_30, %c0_31, %c0_32] : memref<6x32x32xf32, #tpu.memory_space<vmem>>, vector<1x32x32xf32>
    %36 = vector.shape_cast %35 : vector<1x32x32xf32> to vector<32x32xf32>
    %cst_33 = arith.constant dense<0.000000e+00> : vector<8x32xf32>
    %37 = tpu.matmul %34, %36, %cst_33 {dimension_numbers = #tpu.dot_dimension_numbers<[1], [0], [0], [1], [0, 0, 1, 1], [], []>} : vector<8x32xf32>, vector<32x32xf32>, vector<8x32xf32> -> vector<8x32xf32>
    %c1_34 = arith.constant 1 : index
    %c0_35 = arith.constant 0 : index
    %c0_36 = arith.constant 0 : index
    %38 = vector.load %arg6[%c1_34, %c0_35, %c0_36] : memref<6x1x32xf32, #tpu.memory_space<vmem>>, vector<1x1x32xf32>
    %39 = vector.shape_cast %38 : vector<1x1x32xf32> to vector<1x32xf32>
    %40 = vector.broadcast %39 : vector<1x32xf32> to vector<8x32xf32>
    %41 = arith.addf %37, %40 : vector<8x32xf32>
    %cst_37 = arith.constant 0.000000e+00 : f32
    %42 = vector.broadcast %cst_37 : f32 to vector<8x32xf32>
    %43 = arith.maximumf %41, %42 : vector<8x32xf32>
    %c1_38 = arith.constant 1 : index
    %c0_39 = arith.constant 0 : index
    %c0_40 = arith.constant 0 : index
    %44 = vector.load %arg7[%c1_38, %c0_39, %c0_40] : memref<6x32x1xf32, #tpu.memory_space<vmem>>, vector<1x32x1xf32>
    %45 = vector.shape_cast %44 : vector<1x32x1xf32> to vector<32x1xf32>
    %cst_41 = arith.constant dense<0.000000e+00> : vector<8x1xf32>
    %46 = tpu.matmul %43, %45, %cst_41 {dimension_numbers = #tpu.dot_dimension_numbers<[1], [0], [0], [1], [0, 0, 1, 1], [], []>} : vector<8x32xf32>, vector<32x1xf32>, vector<8x1xf32> -> vector<8x1xf32>
    %c1_42 = arith.constant 1 : index
    %c0_43 = arith.constant 0 : index
    %c0_44 = arith.constant 0 : index
    %47 = vector.load %arg8[%c1_42, %c0_43, %c0_44] : memref<6x1x1xf32, #tpu.memory_space<vmem>>, vector<1x1x1xf32>
    %48 = vector.shape_cast %47 : vector<1x1x1xf32> to vector<1x1xf32>
    %49 = vector.broadcast %48 : vector<1x1xf32> to vector<8x1xf32>
    %50 = arith.addf %46, %49 : vector<8x1xf32>
    %c2 = arith.constant 2 : index
    %c0_45 = arith.constant 0 : index
    %c0_46 = arith.constant 0 : index
    %51 = vector.load %arg3[%c2, %c0_45, %c0_46] : memref<6x16x32xf32, #tpu.memory_space<vmem>>, vector<1x16x32xf32>
    %52 = vector.shape_cast %51 : vector<1x16x32xf32> to vector<16x32xf32>
    %cst_47 = arith.constant dense<0.000000e+00> : vector<8x32xf32>
    %53 = tpu.matmul %0, %52, %cst_47 {dimension_numbers = #tpu.dot_dimension_numbers<[1], [0], [0], [1], [0, 0, 1, 1], [], []>} : vector<8x16xf32>, vector<16x32xf32>, vector<8x32xf32> -> vector<8x32xf32>
    %c2_48 = arith.constant 2 : index
    %c0_49 = arith.constant 0 : index
    %c0_50 = arith.constant 0 : index
    %54 = vector.load %arg4[%c2_48, %c0_49, %c0_50] : memref<6x1x32xf32, #tpu.memory_space<vmem>>, vector<1x1x32xf32>
    %55 = vector.shape_cast %54 : vector<1x1x32xf32> to vector<1x32xf32>
    %56 = vector.broadcast %55 : vector<1x32xf32> to vector<8x32xf32>
    %57 = arith.addf %53, %56 : vector<8x32xf32>
    %cst_51 = arith.constant 0.000000e+00 : f32
    %58 = vector.broadcast %cst_51 : f32 to vector<8x32xf32>
    %59 = arith.maximumf %57, %58 : vector<8x32xf32>
    %c2_52 = arith.constant 2 : index
    %c0_53 = arith.constant 0 : index
    %c0_54 = arith.constant 0 : index
    %60 = vector.load %arg5[%c2_52, %c0_53, %c0_54] : memref<6x32x32xf32, #tpu.memory_space<vmem>>, vector<1x32x32xf32>
    %61 = vector.shape_cast %60 : vector<1x32x32xf32> to vector<32x32xf32>
    %cst_55 = arith.constant dense<0.000000e+00> : vector<8x32xf32>
    %62 = tpu.matmul %59, %61, %cst_55 {dimension_numbers = #tpu.dot_dimension_numbers<[1], [0], [0], [1], [0, 0, 1, 1], [], []>} : vector<8x32xf32>, vector<32x32xf32>, vector<8x32xf32> -> vector<8x32xf32>
    %c2_56 = arith.constant 2 : index
    %c0_57 = arith.constant 0 : index
    %c0_58 = arith.constant 0 : index
    %63 = vector.load %arg6[%c2_56, %c0_57, %c0_58] : memref<6x1x32xf32, #tpu.memory_space<vmem>>, vector<1x1x32xf32>
    %64 = vector.shape_cast %63 : vector<1x1x32xf32> to vector<1x32xf32>
    %65 = vector.broadcast %64 : vector<1x32xf32> to vector<8x32xf32>
    %66 = arith.addf %62, %65 : vector<8x32xf32>
    %cst_59 = arith.constant 0.000000e+00 : f32
    %67 = vector.broadcast %cst_59 : f32 to vector<8x32xf32>
    %68 = arith.maximumf %66, %67 : vector<8x32xf32>
    %c2_60 = arith.constant 2 : index
    %c0_61 = arith.constant 0 : index
    %c0_62 = arith.constant 0 : index
    %69 = vector.load %arg7[%c2_60, %c0_61, %c0_62] : memref<6x32x1xf32, #tpu.memory_space<vmem>>, vector<1x32x1xf32>
    %70 = vector.shape_cast %69 : vector<1x32x1xf32> to vector<32x1xf32>
    %cst_63 = arith.constant dense<0.000000e+00> : vector<8x1xf32>
    %71 = tpu.matmul %68, %70, %cst_63 {dimension_numbers = #tpu.dot_dimension_numbers<[1], [0], [0], [1], [0, 0, 1, 1], [], []>} : vector<8x32xf32>, vector<32x1xf32>, vector<8x1xf32> -> vector<8x1xf32>
    %c2_64 = arith.constant 2 : index
    %c0_65 = arith.constant 0 : index
    %c0_66 = arith.constant 0 : index
    %72 = vector.load %arg8[%c2_64, %c0_65, %c0_66] : memref<6x1x1xf32, #tpu.memory_space<vmem>>, vector<1x1x1xf32>
    %73 = vector.shape_cast %72 : vector<1x1x1xf32> to vector<1x1xf32>
    %74 = vector.broadcast %73 : vector<1x1xf32> to vector<8x1xf32>
    %75 = arith.addf %71, %74 : vector<8x1xf32>
    %c3 = arith.constant 3 : index
    %c0_67 = arith.constant 0 : index
    %c0_68 = arith.constant 0 : index
    %76 = vector.load %arg3[%c3, %c0_67, %c0_68] : memref<6x16x32xf32, #tpu.memory_space<vmem>>, vector<1x16x32xf32>
    %77 = vector.shape_cast %76 : vector<1x16x32xf32> to vector<16x32xf32>
    %cst_69 = arith.constant dense<0.000000e+00> : vector<8x32xf32>
    %78 = tpu.matmul %0, %77, %cst_69 {dimension_numbers = #tpu.dot_dimension_numbers<[1], [0], [0], [1], [0, 0, 1, 1], [], []>} : vector<8x16xf32>, vector<16x32xf32>, vector<8x32xf32> -> vector<8x32xf32>
    %c3_70 = arith.constant 3 : index
    %c0_71 = arith.constant 0 : index
    %c0_72 = arith.constant 0 : index
    %79 = vector.load %arg4[%c3_70, %c0_71, %c0_72] : memref<6x1x32xf32, #tpu.memory_space<vmem>>, vector<1x1x32xf32>
    %80 = vector.shape_cast %79 : vector<1x1x32xf32> to vector<1x32xf32>
    %81 = vector.broadcast %80 : vector<1x32xf32> to vector<8x32xf32>
    %82 = arith.addf %78, %81 : vector<8x32xf32>
    %cst_73 = arith.constant 0.000000e+00 : f32
    %83 = vector.broadcast %cst_73 : f32 to vector<8x32xf32>
    %84 = arith.maximumf %82, %83 : vector<8x32xf32>
    %c3_74 = arith.constant 3 : index
    %c0_75 = arith.constant 0 : index
    %c0_76 = arith.constant 0 : index
    %85 = vector.load %arg5[%c3_74, %c0_75, %c0_76] : memref<6x32x32xf32, #tpu.memory_space<vmem>>, vector<1x32x32xf32>
    %86 = vector.shape_cast %85 : vector<1x32x32xf32> to vector<32x32xf32>
    %cst_77 = arith.constant dense<0.000000e+00> : vector<8x32xf32>
    %87 = tpu.matmul %84, %86, %cst_77 {dimension_numbers = #tpu.dot_dimension_numbers<[1], [0], [0], [1], [0, 0, 1, 1], [], []>} : vector<8x32xf32>, vector<32x32xf32>, vector<8x32xf32> -> vector<8x32xf32>
    %c3_78 = arith.constant 3 : index
    %c0_79 = arith.constant 0 : index
    %c0_80 = arith.constant 0 : index
    %88 = vector.load %arg6[%c3_78, %c0_79, %c0_80] : memref<6x1x32xf32, #tpu.memory_space<vmem>>, vector<1x1x32xf32>
    %89 = vector.shape_cast %88 : vector<1x1x32xf32> to vector<1x32xf32>
    %90 = vector.broadcast %89 : vector<1x32xf32> to vector<8x32xf32>
    %91 = arith.addf %87, %90 : vector<8x32xf32>
    %cst_81 = arith.constant 0.000000e+00 : f32
    %92 = vector.broadcast %cst_81 : f32 to vector<8x32xf32>
    %93 = arith.maximumf %91, %92 : vector<8x32xf32>
    %c3_82 = arith.constant 3 : index
    %c0_83 = arith.constant 0 : index
    %c0_84 = arith.constant 0 : index
    %94 = vector.load %arg7[%c3_82, %c0_83, %c0_84] : memref<6x32x1xf32, #tpu.memory_space<vmem>>, vector<1x32x1xf32>
    %95 = vector.shape_cast %94 : vector<1x32x1xf32> to vector<32x1xf32>
    %cst_85 = arith.constant dense<0.000000e+00> : vector<8x1xf32>
    %96 = tpu.matmul %93, %95, %cst_85 {dimension_numbers = #tpu.dot_dimension_numbers<[1], [0], [0], [1], [0, 0, 1, 1], [], []>} : vector<8x32xf32>, vector<32x1xf32>, vector<8x1xf32> -> vector<8x1xf32>
    %c3_86 = arith.constant 3 : index
    %c0_87 = arith.constant 0 : index
    %c0_88 = arith.constant 0 : index
    %97 = vector.load %arg8[%c3_86, %c0_87, %c0_88] : memref<6x1x1xf32, #tpu.memory_space<vmem>>, vector<1x1x1xf32>
    %98 = vector.shape_cast %97 : vector<1x1x1xf32> to vector<1x1xf32>
    %99 = vector.broadcast %98 : vector<1x1xf32> to vector<8x1xf32>
    %100 = arith.addf %96, %99 : vector<8x1xf32>
    %c4 = arith.constant 4 : index
    %c0_89 = arith.constant 0 : index
    %c0_90 = arith.constant 0 : index
    %101 = vector.load %arg3[%c4, %c0_89, %c0_90] : memref<6x16x32xf32, #tpu.memory_space<vmem>>, vector<1x16x32xf32>
    %102 = vector.shape_cast %101 : vector<1x16x32xf32> to vector<16x32xf32>
    %cst_91 = arith.constant dense<0.000000e+00> : vector<8x32xf32>
    %103 = tpu.matmul %0, %102, %cst_91 {dimension_numbers = #tpu.dot_dimension_numbers<[1], [0], [0], [1], [0, 0, 1, 1], [], []>} : vector<8x16xf32>, vector<16x32xf32>, vector<8x32xf32> -> vector<8x32xf32>
    %c4_92 = arith.constant 4 : index
    %c0_93 = arith.constant 0 : index
    %c0_94 = arith.constant 0 : index
    %104 = vector.load %arg4[%c4_92, %c0_93, %c0_94] : memref<6x1x32xf32, #tpu.memory_space<vmem>>, vector<1x1x32xf32>
    %105 = vector.shape_cast %104 : vector<1x1x32xf32> to vector<1x32xf32>
    %106 = vector.broadcast %105 : vector<1x32xf32> to vector<8x32xf32>
    %107 = arith.addf %103, %106 : vector<8x32xf32>
    %cst_95 = arith.constant 0.000000e+00 : f32
    %108 = vector.broadcast %cst_95 : f32 to vector<8x32xf32>
    %109 = arith.maximumf %107, %108 : vector<8x32xf32>
    %c4_96 = arith.constant 4 : index
    %c0_97 = arith.constant 0 : index
    %c0_98 = arith.constant 0 : index
    %110 = vector.load %arg5[%c4_96, %c0_97, %c0_98] : memref<6x32x32xf32, #tpu.memory_space<vmem>>, vector<1x32x32xf32>
    %111 = vector.shape_cast %110 : vector<1x32x32xf32> to vector<32x32xf32>
    %cst_99 = arith.constant dense<0.000000e+00> : vector<8x32xf32>
    %112 = tpu.matmul %109, %111, %cst_99 {dimension_numbers = #tpu.dot_dimension_numbers<[1], [0], [0], [1], [0, 0, 1, 1], [], []>} : vector<8x32xf32>, vector<32x32xf32>, vector<8x32xf32> -> vector<8x32xf32>
    %c4_100 = arith.constant 4 : index
    %c0_101 = arith.constant 0 : index
    %c0_102 = arith.constant 0 : index
    %113 = vector.load %arg6[%c4_100, %c0_101, %c0_102] : memref<6x1x32xf32, #tpu.memory_space<vmem>>, vector<1x1x32xf32>
    %114 = vector.shape_cast %113 : vector<1x1x32xf32> to vector<1x32xf32>
    %115 = vector.broadcast %114 : vector<1x32xf32> to vector<8x32xf32>
    %116 = arith.addf %112, %115 : vector<8x32xf32>
    %cst_103 = arith.constant 0.000000e+00 : f32
    %117 = vector.broadcast %cst_103 : f32 to vector<8x32xf32>
    %118 = arith.maximumf %116, %117 : vector<8x32xf32>
    %c4_104 = arith.constant 4 : index
    %c0_105 = arith.constant 0 : index
    %c0_106 = arith.constant 0 : index
    %119 = vector.load %arg7[%c4_104, %c0_105, %c0_106] : memref<6x32x1xf32, #tpu.memory_space<vmem>>, vector<1x32x1xf32>
    %120 = vector.shape_cast %119 : vector<1x32x1xf32> to vector<32x1xf32>
    %cst_107 = arith.constant dense<0.000000e+00> : vector<8x1xf32>
    %121 = tpu.matmul %118, %120, %cst_107 {dimension_numbers = #tpu.dot_dimension_numbers<[1], [0], [0], [1], [0, 0, 1, 1], [], []>} : vector<8x32xf32>, vector<32x1xf32>, vector<8x1xf32> -> vector<8x1xf32>
    %c4_108 = arith.constant 4 : index
    %c0_109 = arith.constant 0 : index
    %c0_110 = arith.constant 0 : index
    %122 = vector.load %arg8[%c4_108, %c0_109, %c0_110] : memref<6x1x1xf32, #tpu.memory_space<vmem>>, vector<1x1x1xf32>
    %123 = vector.shape_cast %122 : vector<1x1x1xf32> to vector<1x1xf32>
    %124 = vector.broadcast %123 : vector<1x1xf32> to vector<8x1xf32>
    %125 = arith.addf %121, %124 : vector<8x1xf32>
    %c5 = arith.constant 5 : index
    %c0_111 = arith.constant 0 : index
    %c0_112 = arith.constant 0 : index
    %126 = vector.load %arg3[%c5, %c0_111, %c0_112] : memref<6x16x32xf32, #tpu.memory_space<vmem>>, vector<1x16x32xf32>
    %127 = vector.shape_cast %126 : vector<1x16x32xf32> to vector<16x32xf32>
    %cst_113 = arith.constant dense<0.000000e+00> : vector<8x32xf32>
    %128 = tpu.matmul %0, %127, %cst_113 {dimension_numbers = #tpu.dot_dimension_numbers<[1], [0], [0], [1], [0, 0, 1, 1], [], []>} : vector<8x16xf32>, vector<16x32xf32>, vector<8x32xf32> -> vector<8x32xf32>
    %c5_114 = arith.constant 5 : index
    %c0_115 = arith.constant 0 : index
    %c0_116 = arith.constant 0 : index
    %129 = vector.load %arg4[%c5_114, %c0_115, %c0_116] : memref<6x1x32xf32, #tpu.memory_space<vmem>>, vector<1x1x32xf32>
    %130 = vector.shape_cast %129 : vector<1x1x32xf32> to vector<1x32xf32>
    %131 = vector.broadcast %130 : vector<1x32xf32> to vector<8x32xf32>
    %132 = arith.addf %128, %131 : vector<8x32xf32>
    %cst_117 = arith.constant 0.000000e+00 : f32
    %133 = vector.broadcast %cst_117 : f32 to vector<8x32xf32>
    %134 = arith.maximumf %132, %133 : vector<8x32xf32>
    %c5_118 = arith.constant 5 : index
    %c0_119 = arith.constant 0 : index
    %c0_120 = arith.constant 0 : index
    %135 = vector.load %arg5[%c5_118, %c0_119, %c0_120] : memref<6x32x32xf32, #tpu.memory_space<vmem>>, vector<1x32x32xf32>
    %136 = vector.shape_cast %135 : vector<1x32x32xf32> to vector<32x32xf32>
    %cst_121 = arith.constant dense<0.000000e+00> : vector<8x32xf32>
    %137 = tpu.matmul %134, %136, %cst_121 {dimension_numbers = #tpu.dot_dimension_numbers<[1], [0], [0], [1], [0, 0, 1, 1], [], []>} : vector<8x32xf32>, vector<32x32xf32>, vector<8x32xf32> -> vector<8x32xf32>
    %c5_122 = arith.constant 5 : index
    %c0_123 = arith.constant 0 : index
    %c0_124 = arith.constant 0 : index
    %138 = vector.load %arg6[%c5_122, %c0_123, %c0_124] : memref<6x1x32xf32, #tpu.memory_space<vmem>>, vector<1x1x32xf32>
    %139 = vector.shape_cast %138 : vector<1x1x32xf32> to vector<1x32xf32>
    %140 = vector.broadcast %139 : vector<1x32xf32> to vector<8x32xf32>
    %141 = arith.addf %137, %140 : vector<8x32xf32>
    %cst_125 = arith.constant 0.000000e+00 : f32
    %142 = vector.broadcast %cst_125 : f32 to vector<8x32xf32>
    %143 = arith.maximumf %141, %142 : vector<8x32xf32>
    %c5_126 = arith.constant 5 : index
    %c0_127 = arith.constant 0 : index
    %c0_128 = arith.constant 0 : index
    %144 = vector.load %arg7[%c5_126, %c0_127, %c0_128] : memref<6x32x1xf32, #tpu.memory_space<vmem>>, vector<1x32x1xf32>
    %145 = vector.shape_cast %144 : vector<1x32x1xf32> to vector<32x1xf32>
    %cst_129 = arith.constant dense<0.000000e+00> : vector<8x1xf32>
    %146 = tpu.matmul %143, %145, %cst_129 {dimension_numbers = #tpu.dot_dimension_numbers<[1], [0], [0], [1], [0, 0, 1, 1], [], []>} : vector<8x32xf32>, vector<32x1xf32>, vector<8x1xf32> -> vector<8x1xf32>
    %c5_130 = arith.constant 5 : index
    %c0_131 = arith.constant 0 : index
    %c0_132 = arith.constant 0 : index
    %147 = vector.load %arg8[%c5_130, %c0_131, %c0_132] : memref<6x1x1xf32, #tpu.memory_space<vmem>>, vector<1x1x1xf32>
    %148 = vector.shape_cast %147 : vector<1x1x1xf32> to vector<1x1xf32>
    %149 = vector.broadcast %148 : vector<1x1xf32> to vector<8x1xf32>
    %150 = arith.addf %146, %149 : vector<8x1xf32>
    %c0_133 = arith.constant 0 : index
    %c0_134 = arith.constant 0 : index
    %151 = vector.load %arg2[%c0_133, %c0_134] : memref<8x1xf32, #tpu.memory_space<vmem>>, vector<8x1xf32>
    %152 = arith.mulf %25, %151 : vector<8x1xf32>
    %153 = arith.addf %152, %100 : vector<8x1xf32>
    %cst_135 = arith.constant 0.000000e+00 : f32
    %154 = vector.broadcast %cst_135 : f32 to vector<8x1xf32>
    %155 = arith.maximumf %153, %154 : vector<8x1xf32>
    %156 = arith.mulf %50, %155 : vector<8x1xf32>
    %157 = arith.addf %156, %125 : vector<8x1xf32>
    %158 = arith.addf %157, %151 : vector<8x1xf32>
    %159 = arith.mulf %50, %158 : vector<8x1xf32>
    %160 = arith.addf %159, %125 : vector<8x1xf32>
    %cst_136 = arith.constant 0.000000e+00 : f32
    %161 = vector.broadcast %cst_136 : f32 to vector<8x1xf32>
    %162 = arith.maximumf %160, %161 : vector<8x1xf32>
    %163 = arith.mulf %75, %162 : vector<8x1xf32>
    %164 = arith.addf %163, %150 : vector<8x1xf32>
    %165 = arith.addf %164, %158 : vector<8x1xf32>
    %c0_137 = arith.constant 0 : index
    %c0_138 = arith.constant 0 : index
    %166 = vector.load %arg9[%c0_137, %c0_138] : memref<8x1xf32, #tpu.memory_space<vmem>>, vector<8x1xf32>
    tpu.vector_store %arg9[%c0_137, %c0_138], %165 {strides = array<i32>} : memref<8x1xf32, #tpu.memory_space<vmem>>, vector<8x1xf32>,
    return
  }
  func.func @transform_0(%arg0: i32) -> (i32, i32) {
    %c0_i32 = arith.constant 0 : i32
    %c0_i32_0 = arith.constant 0 : i32
    return %arg0, %c0_i32 : i32, i32
  }
  func.func @transform_1(%arg0: i32) -> (i32, i32) {
    %c0_i32 = arith.constant 0 : i32
    %c0_i32_0 = arith.constant 0 : i32
    return %arg0, %c0_i32 : i32, i32
  }
  func.func @transform_2(%arg0: i32) -> (i32, i32, i32) {
    %c0_i32 = arith.constant 0 : i32
    %c0_i32_0 = arith.constant 0 : i32
    %c0_i32_1 = arith.constant 0 : i32
    %c0_i32_2 = arith.constant 0 : i32
    return %c0_i32, %c0_i32_0, %c0_i32_1 : i32, i32, i32
  }
  func.func @transform_3(%arg0: i32) -> (i32, i32, i32) {
    %c0_i32 = arith.constant 0 : i32
    %c0_i32_0 = arith.constant 0 : i32
    %c0_i32_1 = arith.constant 0 : i32
    %c0_i32_2 = arith.constant 0 : i32
    return %c0_i32, %c0_i32_0, %c0_i32_1 : i32, i32, i32
  }
  func.func @transform_4(%arg0: i32) -> (i32, i32, i32) {
    %c0_i32 = arith.constant 0 : i32
    %c0_i32_0 = arith.constant 0 : i32
    %c0_i32_1 = arith.constant 0 : i32
    %c0_i32_2 = arith.constant 0 : i32
    return %c0_i32, %c0_i32_0, %c0_i32_1 : i32, i32, i32
  }
  func.func @transform_5(%arg0: i32) -> (i32, i32, i32) {
    %c0_i32 = arith.constant 0 : i32
    %c0_i32_0 = arith.constant 0 : i32
    %c0_i32_1 = arith.constant 0 : i32
    %c0_i32_2 = arith.constant 0 : i32
    return %c0_i32, %c0_i32_0, %c0_i32_1 : i32, i32, i32
  }
  func.func @transform_6(%arg0: i32) -> (i32, i32, i32) {
    %c0_i32 = arith.constant 0 : i32
    %c0_i32_0 = arith.constant 0 : i32
    %c0_i32_1 = arith.constant 0 : i32
    %c0_i32_2 = arith.constant 0 : i32
    return %c0_i32, %c0_i32_0, %c0_i32_1 : i32, i32, i32
  }
  func.func @transform_7(%arg0: i32) -> (i32, i32, i32) {
    %c0_i32 = arith.constant 0 : i32
    %c0_i32_0 = arith.constant 0 : i32
    %c0_i32_1 = arith.constant 0 : i32
    %c0_i32_2 = arith.constant 0 : i32
    return %c0_i32, %c0_i32_0, %c0_i32_1 : i32, i32, i32
  }
  func.func @transform_8(%arg0: i32) -> (i32, i32) {
    %c0_i32 = arith.constant 0 : i32
    %c0_i32_0 = arith.constant 0 : i32
    return %arg0, %c0_i32 : i32, i32
  }
}

module attributes {stable_mosaic.version = 11 : i64} {
  func.func @_idw_interp_kernel(%arg0: i32, %arg1: memref<8x16xf32, #tpu.memory_space<vmem>>, %arg2: memref<16x16xf32, #tpu.memory_space<vmem>>, %arg3: memref<1x16xf32, #tpu.memory_space<vmem>>, %arg4: memref<1x1xf32, #tpu.memory_space<vmem>>, %arg5: memref<16x1xf32, #tpu.memory_space<vmem>>, %arg6: memref<8x16xf32, #tpu.memory_space<vmem>>, %arg7: memref<8x1xf32, #tpu.memory_space<vmem>>) attributes {dimension_semantics = [#tpu.dimension_semantics<parallel>], iteration_bounds = array<i64: 2>, scalar_prefetch = 0 : i64, scratch_operands = 0 : i64, tpu.core_type = #tpu.core_type<tc>, window_params = [{transform_indices = @transform_0, window_bounds = array<i64: 8, 16>}, {pipeline_mode = #tpu.pipeline_mode<synchronous>, transform_indices = @transform_1, window_bounds = array<i64: 16, 16>}, {pipeline_mode = #tpu.pipeline_mode<synchronous>, transform_indices = @transform_2, window_bounds = array<i64: 1, 16>}, {pipeline_mode = #tpu.pipeline_mode<synchronous>, transform_indices = @transform_3, window_bounds = array<i64: 1, 1>}, {pipeline_mode = #tpu.pipeline_mode<synchronous>, transform_indices = @transform_4, window_bounds = array<i64: 16, 1>}, {transform_indices = @transform_5, window_bounds = array<i64: 8, 16>}, {transform_indices = @transform_6, window_bounds = array<i64: 8, 1>}]} {
    %c0 = arith.constant 0 : index
    %c0_0 = arith.constant 0 : index
    %0 = vector.load %arg3[%c0, %c0_0] : memref<1x16xf32, #tpu.memory_space<vmem>>, vector<1x16xf32>
    %cst = arith.constant 1.000000e+00 : f32
    %1 = vector.broadcast %cst : f32 to vector<1x16xf32>
    %2 = arith.divf %1, %0 : vector<1x16xf32>
    %c0_1 = arith.constant 0 : index
    %c0_2 = arith.constant 0 : index
    %3 = vector.load %arg1[%c0_1, %c0_2] : memref<8x16xf32, #tpu.memory_space<vmem>>, vector<8x16xf32>
    %4 = vector.broadcast %2 : vector<1x16xf32> to vector<8x16xf32>
    %5 = arith.mulf %3, %4 : vector<8x16xf32>
    %c0_3 = arith.constant 0 : index
    %c0_4 = arith.constant 0 : index
    %6 = vector.load %arg2[%c0_3, %c0_4] : memref<16x16xf32, #tpu.memory_space<vmem>>, vector<16x16xf32>
    %7 = vector.broadcast %2 : vector<1x16xf32> to vector<16x16xf32>
    %8 = arith.mulf %6, %7 : vector<16x16xf32>
    %9 = vector.shape_cast %5 : vector<8x16xf32> to vector<8x1x16xf32>
    %10 = vector.shape_cast %8 : vector<16x16xf32> to vector<1x16x16xf32>
    %11 = vector.broadcast %9 : vector<8x1x16xf32> to vector<8x16x16xf32>
    %12 = vector.broadcast %10 : vector<1x16x16xf32> to vector<8x16x16xf32>
    %13 = arith.subf %11, %12 : vector<8x16x16xf32>
    %14 = arith.mulf %13, %13 : vector<8x16x16xf32>
    %cst_5 = arith.constant dense<0.000000e+00> : vector<8x16xf32>
    %15 = vector.multi_reduction <add>, %14, %cst_5 [2] : vector<8x16x16xf32> to vector<8x16xf32>
    %16 = math.sqrt %15 : vector<8x16xf32>
    %c0_6 = arith.constant 0 : index
    %c0_7 = arith.constant 0 : index
    %17 = vector.load %arg4[%c0_6, %c0_7] : memref<1x1xf32, #tpu.memory_space<vmem>>, vector<1x1xf32>
    %cst_8 = arith.constant 9.99999996E-13 : f32
    %18 = vector.broadcast %cst_8 : f32 to vector<8x16xf32>
    %19 = arith.maximumf %16, %18 : vector<8x16xf32>
    %20 = math.log %19 : vector<8x16xf32>
    %21 = vector.broadcast %17 : vector<1x1xf32> to vector<8x16xf32>
    %22 = arith.mulf %21, %20 : vector<8x16xf32>
    %23 = math.exp %22 : vector<8x16xf32>
    %cst_9 = arith.constant 9.99999997E-7 : f32
    %24 = vector.broadcast %cst_9 : f32 to vector<8x16xf32>
    %25 = arith.addf %23, %24 : vector<8x16xf32>
    %cst_10 = arith.constant 1.000000e+00 : f32
    %26 = vector.broadcast %cst_10 : f32 to vector<8x16xf32>
    %27 = arith.divf %26, %25 : vector<8x16xf32>
    %c0_11 = arith.constant 0 : index
    %c0_12 = arith.constant 0 : index
    %28 = vector.load %arg6[%c0_11, %c0_12] : memref<8x16xf32, #tpu.memory_space<vmem>>, vector<8x16xf32>
    tpu.vector_store %arg6[%c0_11, %c0_12], %27 {strides = array<i32>} : memref<8x16xf32, #tpu.memory_space<vmem>>, vector<8x16xf32>,
    %29 = math.absf %27 : vector<8x16xf32>
    %cst_13 = arith.constant dense<0.000000e+00> : vector<8xf32>
    %30 = vector.multi_reduction <add>, %29, %cst_13 [1] : vector<8x16xf32> to vector<8xf32>
    %31 = vector.shape_cast %30 : vector<8xf32> to vector<8x1xf32>
    %32 = vector.broadcast %31 : vector<8x1xf32> to vector<8x16xf32>
    %33 = arith.divf %27, %32 : vector<8x16xf32>
    %c0_14 = arith.constant 0 : index
    %c0_15 = arith.constant 0 : index
    %34 = vector.load %arg5[%c0_14, %c0_15] : memref<16x1xf32, #tpu.memory_space<vmem>>, vector<16x1xf32>
    %cst_16 = arith.constant dense<0.000000e+00> : vector<8x1xf32>
    %35 = tpu.matmul %33, %34, %cst_16 {dimension_numbers = #tpu.dot_dimension_numbers<[1], [0], [0], [1], [0, 0, 1, 1], [], []>} : vector<8x16xf32>, vector<16x1xf32>, vector<8x1xf32> -> vector<8x1xf32>
    %c0_17 = arith.constant 0 : index
    %c0_18 = arith.constant 0 : index
    %36 = vector.load %arg7[%c0_17, %c0_18] : memref<8x1xf32, #tpu.memory_space<vmem>>, vector<8x1xf32>
    tpu.vector_store %arg7[%c0_17, %c0_18], %35 {strides = array<i32>} : memref<8x1xf32, #tpu.memory_space<vmem>>, vector<8x1xf32>,
    return
  }
  func.func @transform_0(%arg0: i32) -> (i32, i32) {
    %c0_i32 = arith.constant 0 : i32
    %c0_i32_0 = arith.constant 0 : i32
    return %arg0, %c0_i32 : i32, i32
  }
  func.func @transform_1(%arg0: i32) -> (i32, i32) {
    %c0_i32 = arith.constant 0 : i32
    %c0_i32_0 = arith.constant 0 : i32
    %c0_i32_1 = arith.constant 0 : i32
    return %c0_i32, %c0_i32_0 : i32, i32
  }
  func.func @transform_2(%arg0: i32) -> (i32, i32) {
    %c0_i32 = arith.constant 0 : i32
    %c0_i32_0 = arith.constant 0 : i32
    %c0_i32_1 = arith.constant 0 : i32
    return %c0_i32, %c0_i32_0 : i32, i32
  }
  func.func @transform_3(%arg0: i32) -> (i32, i32) {
    %c0_i32 = arith.constant 0 : i32
    %c0_i32_0 = arith.constant 0 : i32
    %c0_i32_1 = arith.constant 0 : i32
    return %c0_i32, %c0_i32_0 : i32, i32
  }
  func.func @transform_4(%arg0: i32) -> (i32, i32) {
    %c0_i32 = arith.constant 0 : i32
    %c0_i32_0 = arith.constant 0 : i32
    %c0_i32_1 = arith.constant 0 : i32
    return %c0_i32, %c0_i32_0 : i32, i32
  }
  func.func @transform_5(%arg0: i32) -> (i32, i32) {
    %c0_i32 = arith.constant 0 : i32
    %c0_i32_0 = arith.constant 0 : i32
    return %arg0, %c0_i32 : i32, i32
  }
  func.func @transform_6(%arg0: i32) -> (i32, i32) {
    %c0_i32 = arith.constant 0 : i32
    %c0_i32_0 = arith.constant 0 : i32
    return %arg0, %c0_i32 : i32, i32
  }
}

module attributes {stable_mosaic.version = 11 : i64} {
  func.func @_mlp_decoder_kernel(%arg0: i32, %arg1: memref<8x1xf32, #tpu.memory_space<vmem>>, %arg2: memref<1x32xf32, #tpu.memory_space<vmem>>, %arg3: memref<1x32xf32, #tpu.memory_space<vmem>>, %arg4: memref<32x32xf32, #tpu.memory_space<vmem>>, %arg5: memref<1x32xf32, #tpu.memory_space<vmem>>, %arg6: memref<32x4xf32, #tpu.memory_space<vmem>>, %arg7: memref<1x4xf32, #tpu.memory_space<vmem>>, %arg8: memref<8x4xf32, #tpu.memory_space<vmem>>) attributes {dimension_semantics = [#tpu.dimension_semantics<parallel>], iteration_bounds = array<i64: 2>, scalar_prefetch = 0 : i64, scratch_operands = 0 : i64, tpu.core_type = #tpu.core_type<tc>, window_params = [{transform_indices = @transform_0, window_bounds = array<i64: 8, 1>}, {pipeline_mode = #tpu.pipeline_mode<synchronous>, transform_indices = @transform_1, window_bounds = array<i64: 1, 32>}, {pipeline_mode = #tpu.pipeline_mode<synchronous>, transform_indices = @transform_2, window_bounds = array<i64: 1, 32>}, {pipeline_mode = #tpu.pipeline_mode<synchronous>, transform_indices = @transform_3, window_bounds = array<i64: 32, 32>}, {pipeline_mode = #tpu.pipeline_mode<synchronous>, transform_indices = @transform_4, window_bounds = array<i64: 1, 32>}, {pipeline_mode = #tpu.pipeline_mode<synchronous>, transform_indices = @transform_5, window_bounds = array<i64: 32, 4>}, {pipeline_mode = #tpu.pipeline_mode<synchronous>, transform_indices = @transform_6, window_bounds = array<i64: 1, 4>}, {transform_indices = @transform_7, window_bounds = array<i64: 8, 4>}]} {
    %c0 = arith.constant 0 : index
    %c0_0 = arith.constant 0 : index
    %0 = vector.load %arg1[%c0, %c0_0] : memref<8x1xf32, #tpu.memory_space<vmem>>, vector<8x1xf32>
    %c0_1 = arith.constant 0 : index
    %c0_2 = arith.constant 0 : index
    %1 = vector.load %arg2[%c0_1, %c0_2] : memref<1x32xf32, #tpu.memory_space<vmem>>, vector<1x32xf32>
    %cst = arith.constant dense<0.000000e+00> : vector<8x32xf32>
    %2 = tpu.matmul %0, %1, %cst {dimension_numbers = #tpu.dot_dimension_numbers<[1], [0], [0], [1], [0, 0, 1, 1], [], []>} : vector<8x1xf32>, vector<1x32xf32>, vector<8x32xf32> -> vector<8x32xf32>
    %c0_3 = arith.constant 0 : index
    %c0_4 = arith.constant 0 : index
    %3 = vector.load %arg3[%c0_3, %c0_4] : memref<1x32xf32, #tpu.memory_space<vmem>>, vector<1x32xf32>
    %4 = vector.broadcast %3 : vector<1x32xf32> to vector<8x32xf32>
    %5 = arith.addf %2, %4 : vector<8x32xf32>
    %cst_5 = arith.constant 0.000000e+00 : f32
    %6 = vector.broadcast %cst_5 : f32 to vector<8x32xf32>
    %7 = arith.maximumf %5, %6 : vector<8x32xf32>
    %c0_6 = arith.constant 0 : index
    %c0_7 = arith.constant 0 : index
    %8 = vector.load %arg4[%c0_6, %c0_7] : memref<32x32xf32, #tpu.memory_space<vmem>>, vector<32x32xf32>
    %cst_8 = arith.constant dense<0.000000e+00> : vector<8x32xf32>
    %9 = tpu.matmul %7, %8, %cst_8 {dimension_numbers = #tpu.dot_dimension_numbers<[1], [0], [0], [1], [0, 0, 1, 1], [], []>} : vector<8x32xf32>, vector<32x32xf32>, vector<8x32xf32> -> vector<8x32xf32>
    %c0_9 = arith.constant 0 : index
    %c0_10 = arith.constant 0 : index
    %10 = vector.load %arg5[%c0_9, %c0_10] : memref<1x32xf32, #tpu.memory_space<vmem>>, vector<1x32xf32>
    %11 = vector.broadcast %10 : vector<1x32xf32> to vector<8x32xf32>
    %12 = arith.addf %9, %11 : vector<8x32xf32>
    %cst_11 = arith.constant 0.000000e+00 : f32
    %13 = vector.broadcast %cst_11 : f32 to vector<8x32xf32>
    %14 = arith.maximumf %12, %13 : vector<8x32xf32>
    %c0_12 = arith.constant 0 : index
    %c0_13 = arith.constant 0 : index
    %15 = vector.load %arg6[%c0_12, %c0_13] : memref<32x4xf32, #tpu.memory_space<vmem>>, vector<32x4xf32>
    %cst_14 = arith.constant dense<0.000000e+00> : vector<8x4xf32>
    %16 = tpu.matmul %14, %15, %cst_14 {dimension_numbers = #tpu.dot_dimension_numbers<[1], [0], [0], [1], [0, 0, 1, 1], [], []>} : vector<8x32xf32>, vector<32x4xf32>, vector<8x4xf32> -> vector<8x4xf32>
    %c0_15 = arith.constant 0 : index
    %c0_16 = arith.constant 0 : index
    %17 = vector.load %arg7[%c0_15, %c0_16] : memref<1x4xf32, #tpu.memory_space<vmem>>, vector<1x4xf32>
    %18 = vector.broadcast %17 : vector<1x4xf32> to vector<8x4xf32>
    %19 = arith.addf %16, %18 : vector<8x4xf32>
    %c0_17 = arith.constant 0 : index
    %c0_18 = arith.constant 0 : index
    %20 = vector.load %arg8[%c0_17, %c0_18] : memref<8x4xf32, #tpu.memory_space<vmem>>, vector<8x4xf32>
    tpu.vector_store %arg8[%c0_17, %c0_18], %19 {strides = array<i32>} : memref<8x4xf32, #tpu.memory_space<vmem>>, vector<8x4xf32>,
    return
  }
  func.func @transform_0(%arg0: i32) -> (i32, i32) {
    %c0_i32 = arith.constant 0 : i32
    %c0_i32_0 = arith.constant 0 : i32
    return %arg0, %c0_i32 : i32, i32
  }
  func.func @transform_1(%arg0: i32) -> (i32, i32) {
    %c0_i32 = arith.constant 0 : i32
    %c0_i32_0 = arith.constant 0 : i32
    %c0_i32_1 = arith.constant 0 : i32
    return %c0_i32, %c0_i32_0 : i32, i32
  }
  func.func @transform_2(%arg0: i32) -> (i32, i32) {
    %c0_i32 = arith.constant 0 : i32
    %c0_i32_0 = arith.constant 0 : i32
    %c0_i32_1 = arith.constant 0 : i32
    return %c0_i32, %c0_i32_0 : i32, i32
  }
  func.func @transform_3(%arg0: i32) -> (i32, i32) {
    %c0_i32 = arith.constant 0 : i32
    %c0_i32_0 = arith.constant 0 : i32
    %c0_i32_1 = arith.constant 0 : i32
    return %c0_i32, %c0_i32_0 : i32, i32
  }
  func.func @transform_4(%arg0: i32) -> (i32, i32) {
    %c0_i32 = arith.constant 0 : i32
    %c0_i32_0 = arith.constant 0 : i32
    %c0_i32_1 = arith.constant 0 : i32
    return %c0_i32, %c0_i32_0 : i32, i32
  }
  func.func @transform_5(%arg0: i32) -> (i32, i32) {
    %c0_i32 = arith.constant 0 : i32
    %c0_i32_0 = arith.constant 0 : i32
    %c0_i32_1 = arith.constant 0 : i32
    return %c0_i32, %c0_i32_0 : i32, i32
  }
  func.func @transform_6(%arg0: i32) -> (i32, i32) {
    %c0_i32 = arith.constant 0 : i32
    %c0_i32_0 = arith.constant 0 : i32
    %c0_i32_1 = arith.constant 0 : i32
    return %c0_i32, %c0_i32_0 : i32, i32
  }
  func.func @transform_7(%arg0: i32) -> (i32, i32) {
    %c0_i32 = arith.constant 0 : i32
    %c0_i32_0 = arith.constant 0 : i32
    return %arg0, %c0_i32 : i32, i32
  }
}

module attributes {stable_mosaic.version = 11 : i64} {
  func.func @_vae_encoder_kernel(%arg0: i32, %arg1: memref<8x16xf32, #tpu.memory_space<vmem>>, %arg2: memref<8x3xf32, #tpu.memory_space<vmem>>, %arg3: memref<16x32xf32, #tpu.memory_space<vmem>>, %arg4: memref<1x32xf32, #tpu.memory_space<vmem>>, %arg5: memref<32x32xf32, #tpu.memory_space<vmem>>, %arg6: memref<1x32xf32, #tpu.memory_space<vmem>>, %arg7: memref<32x6xf32, #tpu.memory_space<vmem>>, %arg8: memref<1x6xf32, #tpu.memory_space<vmem>>, %arg9: memref<4x8x3xf32, #tpu.memory_space<vmem>>) attributes {dimension_semantics = [#tpu.dimension_semantics<parallel>], iteration_bounds = array<i64: 2>, scalar_prefetch = 0 : i64, scratch_operands = 0 : i64, tpu.core_type = #tpu.core_type<tc>, window_params = [{transform_indices = @transform_0, window_bounds = array<i64: 8, 16>}, {transform_indices = @transform_1, window_bounds = array<i64: 8, 3>}, {pipeline_mode = #tpu.pipeline_mode<synchronous>, transform_indices = @transform_2, window_bounds = array<i64: 16, 32>}, {pipeline_mode = #tpu.pipeline_mode<synchronous>, transform_indices = @transform_3, window_bounds = array<i64: 1, 32>}, {pipeline_mode = #tpu.pipeline_mode<synchronous>, transform_indices = @transform_4, window_bounds = array<i64: 32, 32>}, {pipeline_mode = #tpu.pipeline_mode<synchronous>, transform_indices = @transform_5, window_bounds = array<i64: 1, 32>}, {pipeline_mode = #tpu.pipeline_mode<synchronous>, transform_indices = @transform_6, window_bounds = array<i64: 32, 6>}, {pipeline_mode = #tpu.pipeline_mode<synchronous>, transform_indices = @transform_7, window_bounds = array<i64: 1, 6>}, {transform_indices = @transform_8, window_bounds = array<i64: 4, 8, 3>}]} {
    %c0 = arith.constant 0 : index
    %c0_0 = arith.constant 0 : index
    %0 = vector.load %arg1[%c0, %c0_0] : memref<8x16xf32, #tpu.memory_space<vmem>>, vector<8x16xf32>
    %c0_1 = arith.constant 0 : index
    %c0_2 = arith.constant 0 : index
    %1 = vector.load %arg3[%c0_1, %c0_2] : memref<16x32xf32, #tpu.memory_space<vmem>>, vector<16x32xf32>
    %cst = arith.constant dense<0.000000e+00> : vector<8x32xf32>
    %2 = tpu.matmul %0, %1, %cst {dimension_numbers = #tpu.dot_dimension_numbers<[1], [0], [0], [1], [0, 0, 1, 1], [], []>} : vector<8x16xf32>, vector<16x32xf32>, vector<8x32xf32> -> vector<8x32xf32>
    %c0_3 = arith.constant 0 : index
    %c0_4 = arith.constant 0 : index
    %3 = vector.load %arg4[%c0_3, %c0_4] : memref<1x32xf32, #tpu.memory_space<vmem>>, vector<1x32xf32>
    %4 = vector.broadcast %3 : vector<1x32xf32> to vector<8x32xf32>
    %5 = arith.addf %2, %4 : vector<8x32xf32>
    %cst_5 = arith.constant 0.000000e+00 : f32
    %6 = vector.broadcast %cst_5 : f32 to vector<8x32xf32>
    %7 = arith.maximumf %5, %6 : vector<8x32xf32>
    %c0_6 = arith.constant 0 : index
    %c0_7 = arith.constant 0 : index
    %8 = vector.load %arg5[%c0_6, %c0_7] : memref<32x32xf32, #tpu.memory_space<vmem>>, vector<32x32xf32>
    %cst_8 = arith.constant dense<0.000000e+00> : vector<8x32xf32>
    %9 = tpu.matmul %7, %8, %cst_8 {dimension_numbers = #tpu.dot_dimension_numbers<[1], [0], [0], [1], [0, 0, 1, 1], [], []>} : vector<8x32xf32>, vector<32x32xf32>, vector<8x32xf32> -> vector<8x32xf32>
    %c0_9 = arith.constant 0 : index
    %c0_10 = arith.constant 0 : index
    %10 = vector.load %arg6[%c0_9, %c0_10] : memref<1x32xf32, #tpu.memory_space<vmem>>, vector<1x32xf32>
    %11 = vector.broadcast %10 : vector<1x32xf32> to vector<8x32xf32>
    %12 = arith.addf %9, %11 : vector<8x32xf32>
    %cst_11 = arith.constant 0.000000e+00 : f32
    %13 = vector.broadcast %cst_11 : f32 to vector<8x32xf32>
    %14 = arith.maximumf %12, %13 : vector<8x32xf32>
    %c0_12 = arith.constant 0 : index
    %c0_13 = arith.constant 0 : index
    %15 = vector.load %arg7[%c0_12, %c0_13] : memref<32x6xf32, #tpu.memory_space<vmem>>, vector<32x6xf32>
    %cst_14 = arith.constant dense<0.000000e+00> : vector<8x6xf32>
    %16 = tpu.matmul %14, %15, %cst_14 {dimension_numbers = #tpu.dot_dimension_numbers<[1], [0], [0], [1], [0, 0, 1, 1], [], []>} : vector<8x32xf32>, vector<32x6xf32>, vector<8x6xf32> -> vector<8x6xf32>
    %c0_15 = arith.constant 0 : index
    %c0_16 = arith.constant 0 : index
    %17 = vector.load %arg8[%c0_15, %c0_16] : memref<1x6xf32, #tpu.memory_space<vmem>>, vector<1x6xf32>
    %18 = vector.broadcast %17 : vector<1x6xf32> to vector<8x6xf32>
    %19 = arith.addf %16, %18 : vector<8x6xf32>
    %20 = vector.extract_strided_slice %19 {offsets = [0, 0], sizes = [8, 3], strides = [1, 1]} : vector<8x6xf32> to vector<8x3xf32>
    %21 = vector.extract_strided_slice %19 {offsets = [0, 3], sizes = [8, 3], strides = [1, 1]} : vector<8x6xf32> to vector<8x3xf32>
    %cst_17 = arith.constant 5.000000e-01 : f32
    %22 = vector.broadcast %cst_17 : f32 to vector<8x3xf32>
    %23 = arith.mulf %22, %21 : vector<8x3xf32>
    %24 = math.exp %23 : vector<8x3xf32>
    %c0_18 = arith.constant 0 : index
    %c0_19 = arith.constant 0 : index
    %25 = vector.load %arg2[%c0_18, %c0_19] : memref<8x3xf32, #tpu.memory_space<vmem>>, vector<8x3xf32>
    %26 = arith.mulf %25, %24 : vector<8x3xf32>
    %27 = arith.addf %20, %26 : vector<8x3xf32>
    %c0_20 = arith.constant 0 : index
    %c0_21 = arith.constant 0 : index
    %c0_22 = arith.constant 0 : index
    %28 = vector.load %arg9[%c0_20, %c0_21, %c0_22] : memref<4x8x3xf32, #tpu.memory_space<vmem>>, vector<1x8x3xf32>
    %29 = vector.shape_cast %28 : vector<1x8x3xf32> to vector<8x3xf32>
    %30 = vector.shape_cast %27 : vector<8x3xf32> to vector<1x8x3xf32>
    tpu.vector_store %arg9[%c0_20, %c0_21, %c0_22], %30 {strides = array<i32>} : memref<4x8x3xf32, #tpu.memory_space<vmem>>, vector<1x8x3xf32>,
    %c1 = arith.constant 1 : index
    %c0_23 = arith.constant 0 : index
    %c0_24 = arith.constant 0 : index
    %31 = vector.load %arg9[%c1, %c0_23, %c0_24] : memref<4x8x3xf32, #tpu.memory_space<vmem>>, vector<1x8x3xf32>
    %32 = vector.shape_cast %31 : vector<1x8x3xf32> to vector<8x3xf32>
    %33 = vector.shape_cast %20 : vector<8x3xf32> to vector<1x8x3xf32>
    tpu.vector_store %arg9[%c1, %c0_23, %c0_24], %33 {strides = array<i32>} : memref<4x8x3xf32, #tpu.memory_space<vmem>>, vector<1x8x3xf32>,
    %c2 = arith.constant 2 : index
    %c0_25 = arith.constant 0 : index
    %c0_26 = arith.constant 0 : index
    %34 = vector.load %arg9[%c2, %c0_25, %c0_26] : memref<4x8x3xf32, #tpu.memory_space<vmem>>, vector<1x8x3xf32>
    %35 = vector.shape_cast %34 : vector<1x8x3xf32> to vector<8x3xf32>
    %36 = vector.shape_cast %24 : vector<8x3xf32> to vector<1x8x3xf32>
    tpu.vector_store %arg9[%c2, %c0_25, %c0_26], %36 {strides = array<i32>} : memref<4x8x3xf32, #tpu.memory_space<vmem>>, vector<1x8x3xf32>,
    %c3 = arith.constant 3 : index
    %c0_27 = arith.constant 0 : index
    %c0_28 = arith.constant 0 : index
    %37 = vector.load %arg9[%c3, %c0_27, %c0_28] : memref<4x8x3xf32, #tpu.memory_space<vmem>>, vector<1x8x3xf32>
    %38 = vector.shape_cast %37 : vector<1x8x3xf32> to vector<8x3xf32>
    %39 = vector.shape_cast %21 : vector<8x3xf32> to vector<1x8x3xf32>
    tpu.vector_store %arg9[%c3, %c0_27, %c0_28], %39 {strides = array<i32>} : memref<4x8x3xf32, #tpu.memory_space<vmem>>, vector<1x8x3xf32>,
    return
  }
  func.func @transform_0(%arg0: i32) -> (i32, i32) {
    %c0_i32 = arith.constant 0 : i32
    %c0_i32_0 = arith.constant 0 : i32
    return %arg0, %c0_i32 : i32, i32
  }
  func.func @transform_1(%arg0: i32) -> (i32, i32) {
    %c0_i32 = arith.constant 0 : i32
    %c0_i32_0 = arith.constant 0 : i32
    return %arg0, %c0_i32 : i32, i32
  }
  func.func @transform_2(%arg0: i32) -> (i32, i32) {
    %c0_i32 = arith.constant 0 : i32
    %c0_i32_0 = arith.constant 0 : i32
    %c0_i32_1 = arith.constant 0 : i32
    return %c0_i32, %c0_i32_0 : i32, i32
  }
  func.func @transform_3(%arg0: i32) -> (i32, i32) {
    %c0_i32 = arith.constant 0 : i32
    %c0_i32_0 = arith.constant 0 : i32
    %c0_i32_1 = arith.constant 0 : i32
    return %c0_i32, %c0_i32_0 : i32, i32
  }
  func.func @transform_4(%arg0: i32) -> (i32, i32) {
    %c0_i32 = arith.constant 0 : i32
    %c0_i32_0 = arith.constant 0 : i32
    %c0_i32_1 = arith.constant 0 : i32
    return %c0_i32, %c0_i32_0 : i32, i32
  }
  func.func @transform_5(%arg0: i32) -> (i32, i32) {
    %c0_i32 = arith.constant 0 : i32
    %c0_i32_0 = arith.constant 0 : i32
    %c0_i32_1 = arith.constant 0 : i32
    return %c0_i32, %c0_i32_0 : i32, i32
  }
  func.func @transform_6(%arg0: i32) -> (i32, i32) {
    %c0_i32 = arith.constant 0 : i32
    %c0_i32_0 = arith.constant 0 : i32
    %c0_i32_1 = arith.constant 0 : i32
    return %c0_i32, %c0_i32_0 : i32, i32
  }
  func.func @transform_7(%arg0: i32) -> (i32, i32) {
    %c0_i32 = arith.constant 0 : i32
    %c0_i32_0 = arith.constant 0 : i32
    %c0_i32_1 = arith.constant 0 : i32
    return %c0_i32, %c0_i32_0 : i32, i32
  }
  func.func @transform_8(%arg0: i32) -> (i32, i32, i32) {
    %c0_i32 = arith.constant 0 : i32
    %c0_i32_0 = arith.constant 0 : i32
    %c0_i32_1 = arith.constant 0 : i32
    return %c0_i32, %arg0, %c0_i32_0 : i32, i32, i32
  }
}

module attributes {stable_mosaic.version = 11 : i64} {
  func.func @_mlp_decoder_kernel(%arg0: i32, %arg1: memref<8x3xf32, #tpu.memory_space<vmem>>, %arg2: memref<3x32xf32, #tpu.memory_space<vmem>>, %arg3: memref<1x32xf32, #tpu.memory_space<vmem>>, %arg4: memref<32x32xf32, #tpu.memory_space<vmem>>, %arg5: memref<1x32xf32, #tpu.memory_space<vmem>>, %arg6: memref<32x16xf32, #tpu.memory_space<vmem>>, %arg7: memref<1x16xf32, #tpu.memory_space<vmem>>, %arg8: memref<8x16xf32, #tpu.memory_space<vmem>>) attributes {dimension_semantics = [#tpu.dimension_semantics<parallel>], iteration_bounds = array<i64: 2>, scalar_prefetch = 0 : i64, scratch_operands = 0 : i64, tpu.core_type = #tpu.core_type<tc>, window_params = [{transform_indices = @transform_0, window_bounds = array<i64: 8, 3>}, {pipeline_mode = #tpu.pipeline_mode<synchronous>, transform_indices = @transform_1, window_bounds = array<i64: 3, 32>}, {pipeline_mode = #tpu.pipeline_mode<synchronous>, transform_indices = @transform_2, window_bounds = array<i64: 1, 32>}, {pipeline_mode = #tpu.pipeline_mode<synchronous>, transform_indices = @transform_3, window_bounds = array<i64: 32, 32>}, {pipeline_mode = #tpu.pipeline_mode<synchronous>, transform_indices = @transform_4, window_bounds = array<i64: 1, 32>}, {pipeline_mode = #tpu.pipeline_mode<synchronous>, transform_indices = @transform_5, window_bounds = array<i64: 32, 16>}, {pipeline_mode = #tpu.pipeline_mode<synchronous>, transform_indices = @transform_6, window_bounds = array<i64: 1, 16>}, {transform_indices = @transform_7, window_bounds = array<i64: 8, 16>}]} {
    %c0 = arith.constant 0 : index
    %c0_0 = arith.constant 0 : index
    %0 = vector.load %arg1[%c0, %c0_0] : memref<8x3xf32, #tpu.memory_space<vmem>>, vector<8x3xf32>
    %c0_1 = arith.constant 0 : index
    %c0_2 = arith.constant 0 : index
    %1 = vector.load %arg2[%c0_1, %c0_2] : memref<3x32xf32, #tpu.memory_space<vmem>>, vector<3x32xf32>
    %cst = arith.constant dense<0.000000e+00> : vector<8x32xf32>
    %2 = tpu.matmul %0, %1, %cst {dimension_numbers = #tpu.dot_dimension_numbers<[1], [0], [0], [1], [0, 0, 1, 1], [], []>} : vector<8x3xf32>, vector<3x32xf32>, vector<8x32xf32> -> vector<8x32xf32>
    %c0_3 = arith.constant 0 : index
    %c0_4 = arith.constant 0 : index
    %3 = vector.load %arg3[%c0_3, %c0_4] : memref<1x32xf32, #tpu.memory_space<vmem>>, vector<1x32xf32>
    %4 = vector.broadcast %3 : vector<1x32xf32> to vector<8x32xf32>
    %5 = arith.addf %2, %4 : vector<8x32xf32>
    %cst_5 = arith.constant 0.000000e+00 : f32
    %6 = vector.broadcast %cst_5 : f32 to vector<8x32xf32>
    %7 = arith.maximumf %5, %6 : vector<8x32xf32>
    %c0_6 = arith.constant 0 : index
    %c0_7 = arith.constant 0 : index
    %8 = vector.load %arg4[%c0_6, %c0_7] : memref<32x32xf32, #tpu.memory_space<vmem>>, vector<32x32xf32>
    %cst_8 = arith.constant dense<0.000000e+00> : vector<8x32xf32>
    %9 = tpu.matmul %7, %8, %cst_8 {dimension_numbers = #tpu.dot_dimension_numbers<[1], [0], [0], [1], [0, 0, 1, 1], [], []>} : vector<8x32xf32>, vector<32x32xf32>, vector<8x32xf32> -> vector<8x32xf32>
    %c0_9 = arith.constant 0 : index
    %c0_10 = arith.constant 0 : index
    %10 = vector.load %arg5[%c0_9, %c0_10] : memref<1x32xf32, #tpu.memory_space<vmem>>, vector<1x32xf32>
    %11 = vector.broadcast %10 : vector<1x32xf32> to vector<8x32xf32>
    %12 = arith.addf %9, %11 : vector<8x32xf32>
    %cst_11 = arith.constant 0.000000e+00 : f32
    %13 = vector.broadcast %cst_11 : f32 to vector<8x32xf32>
    %14 = arith.maximumf %12, %13 : vector<8x32xf32>
    %c0_12 = arith.constant 0 : index
    %c0_13 = arith.constant 0 : index
    %15 = vector.load %arg6[%c0_12, %c0_13] : memref<32x16xf32, #tpu.memory_space<vmem>>, vector<32x16xf32>
    %cst_14 = arith.constant dense<0.000000e+00> : vector<8x16xf32>
    %16 = tpu.matmul %14, %15, %cst_14 {dimension_numbers = #tpu.dot_dimension_numbers<[1], [0], [0], [1], [0, 0, 1, 1], [], []>} : vector<8x32xf32>, vector<32x16xf32>, vector<8x16xf32> -> vector<8x16xf32>
    %c0_15 = arith.constant 0 : index
    %c0_16 = arith.constant 0 : index
    %17 = vector.load %arg7[%c0_15, %c0_16] : memref<1x16xf32, #tpu.memory_space<vmem>>, vector<1x16xf32>
    %18 = vector.broadcast %17 : vector<1x16xf32> to vector<8x16xf32>
    %19 = arith.addf %16, %18 : vector<8x16xf32>
    %c0_17 = arith.constant 0 : index
    %c0_18 = arith.constant 0 : index
    %20 = vector.load %arg8[%c0_17, %c0_18] : memref<8x16xf32, #tpu.memory_space<vmem>>, vector<8x16xf32>
    tpu.vector_store %arg8[%c0_17, %c0_18], %19 {strides = array<i32>} : memref<8x16xf32, #tpu.memory_space<vmem>>, vector<8x16xf32>,
    return
  }
  func.func @transform_0(%arg0: i32) -> (i32, i32) {
    %c0_i32 = arith.constant 0 : i32
    %c0_i32_0 = arith.constant 0 : i32
    return %arg0, %c0_i32 : i32, i32
  }
  func.func @transform_1(%arg0: i32) -> (i32, i32) {
    %c0_i32 = arith.constant 0 : i32
    %c0_i32_0 = arith.constant 0 : i32
    %c0_i32_1 = arith.constant 0 : i32
    return %c0_i32, %c0_i32_0 : i32, i32
  }
  func.func @transform_2(%arg0: i32) -> (i32, i32) {
    %c0_i32 = arith.constant 0 : i32
    %c0_i32_0 = arith.constant 0 : i32
    %c0_i32_1 = arith.constant 0 : i32
    return %c0_i32, %c0_i32_0 : i32, i32
  }
  func.func @transform_3(%arg0: i32) -> (i32, i32) {
    %c0_i32 = arith.constant 0 : i32
    %c0_i32_0 = arith.constant 0 : i32
    %c0_i32_1 = arith.constant 0 : i32
    return %c0_i32, %c0_i32_0 : i32, i32
  }
  func.func @transform_4(%arg0: i32) -> (i32, i32) {
    %c0_i32 = arith.constant 0 : i32
    %c0_i32_0 = arith.constant 0 : i32
    %c0_i32_1 = arith.constant 0 : i32
    return %c0_i32, %c0_i32_0 : i32, i32
  }
  func.func @transform_5(%arg0: i32) -> (i32, i32) {
    %c0_i32 = arith.constant 0 : i32
    %c0_i32_0 = arith.constant 0 : i32
    %c0_i32_1 = arith.constant 0 : i32
    return %c0_i32, %c0_i32_0 : i32, i32
  }
  func.func @transform_6(%arg0: i32) -> (i32, i32) {
    %c0_i32 = arith.constant 0 : i32
    %c0_i32_0 = arith.constant 0 : i32
    %c0_i32_1 = arith.constant 0 : i32
    return %c0_i32, %c0_i32_0 : i32, i32
  }
  func.func @transform_7(%arg0: i32) -> (i32, i32) {
    %c0_i32 = arith.constant 0 : i32
    %c0_i32_0 = arith.constant 0 : i32
    return %arg0, %c0_i32 : i32, i32
  }
}

</mosaic_0001>

<bundles_post_ra>
// kernel: deep_idw_forward.12
= control target key start
LH: loop header
LB: loop body
LE: loop exit
PB: predicated region body
PF: predicated region fallthrough
CT: control target
= control target key end

     0   :  { %s2192_s0 = inlined_call_operand.vmem [shape: f32[16,16], index: 0, kind: input, shape index: {}, may-alias: {0,1}]   ;;  %s2193_s1 = inlined_call_operand.vmem [shape: f32[16,16], index: 1, kind: input, shape index: {}, may-alias: {0,1}]   ;;  %s2194_s2 = inlined_call_operand.vmem [shape: f32[1,16], index: 2, kind: input, shape index: {}]   ;;  %s2195_s3 = inlined_call_operand.<no memory space> [shape: f32[1,1], index: 3, kind: input, shape index: {}]   ;;  %s2196_s4 = inlined_call_operand.vmem [shape: f32[16,1], index: 4, kind: input, shape index: {}]   ;;  %s2197_s5 = inlined_call_operand.hbm [shape: f32[16,16], index: 5, kind: output, shape index: {0}]   ;;  %s2198_s6 = inlined_call_operand.vmem [shape: f32[16,1], index: 6, kind: output, shape index: {1}]  }
   0x1   :  { %v12_v0 = vstv %s2195_s3 }
   0x2   :  { %13 = vst [vmem:[#allocation2] sm:$0x1] %v12_v0 }
   0x3   :  { %14 = vsyncpa [#allocation4], 0 }
   0x4   :  { %16 = vsyncpa [#allocation4 + $0x1], 0  ;;  %s1649_s23 = smov 0   ;;  %s1651_s24 = smov 0  }
   0x5   :  { %s1653_s25 = smov 0   ;;  %s1655_s26 = smov 0  }
   0x6 LB: > { %s1670_s3 = sadd.s32 4294967295, %s1603_s26   ;;  %s1323_s27 = sadd.s32 4294967294, %s1603_s26   ;;  %s1603_s26 = sphi %s1655_s26, %s2204_s26   ;;  %s1599_s25 = sphi %s1653_s25, %s2203_s25   ;;  %s1595_s24 = sphi %s1651_s24, %s2202_s24   ;;  %s1591_s23 = sphi %s1649_s23, %s2201_s23  }
   0x7   : > { %s1674_s28 = sadd.s32 1, %s1603_s26   ;;  %s139_s29 = sadd.s32 1, %s1599_s25 }
   0x8   : > { %s136_s30 = ssub.s32 %s1603_s26, %s1674_s28  ;;  %p149_p0 = scmp.ne.s32.totalorder %s1599_s25, %s1595_s24 }
   0x9   : > { %p137_p1 = scmp.eq.s32.totalorder %s136_s30, 0  ;;  %p150_p2 = scmp.eq.s32.totalorder %s1670_s3, 1 }
   0xa   : > { %p155_p3 = scmp.ne.s32.totalorder %s1595_s24, %s1591_s23  ;;  %p156_p4 = scmp.eq.s32.totalorder %s1323_s27, 1 }
   0xb   : > { %s1685_s7 = scalar_select %p137_p1, %s1599_s25, %s139_s29  }
   0xc   : > { %p1687_p5 = por %p150_p2, %p149_p0  ;;  %p1691_p6 = por %p156_p4, %p155_p3 }
   0xd   : > { %p1326_p7 = scmp.ge.s32.totalorder %s1603_s26, 1  ;;  %p219_p8 = scmp.lt.s32.totalorder %s1603_s26, 3 }
   0xf   : > { %p220_p9 = pnand %p1326_p7, %p219_p8 }
  0x10   : > { %p252_p10 = scmp.lt.s32.totalorder (!%p220_p9), %s1670_s3, 1  ;;  %v260_v1 = vld [vmem:[%s2194_s2] sm:$0x1] (!%p220_p9)  ;;  %v265_v2 = vlaneseq (!%p220_p9)  ;;  %v1605_v3 = vmov (!%p220_p9), 0   ;;  %v1606_v5 = vmov (!%p220_p9), 1966171168  }
  0x11   : > { %223 = sbr.rel (%p220_p9) target bundleno = 829 (0x33d), region = 40  ;;  %1395 = vrcp.f32 (!%p220_p9), %v260_v1  ;;  %1393 = vset.pattern.permute.xlu0 (!%p220_p9), %v1605_v3  ;;  %1394 = vset.pattern.permute.xlu1 (!%p220_p9), %v1605_v3  ;;  %v278_v6 = vunpack.c.l.s4 (!%p220_p9), %v1606_v5  ;;  %v271_v14 = vld [vmem:[%s2193_s1] sm:$0xff] (!%p220_p9)  ;;  %v272_v15 = vld [vmem:[%s2193_s1 + $0x8] sm:$0xff] (!%p220_p9)  ;;  %vm397_vm0 = vcmask (!%p220_p9), 130048   ;;  %s243_s21 = sand.u32 (!%p220_p9), 1, %s1595_s24  }
  0x12   : > { %v1705_v4 = vshrl.u32 (!%p220_p9), %v265_v2, 7  ;;  %s2048_s22 = sshll.u32 (!%p220_p9), %s243_s21, 3  ;;  %s1333_s14 = sshll.u32 (!%p220_p9), %s1670_s3, 7 }
  0x13   : > { %v279_v8 = vunpack.c.0.s8 (!%p220_p9), %v278_v6  ;;  %s245_s27 = scalar_lea.vmem (!%p220_p9), [#allocation3], %s2048_s22  ;;  %s2147_s17 = scalar_lea.hbm (!%p220_p9), %s2197_s5, %s1333_s14 }
  0x14   : > { %v1714_v7 = vsub.s32 (!%p220_p9), 0, %v1705_v4  ;;  %s1237_s18 = sshll.u32 (!%p220_p9), %s245_s27, 4  ;;  %s1220_s19 = scalar_lea.sflag (!%p220_p9), [#allocation4], %s243_s21  ;;  %s1238_s18 = int_to_ptr.vmem [resolvable:$true] %s1237_s18 }
  0x15   : > { %v282_v12 = vsub.s32 (!%p220_p9), %v279_v8, %v1705_v4  ;;  %s1541_s20 = scalar_lea.vmem (!%p220_p9), %s1238_s18, 128  ;;  %s1610_s29 = smov (!%p220_p9), [#allocation3]  }
  0x16   : > { %p1542_p11 = scmp.ne.s32.totalorder (!%p220_p9), %s1238_s18, %s1541_s20  ;;  %s1545_s30 = sshll.u32 (!%p220_p9), %s1610_s29, 4  ;;  %s1546_s30 = int_to_ptr.vmem [resolvable:$false] %s1545_s30 }
  0x17   : > { %s1547_s10 = scalar_lea.vmem (!%p220_p9), %s1546_s30, 256  ;;  %p1548_p0 = scmp.lt.s32.totalorder (!%p220_p9), %s1238_s18, %s1546_s30 }
  0x18   : > { %s1702_s12 = scalar_select %p252_p10, %s1670_s3, 1 }
  0x19   : > { %p1543_p12 = pnand %p1542_p11, %p1687_p5  ;;  %p1549_p1 = scmp.lt.s32.totalorder %s1547_s10, %s1541_s20 }
  0x1a   : > { %s1328_s13 = sshll.u32 %s1702_s12, 3 }
  0x1b   : > { %s255_s16 = scalar_lea.vmem %s2192_s0, %s1328_s13  ;;  %v1396_v9 = vpop.eup %1395  ;;  %p1544_p13 = pneg %p1543_p12 }
  0x1c   : > { %v263_v10 = vld [vmem:[%s255_s16] sm:$0xff]  ;;  %v268_v11 = vrot.slane %v1396_v9, %v1714_v7  ;;  %p1550_p2 = por %p1549_p1, %p1548_p0 }
  0x1e   : > { %v270_v13 = vmul.f32 %v268_v11, %v263_v10  ;;  %v1724_v18 = vmul.f32 %v271_v14, %v268_v11  ;;  %v1726_v19 = vmul.f32 %v272_v15, %v268_v11  ;;  %p1551_p3 = pnand %p1550_p2, %p1544_p13 }
  0x20   : > { %v283_v16 = vrot.slane %v270_v13, %v282_v12  ;;  %v276_v17 = vcombine.high %v270_v13, %v270_v13 }
  0x22   : > { %v299_v20 = vrot.slane %v283_v16, %v282_v12  ;;  %v291_v21 = vcombine.high %v283_v16, %v283_v16  ;;  %v290_v22 = vrot.slane %v276_v17, %v282_v12 }
  0x24   : > { %v328_v23 = vrot.slane %v299_v20, %v1714_v7  ;;  %v313_v24 = vrot.slane %v291_v21, %v282_v12  ;;  %v321_v25 = vcombine.high %v299_v20, %v299_v20  ;;  %v306_v26 = vrot.slane %v290_v22, %v282_v12 }
  0x25   : > { %v292_v33 = vcombine.high %v290_v22, %v290_v22 }
  0x26   : > { %v365_v27 = vsub.f32 %v328_v23, %v1724_v18  ;;  %v332_v28 = vrot.slane %v313_v24, %v1714_v7  ;;  %v366_v29 = vsub.f32 %v328_v23, %v1726_v19  ;;  %v336_v30 = vrot.slane %v321_v25, %v1714_v7 }
  0x27   : > { %v344_v31 = vrot.slane %v306_v26, %v1714_v7  ;;  %v323_v32 = vcombine.high %v313_v24, %v313_v24  ;;  %v320_v44 = vrot.slane %v292_v33, %v282_v12  ;;  %v322_v56 = vcombine.high %v306_v26, %v306_v26 }
  0x28   : > { %v381_v34 = vmul.f32 %v365_v27, %v365_v27  ;;  %v367_v35 = vsub.f32 %v332_v28, %v1724_v18  ;;  %v382_v36 = vmul.f32 %v366_v29, %v366_v29  ;;  %v368_v37 = vsub.f32 %v332_v28, %v1726_v19  ;;  %v1330_v27 = vld [vmem:[#allocation2] ss:$0 sm:$0xff] }
  0x29   : > { %v369_v38 = vsub.f32 %v336_v30, %v1724_v18  ;;  %v370_v42 = vsub.f32 %v336_v30, %v1726_v19  ;;  %v373_v43 = vsub.f32 %v344_v31, %v1724_v18  ;;  %v340_v48 = vrot.slane %v323_v32, %v1714_v7 }
  0x2a   : > { %v398_v39 = vsel %vm397_vm0, %v381_v34, 0.0  ;;  %v383_v40 = vmul.f32 %v367_v35, %v367_v35  ;;  %v384_v41 = vmul.f32 %v368_v37, %v368_v37  ;;  %v401_v46 = vsel %vm397_vm0, %v382_v36, 0.0 }
  0x2b   : > { %399 = vadd.xlane.f32.xlu0 %v398_v39  ;;  %v385_v47 = vmul.f32 %v369_v38, %v369_v38  ;;  %v386_v50 = vmul.f32 %v370_v42, %v370_v42  ;;  %v374_v51 = vsub.f32 %v344_v31, %v1726_v19  ;;  %v389_v52 = vmul.f32 %v373_v43, %v373_v43 }
  0x2c   : > { %v404_v45 = vsel %vm397_vm0, %v383_v40, 0.0  ;;  %v407_v49 = vsel %vm397_vm0, %v384_v41, 0.0  ;;  %v371_v54 = vsub.f32 %v340_v48, %v1724_v18  ;;  %v348_v55 = vrot.slane %v320_v44, %v1714_v7 }
  0x2d   : > { %405 = vadd.xlane.f32.xlu1 %v404_v45  ;;  %v410_v53 = vsel %vm397_vm0, %v385_v47, 0.0  ;;  %v413_v57 = vsel %vm397_vm0, %v386_v50, 0.0  ;;  %v390_v58 = vmul.f32 %v374_v51, %v374_v51  ;;  %v372_v59 = vsub.f32 %v340_v48, %v1726_v19 }
  0x2e   : > { %v422_v60 = vsel %vm397_vm0, %v389_v52, 0.0  ;;  %v387_v61 = vmul.f32 %v371_v54, %v371_v54  ;;  %v375_v62 = vsub.f32 %v348_v55, %v1724_v18  ;;  %v352_v63 = vrot.slane %v322_v56, %v1714_v7 }
  0x2f   : > { %402 = vadd.xlane.f32.xlu0 %v401_v46  ;;  %v324_v0 = vcombine.high %v320_v44, %v320_v44  ;;  %v425_v1 = vsel %vm397_vm0, %v390_v58, 0.0  ;;  %v388_v3 = vmul.f32 %v372_v59, %v372_v59  ;;  %v376_v5 = vsub.f32 %v348_v55, %v1726_v19 }
  0x30   : > { %v416_v6 = vsel %vm397_vm0, %v387_v61, 0.0  ;;  %v391_v8 = vmul.f32 %v375_v62, %v375_v62  ;;  %v377_v9 = vsub.f32 %v352_v63, %v1724_v18  ;;  %v378_v13 = vsub.f32 %v352_v63, %v1726_v19 }
  0x31   : > { %408 = vadd.xlane.f32.xlu1 %v407_v49  ;;  %v356_v10 = vrot.slane %v324_v0, %v1714_v7  ;;  %v419_v11 = vsel %vm397_vm0, %v388_v3, 0.0  ;;  %v392_v12 = vmul.f32 %v376_v5, %v376_v5 }
  0x32   : > { %v428_v14 = vsel %vm397_vm0, %v391_v8, 0.0  ;;  %v393_v15 = vmul.f32 %v377_v9, %v377_v9  ;;  %v394_v20 = vmul.f32 %v378_v13, %v378_v13 }
  0x33   : > { %411 = vadd.xlane.f32.xlu0 %v410_v53  ;;  %v379_v16 = vsub.f32 %v356_v10, %v1724_v18  ;;  %v431_v17 = vsel %vm397_vm0, %v392_v12, 0.0  ;;  %v380_v21 = vsub.f32 %v356_v10, %v1726_v19 }
  0x34   : > { %v434_v22 = vsel %vm397_vm0, %v393_v15, 0.0  ;;  %v437_v24 = vsel %vm397_vm0, %v394_v20, 0.0 }
  0x35   : > { %414 = vadd.xlane.f32.xlu1 %v413_v57  ;;  %v395_v23 = vmul.f32 %v379_v16, %v379_v16  ;;  %v396_v25 = vmul.f32 %v380_v21, %v380_v21 }
  0x37   : > { %423 = vadd.xlane.f32.xlu0 %v422_v60  ;;  %v440_v26 = vsel %vm397_vm0, %v395_v23, 0.0  ;;  %v443_v18 = vsel %vm397_vm0, %v396_v25, 0.0 }
  0x39   : > { %426 = vadd.xlane.f32.xlu1 %v425_v1 }
  0x3b   : > { %417 = vadd.xlane.f32.xlu0 %v416_v6 }
  0x3d   : > { %420 = vadd.xlane.f32.xlu1 %v419_v11 }
  0x3f   : > { %429 = vadd.xlane.f32.xlu0 %v428_v14 }
  0x41   : > { %432 = vadd.xlane.f32.xlu1 %v431_v17 }
  0x43   : > { %435 = vadd.xlane.f32.xlu0 %v434_v22 }
  0x45   : > { %438 = vadd.xlane.f32.xlu1 %v437_v24 }
  0x47   : > { %441 = vadd.xlane.f32.xlu0 %v440_v26 }
  0x49   : > { %444 = vadd.xlane.f32.xlu1 %v443_v18 }
  0x5d   : > { %613 = vperm.xlu0 %1393, %v1330_v27  }
  0xb8   : > { %v400_v28 = vpop.xlane.xlu0 %399 }
  0xb9   : > { %1397 = vrsqrt.f32 %v400_v28  ;;  %vm448_vm1 = vcmp.eq.f32.partialorder %v400_v28, inf  ;;  %vm450_vm2 = vcmp.eq.f32.partialorder %v400_v28, 0.0  ;;  %v451_v32 = vand.u32 2147483648, %v400_v28 }
  0xba   : > { %v406_v19 = vpop.xlane.xlu1 %405 }
  0xbb   : > { %1399 = vrsqrt.f32 %v406_v19  ;;  %vm462_vm3 = vcmp.eq.f32.partialorder %v406_v19, inf  ;;  %vm464_vm4 = vcmp.eq.f32.partialorder %v406_v19, 0.0  ;;  %v465_v35 = vand.u32 2147483648, %v406_v19 }
  0xbc   : > { %v403_v29 = vpop.xlane.xlu0 %402 }
  0xbd   : > { %1401 = vrsqrt.f32 %v403_v29  ;;  %vm455_vm5 = vcmp.eq.f32.partialorder %v403_v29, inf  ;;  %vm457_vm6 = vcmp.eq.f32.partialorder %v403_v29, 0.0  ;;  %v458_v37 = vand.u32 2147483648, %v403_v29 }
  0xbe   : > { %v409_v30 = vpop.xlane.xlu1 %408 }
  0xbf   : > { %1403 = vrsqrt.f32 %v409_v30  ;;  %vm469_vm7 = vcmp.eq.f32.partialorder %v409_v30, inf  ;;  %vm471_vm8 = vcmp.eq.f32.partialorder %v409_v30, 0.0  ;;  %v472_v40 = vand.u32 2147483648, %v409_v30 }
  0xc0   : > { %v1768_v31 = vpop.xlane.xlu0 %411 }
  0xc1   : > { %1405 = vrsqrt.f32 %v1768_v31  ;;  %vm476_vm9 = vcmp.eq.f32.partialorder %v1768_v31, inf  ;;  %vm478_vm10 = vcmp.eq.f32.partialorder %v1768_v31, 0.0  ;;  %v479_v46 = vand.u32 2147483648, %v1768_v31 }
  0xc2   : > { %v1771_v33 = vpop.xlane.xlu1 %414 }
  0xc3   : > { %v1398_v34 = vpop.eup %1397  ;;  %1407 = vrsqrt.f32 %v1771_v33  ;;  %vm483_vm11 = vcmp.eq.f32.partialorder %v1771_v33, inf  ;;  %vm485_vm12 = vcmp.eq.f32.partialorder %v1771_v33, 0.0  ;;  %v486_v53 = vand.u32 2147483648, %v1771_v33 }
  0xc4   : > { %v447_v36 = vmul.f32 %v1398_v34, %v400_v28  ;;  %v1774_v38 = vpop.xlane.xlu0 %423 }
  0xc5   : > { %v1400_v39 = vpop.eup %1399  ;;  %1409 = vrsqrt.f32 %v1774_v38  ;;  %vm504_vm13 = vcmp.eq.f32.partialorder %v1774_v38, inf  ;;  %vm506_vm14 = vcmp.eq.f32.partialorder %v1774_v38, 0.0  ;;  %v507_v60 = vand.u32 2147483648, %v1774_v38 }
  0xc6   : > { %v449_v41 = vsel %vm448_vm1, %v400_v28, %v447_v36  ;;  %v461_v42 = vmul.f32 %v1400_v39, %v406_v19  ;;  %v1780_v43 = vpop.xlane.xlu1 %426 }
  0xc7   : > { %v1402_v44 = vpop.eup %1401  ;;  %v452_v45 = vsel %vm450_vm2, %v451_v32, %v449_v41  ;;  %1411 = vrsqrt.f32 %v1780_v43  ;;  %vm511_vm15 = vcmp.eq.f32.partialorder %v1780_v43, inf  ;;  %vm513_vm1 = vcmp.eq.f32.partialorder %v1780_v43, 0.0 }
  0xc8   : > { %v559_v47 = vmax.f32 %v452_v45, 1e-12  ;;  %v463_v48 = vsel %vm462_vm3, %v406_v19, %v461_v42  ;;  %v454_v49 = vmul.f32 %v1402_v44, %v403_v29  ;;  %v1788_v50 = vpop.xlane.xlu0 %417  ;;  %v514_v5 = vand.u32 2147483648, %v1780_v43 }
  0xc9   : > { %v1404_v51 = vpop.eup %1403  ;;  %v466_v52 = vsel %vm464_vm4, %v465_v35, %v463_v48  ;;  %1413 = vrsqrt.f32 %v1788_v50  ;;  %vm490_vm2 = vcmp.eq.f32.partialorder %v1788_v50, inf  ;;  %vm492_vm3 = vcmp.eq.f32.partialorder %v1788_v50, 0.0 }
  0xca   : > { %v561_v54 = vmax.f32 %v466_v52, 1e-12  ;;  %v456_v55 = vsel %vm455_vm5, %v403_v29, %v454_v49  ;;  %v468_v56 = vmul.f32 %v1404_v51, %v409_v30  ;;  %v1796_v57 = vpop.xlane.xlu1 %420  ;;  %v493_v13 = vand.u32 2147483648, %v1788_v50 }
  0xcb   : > { %v1406_v58 = vpop.eup %1405  ;;  %v459_v59 = vsel %vm457_vm6, %v458_v37, %v456_v55  ;;  %1415 = vrsqrt.f32 %v1796_v57  ;;  %vm497_vm4 = vcmp.eq.f32.partialorder %v1796_v57, inf  ;;  %vm499_vm5 = vcmp.eq.f32.partialorder %v1796_v57, 0.0 }
  0xcc   : > { %1417 = vlog2.f32 %v559_v47  ;;  %v560_v61 = vmax.f32 %v459_v59, 1e-12  ;;  %v470_v62 = vsel %vm469_vm7, %v409_v30, %v468_v56  ;;  %v475_v63 = vmul.f32 %v1406_v58, %v1768_v31  ;;  %v1805_v0 = vpop.xlane.xlu0 %429 }
  0xcd   : > { %v1408_v1 = vpop.eup %1407  ;;  %v473_v3 = vsel %vm471_vm8, %v472_v40, %v470_v62  ;;  %1419 = vrsqrt.f32 %v1805_v0  ;;  %v500_v18 = vand.u32 2147483648, %v1796_v57  ;;  %vm518_vm6 = vcmp.eq.f32.partialorder %v1805_v0, inf }
  0xce   : > { %1421 = vlog2.f32 %v561_v54  ;;  %v562_v6 = vmax.f32 %v473_v3, 1e-12  ;;  %v477_v8 = vsel %vm476_vm9, %v1768_v31, %v475_v63  ;;  %v482_v9 = vmul.f32 %v1408_v1, %v1771_v33  ;;  %v1815_v10 = vpop.xlane.xlu1 %432 }
  0xcf   : > { %v1410_v11 = vpop.eup %1409  ;;  %1423 = vlog2.f32 %v560_v61  ;;  %v480_v12 = vsel %vm478_vm10, %v479_v46, %v477_v8  ;;  %vm520_vm7 = vcmp.eq.f32.partialorder %v1805_v0, 0.0  ;;  %v521_v32 = vand.u32 2147483648, %v1805_v0 }
  0xd0   : > { %1425 = vlog2.f32 %v562_v6  ;;  %v563_v14 = vmax.f32 %v480_v12, 1e-12  ;;  %v484_v15 = vsel %vm483_vm11, %v1771_v33, %v482_v9  ;;  %v503_v16 = vmul.f32 %v1410_v11, %v1774_v38  ;;  %v1825_v17 = vpop.xlane.xlu0 %435 }
  0xd1   : > { %v1412_v20 = vpop.eup %1411  ;;  %v487_v21 = vsel %vm485_vm12, %v486_v53, %v484_v15  ;;  %1427 = vrsqrt.f32 %v1815_v10  ;;  %vm525_vm8 = vcmp.eq.f32.partialorder %v1815_v10, inf  ;;  %vm527_vm9 = vcmp.eq.f32.partialorder %v1815_v10, 0.0 }
  0xd2   : > { %1429 = vlog2.f32 %v563_v14  ;;  %v564_v22 = vmax.f32 %v487_v21, 1e-12  ;;  %v505_v23 = vsel %vm504_vm13, %v1774_v38, %v503_v16  ;;  %v510_v24 = vmul.f32 %v1412_v20, %v1780_v43  ;;  %v1845_v29 = vpop.xlane.xlu1 %438 }
  0xd3   : > { %v1414_v25 = vpop.eup %1413  ;;  %v508_v26 = vsel %vm506_vm14, %v507_v60, %v505_v23  ;;  %1431 = vrsqrt.f32 %v1825_v17  ;;  %v528_v39 = vand.u32 2147483648, %v1815_v10  ;;  %vm532_vm10 = vcmp.eq.f32.partialorder %v1825_v17, inf }
  0xd4   : > { %1433 = vlog2.f32 %v564_v22  ;;  %v567_v27 = vmax.f32 %v508_v26, 1e-12  ;;  %v512_v28 = vsel %vm511_vm15, %v1780_v43, %v510_v24  ;;  %v489_v19 = vmul.f32 %v1414_v25, %v1788_v50  ;;  %v1865_v44 = vpop.xlane.xlu0 %441 }
  0xd5   : > { %v1416_v30 = vpop.eup %1415  ;;  %v515_v31 = vsel %vm513_vm1, %v514_v5, %v512_v28  ;;  %vm534_vm11 = vcmp.eq.f32.partialorder %v1825_v17, 0.0  ;;  %v535_v51 = vand.u32 2147483648, %v1825_v17  ;;  %vm539_vm12 = vcmp.eq.f32.partialorder %v1845_v29, inf }
  0xd6   : > { %v1418_v33 = vpop.eup %1417  ;;  %1435 = vlog2.f32 %v567_v27  ;;  %v568_v34 = vmax.f32 %v515_v31, 1e-12  ;;  %v491_v35 = vsel %vm490_vm2, %v1788_v50, %v489_v19  ;;  %v496_v36 = vmul.f32 %v1416_v30, %v1796_v57  ;;  %v1875_v52 = vpop.xlane.xlu1 %444 }
  0xd7   : > { %v1420_v37 = vpop.eup %1419  ;;  %v494_v38 = vsel %vm492_vm3, %v493_v13, %v491_v35  ;;  %1437 = vrsqrt.f32 %v1845_v29  ;;  %v576_v46 = vmul.f32 0.6931472, %v1418_v33  ;;  %vm541_vm13 = vcmp.eq.f32.partialorder %v1845_v29, 0.0 }
  0xd8   : > { %v1422_v40 = vpop.eup %1421  ;;  %1439 = vlog2.f32 %v568_v34  ;;  %v565_v41 = vmax.f32 %v494_v38, 1e-12  ;;  %v498_v42 = vsel %vm497_vm4, %v1796_v57, %v496_v36  ;;  %v517_v43 = vmul.f32 %v1420_v37, %v1805_v0 }
  0xd9   : > { %v1424_v45 = vpop.eup %1423  ;;  %v501_v47 = vsel %vm499_vm5, %v500_v18, %v498_v42  ;;  %v580_v54 = vmul.f32 0.6931472, %v1422_v40  ;;  %v542_v5 = vand.u32 2147483648, %v1845_v29  ;;  %vm546_vm14 = vcmp.eq.f32.partialorder %v1865_v44, inf }
  0xda   : > { %v1426_v48 = vpop.eup %1425  ;;  %1441 = vlog2.f32 %v565_v41  ;;  %v566_v49 = vmax.f32 %v501_v47, 1e-12  ;;  %v519_v50 = vsel %vm518_vm6, %v1805_v0, %v517_v43  ;;  %v578_v57 = vmul.f32 0.6931472, %v1424_v45 }
  0xdb   : > { %v1428_v53 = vpop.eup %1427  ;;  %v522_v55 = vsel %vm520_vm7, %v521_v32, %v519_v50  ;;  %1443 = vrsqrt.f32 %v1865_v44  ;;  %v582_v62 = vmul.f32 0.6931472, %v1426_v48  ;;  %vm548_vm15 = vcmp.eq.f32.partialorder %v1865_v44, 0.0 }
  0xdc   : > { %v1430_v56 = vpop.eup %1429  ;;  %1445 = vlog2.f32 %v566_v49  ;;  %v569_v58 = vmax.f32 %v522_v55, 1e-12  ;;  %v524_v59 = vmul.f32 %v1428_v53, %v1815_v10  ;;  %v1882_v60 = vpop.permute.xlu0 %613  ;;  %v549_v15 = vand.u32 2147483648, %v1865_v44 }
  0xdd   : > { %v1432_v61 = vpop.eup %1431  ;;  %v584_v63 = vmul.f32 0.6931472, %v1430_v56  ;;  %1447 = vrsqrt.f32 %v1875_v52  ;;  %v616_v9 = vmul.f32 %v1882_v60, %v576_v46  ;;  %v617_v11 = vmul.f32 %v1882_v60, %v578_v57 }
  0xde   : > { %v1434_v0 = vpop.eup %1433  ;;  %1449 = vlog2.f32 %v569_v58  ;;  %v526_v1 = vsel %vm525_vm8, %v1815_v10, %v524_v59  ;;  %v531_v3 = vmul.f32 %v1432_v61, %v1825_v17  ;;  %v618_v16 = vmul.f32 %v1882_v60, %v580_v54 }
  0xdf   : > { %v586_v6 = vmul.f32 0.6931472, %v1434_v0  ;;  %v529_v8 = vsel %vm527_vm9, %v528_v39, %v526_v1  ;;  %vm553_vm1 = vcmp.eq.f32.partialorder %v1875_v52, inf  ;;  %v619_v22 = vmul.f32 %v1882_v60, %v582_v62 }
  0xe0   : > { %v1436_v12 = vpop.eup %1435  ;;  %v570_v13 = vmax.f32 %v529_v8, 1e-12  ;;  %v533_v14 = vsel %vm532_vm10, %v1825_v17, %v531_v3  ;;  %v620_v23 = vmul.f32 %v1882_v60, %v584_v63  ;;  %vm555_vm2 = vcmp.eq.f32.partialorder %v1875_v52, 0.0 }
  0xe1   : > { %v1438_v10 = vpop.eup %1437  ;;  %v592_v20 = vmul.f32 0.6931472, %v1436_v12  ;;  %v536_v21 = vsel %vm534_vm11, %v535_v51, %v533_v14  ;;  %v632_v18 = vmul.f32 1.442695, %v616_v9  ;;  %v556_v27 = vand.u32 2147483648, %v1875_v52 }
  0xe2   : > { %v1440_v24 = vpop.eup %1439  ;;  %1451 = vlog2.f32 %v570_v13  ;;  %v571_v25 = vmax.f32 %v536_v21, 1e-12  ;;  %v538_v26 = vmul.f32 %v1438_v10, %v1845_v29  ;;  %v621_v28 = vmul.f32 %v1882_v60, %v586_v6 }
  0xe3   : > { %v634_v17 = vmul.f32 1.442695, %v617_v11  ;;  %v636_v19 = vmul.f32 1.442695, %v618_v16  ;;  %v594_v31 = vmul.f32 0.6931472, %v1440_v24  ;;  %v624_v33 = vmul.f32 %v1882_v60, %v592_v20 }
  0xe4   : > { %v1442_v30 = vpop.eup %1441  ;;  %1453 = vlog2.f32 %v571_v25  ;;  %v540_v32 = vsel %vm539_vm12, %v1845_v29, %v538_v26  ;;  %v638_v37 = vmul.f32 1.442695, %v619_v22  ;;  %v640_v41 = vmul.f32 1.442695, %v620_v23 }
  0xe5   : > { %v1444_v34 = vpop.eup %1443  ;;  %v588_v35 = vmul.f32 0.6931472, %v1442_v30  ;;  %v543_v36 = vsel %vm541_vm13, %v542_v5, %v540_v32  ;;  %1455 = vpow2.f32 %v632_v18  ;;  %v642_v46 = vmul.f32 1.442695, %v621_v28 }
  0xe6   : > { %v1446_v38 = vpop.eup %1445  ;;  %v572_v39 = vmax.f32 %v543_v36, 1e-12  ;;  %v545_v40 = vmul.f32 %v1444_v34, %v1865_v44  ;;  %1457 = vpow2.f32 %v634_v17  ;;  %v625_v49 = vmul.f32 %v1882_v60, %v594_v31 }
  0xe7   : > { %v1448_v42 = vpop.eup %1447  ;;  %v590_v43 = vmul.f32 0.6931472, %v1446_v38  ;;  %v622_v45 = vmul.f32 %v1882_v60, %v588_v35  ;;  %1459 = vpow2.f32 %v636_v19  ;;  %v648_v62 = vmul.f32 1.442695, %v624_v33 }
  0xe8   : > { %v1450_v47 = vpop.eup %1449  ;;  %1461 = vlog2.f32 %v572_v39  ;;  %v547_v29 = vsel %vm546_vm14, %v1865_v44, %v545_v40  ;;  %v552_v48 = vmul.f32 %v1448_v42, %v1875_v52  ;;  %v650_v0 = vmul.f32 1.442695, %v625_v49 }
  0xe9   : > { %v596_v50 = vmul.f32 0.6931472, %v1450_v47  ;;  %v550_v51 = vsel %vm548_vm15, %v549_v15, %v547_v29  ;;  %v623_v53 = vmul.f32 %v1882_v60, %v590_v43  ;;  %1463 = vpow2.f32 %v638_v37 }
  0xea   : > { %v573_v54 = vmax.f32 %v550_v51, 1e-12  ;;  %v554_v55 = vsel %vm553_vm1, %v1875_v52, %v552_v48  ;;  %1465 = vpow2.f32 %v640_v41  ;;  %v644_v56 = vmul.f32 1.442695, %v622_v45 }
  0xeb   : > { %v557_v57 = vsel %vm555_vm2, %v556_v27, %v554_v55  ;;  %v626_v58 = vmul.f32 %v1882_v60, %v596_v50  ;;  %1467 = vpow2.f32 %v642_v46  ;;  %v646_v59 = vmul.f32 1.442695, %v623_v53 }
  0xec   : > { %v1452_v61 = vpop.eup %1451  ;;  %1469 = vlog2.f32 %v573_v54  ;;  %v574_v44 = vmax.f32 %v557_v57, 1e-12  ;;  %v729_v36 = vand.u32 127, %v265_v2  ;;  %vm739_vm3 = vcmask 130112  }
  0xed   : > { %v598_v63 = vmul.f32 0.6931472, %v1452_v61  ;;  %1471 = vpow2.f32 %v644_v56  ;;  %v652_v3 = vmul.f32 1.442695, %v626_v58  ;;  %vm804_vm4 = vcmask 1041409  }
  0xee   : > { %v1454_v1 = vpop.eup %1453  ;;  %1473 = vlog2.f32 %v574_v44  ;;  %v734_v29 = vadd.s32 4294967288, %v729_v36  ;;  %v1948_v54 = vsub.s32 %v729_v36, %v1705_v4  ;;  %vm806_vm5 = vcmask 1042434  }
  0xef   : > { %v1456_v5 = vpop.eup %1455  ;;  %v600_v6 = vmul.f32 0.6931472, %v1454_v1  ;;  %v627_v8 = vmul.f32 %v1882_v60, %v598_v63  ;;  %1475 = vpow2.f32 %v646_v59  ;;  %vm808_vm6 = vcmask 1043459  }
  0xf0   : > { %v1458_v52 = vpop.eup %1457  ;;  %1477 = vpow2.f32 %v648_v62  ;;  %v664_v9 = vadd.f32 1e-06, %v1456_v5  ;;  %v1951_v55 = vsub.s32 %v734_v29, %v1705_v4  ;;  %vm810_vm7 = vcmask 1044484  }
  0xf1   : > { %v1460_v11 = vpop.eup %1459  ;;  %v628_v12 = vmul.f32 %v1882_v60, %v600_v6  ;;  %1479 = vpow2.f32 %v650_v0  ;;  %v654_v13 = vmul.f32 1.442695, %v627_v8  ;;  %v665_v15 = vadd.f32 1e-06, %v1458_v52 }
  0xf2   : > { %v1462_v14 = vpop.eup %1461  ;;  %1481 = vpow2.f32 %v652_v3  ;;  %v666_v21 = vadd.f32 1e-06, %v1460_v11  ;;  %vm812_vm8 = vcmask 1045509   ;;  %vm814_vm9 = vcmask 1046534  }
  0xf3   : > { %v1464_v16 = vpop.eup %1463  ;;  %v602_v10 = vmul.f32 0.6931472, %v1462_v14  ;;  %1483 = vpow2.f32 %v654_v13  ;;  %v656_v20 = vmul.f32 1.442695, %v628_v12  ;;  %vm816_vm10 = vcmask 1047559  }
  0xf4   : > { %v1466_v22 = vpop.eup %1465  ;;  %v667_v23 = vadd.f32 1e-06, %v1464_v16  ;;  %1485 = vrcp.f32 %v664_v9  ;;  %vm1608_vm11 = vmmov 0  }
  0xf5   : > { %v1468_v24 = vpop.eup %1467  ;;  %v629_v25 = vmul.f32 %v1882_v60, %v602_v10  ;;  %1487 = vpow2.f32 %v656_v20  ;;  %v668_v18 = vadd.f32 1e-06, %v1466_v22 }
  0xf6   : > { %v1470_v26 = vpop.eup %1469  ;;  %1489 = vrcp.f32 %v665_v15  ;;  %v669_v19 = vadd.f32 1e-06, %v1468_v24 }
  0xf7   : > { %v1472_v27 = vpop.eup %1471  ;;  %v604_v28 = vmul.f32 0.6931472, %v1470_v26  ;;  %v658_v17 = vmul.f32 1.442695, %v629_v25  ;;  %1491 = vrcp.f32 %v666_v21 }
  0xf8   : > { %v1474_v30 = vpop.eup %1473  ;;  %v670_v31 = vadd.f32 1e-06, %v1472_v27  ;;  %1493 = vrcp.f32 %v667_v23 }
  0xf9   : > { %v1476_v32 = vpop.eup %1475  ;;  %v606_v33 = vmul.f32 0.6931472, %v1474_v30  ;;  %v630_v34 = vmul.f32 %v1882_v60, %v604_v28  ;;  %1495 = vpow2.f32 %v658_v17 }
  0xfa   : > { %v1478_v35 = vpop.eup %1477  ;;  %v671_v37 = vadd.f32 1e-06, %v1476_v32  ;;  %1497 = vrcp.f32 %v668_v18 }
  0xfb   : > { %v1480_v38 = vpop.eup %1479  ;;  %v631_v39 = vmul.f32 %v1882_v60, %v606_v33  ;;  %v660_v40 = vmul.f32 1.442695, %v630_v34  ;;  %1499 = vrcp.f32 %v669_v19  ;;  %v672_v42 = vadd.f32 1e-06, %v1478_v35 }
  0xfc   : > { %v1482_v41 = vpop.eup %1481  ;;  %1501 = vrcp.f32 %v670_v31  ;;  %v673_v46 = vadd.f32 1e-06, %v1480_v38 }
  0xfd   : > { %v1484_v43 = vpop.eup %1483  ;;  %1503 = vpow2.f32 %v660_v40  ;;  %v662_v45 = vmul.f32 1.442695, %v631_v39  ;;  %v674_v48 = vadd.f32 1e-06, %v1482_v41 }
  0xfe   : > { %v1939_v47 = vpop.eup %1485  ;;  %1505 = vrcp.f32 %v671_v37  ;;  %v675_v49 = vadd.f32 1e-06, %v1484_v43 }
  0xff   : > { %v1488_v2 = vpop.eup %1487  ;;  %1507 = vpow2.f32 %v662_v45  ;;  %v820_v57 = vand.u32 2147483647, %v1939_v47  ;;  %v733_v1 = vrot.slane %v1939_v47, %v1948_v54 }
 0x100   : > { %v1941_v50 = vpop.eup %1489  ;;  %1509 = vrcp.f32 %v672_v42  ;;  %v676_v51 = vadd.f32 1e-06, %v1488_v2 }
 0x101   : > { %v1943_v60 = vpop.eup %1491  ;;  %1511 = vrcp.f32 %v673_v46  ;;  %v821_v58 = vand.u32 2147483647, %v1941_v50  ;;  %v738_v3 = vrot.slane %v1941_v50, %v1951_v55  ;;  %v855_v6 = vrot.slane %v820_v57, %v1948_v54 }
 0x102   : > { %v1945_v53 = vpop.eup %1493  ;;  %1513 = vrcp.f32 %v674_v48  ;;  %v822_v44 = vand.u32 2147483647, %v1943_v60  ;;  %v744_v52 = vrot.slane %v1943_v60, %v1948_v54 }
 0x103   : > { %v1496_v56 = vpop.eup %1495  ;;  %1515 = vrcp.f32 %v675_v49  ;;  %v823_v62 = vand.u32 2147483647, %v1945_v53  ;;  %v859_v8 = vrot.slane %v821_v58, %v1951_v55  ;;  %v748_v9 = vrot.slane %v1945_v53, %v1951_v55 }
 0x104   : > { %v1955_v59 = vpop.eup %1497  ;;  %v677_v61 = vadd.f32 1e-06, %v1496_v56  ;;  %1517 = vrcp.f32 %v676_v51  ;;  %v864_v14 = vrot.slane %v822_v44, %v1948_v54  ;;  %v740_v24 = vsel %vm739_vm3, %v738_v3, %v733_v1 }
 0x105   : > { %v1959_v63 = vpop.eup %1499  ;;  %v868_v15 = vrot.slane %v823_v62, %v1951_v55  ;;  %v824_v23 = vand.u32 2147483647, %v1955_v59  ;;  %v860_v18 = vsel %vm739_vm3, %v859_v8, %v855_v6  ;;  %v749_v27 = vsel %vm739_vm3, %v748_v9, %v744_v52 }
 0x106   : > { %v1961_v0 = vpop.eup %1501  ;;  %1519 = vrcp.f32 %v677_v61  ;;  %v825_v13 = vand.u32 2147483647, %v1959_v63  ;;  %v757_v20 = vrot.slane %v1959_v63, %v1951_v55  ;;  %v753_v28 = vrot.slane %v1955_v59, %v1948_v54 }
 0x107   : > { %v1504_v5 = vpop.eup %1503  ;;  %v826_v26 = vand.u32 2147483647, %v1961_v0  ;;  %v869_v19 = vsel %vm739_vm3, %v868_v15, %v864_v14  ;;  %v873_v37 = vrot.slane %v824_v23, %v1948_v54  ;;  %v762_v38 = vrot.slane %v1961_v0, %v1948_v54 }
 0x108   : > { %v1973_v11 = vpop.eup %1505  ;;  %v678_v12 = vadd.f32 1e-06, %v1504_v5  ;;  %v877_v30 = vrot.slane %v825_v13, %v1951_v55  ;;  %v758_v34 = vsel %vm739_vm3, %v757_v20, %v753_v28  ;;  %v924_v42 = vsel %vm804_vm4, %v869_v19, %v860_v18 }
 0x109   : > { %v1508_v16 = vpop.eup %1507  ;;  %v827_v10 = vand.u32 2147483647, %v1973_v11  ;;  %v766_v31 = vrot.slane %v1973_v11, %v1951_v55  ;;  %v882_v41 = vrot.slane %v826_v26, %v1948_v54  ;;  %v805_v43 = vsel %vm804_vm4, %v749_v27, %v740_v24 }
 0x10a   : > { %v1981_v21 = vpop.eup %1509  ;;  %v679_v22 = vadd.f32 1e-06, %v1508_v16  ;;  %1521 = vrcp.f32 %v678_v12  ;;  %v878_v29 = vsel %vm739_vm3, %v877_v30, %v873_v37  ;;  %v807_v2 = vsel %vm806_vm5, %v758_v34, %v805_v43 }
 0x10b   : > { %v1985_v25 = vpop.eup %1511  ;;  %v886_v33 = vrot.slane %v827_v10, %v1951_v55  ;;  %v828_v40 = vand.u32 2147483647, %v1981_v21  ;;  %v767_v48 = vsel %vm739_vm3, %v766_v31, %v762_v38  ;;  %v925_v3 = vsel %vm806_vm5, %v878_v29, %v924_v42 }
 0x10c   : > { %v1992_v17 = vpop.eup %1513  ;;  %1523 = vrcp.f32 %v679_v22  ;;  %v829_v35 = vand.u32 2147483647, %v1985_v25  ;;  %v775_v56 = vrot.slane %v1985_v25, %v1951_v55  ;;  %v771_v5 = vrot.slane %v1981_v21, %v1948_v54 }
 0x10d   : > { %v1998_v32 = vpop.eup %1515  ;;  %v830_v46 = vand.u32 2147483647, %v1992_v17  ;;  %v887_v51 = vsel %vm739_vm3, %v886_v33, %v882_v41  ;;  %v891_v1 = vrot.slane %v828_v40, %v1948_v54  ;;  %v780_v6 = vrot.slane %v1992_v17, %v1948_v54 }
 0x10e   : > { %v831_v36 = vand.u32 2147483647, %v1998_v32  ;;  %v2007_v39 = vpop.eup %1517  ;;  %v784_v57 = vrot.slane %v1998_v32, %v1951_v55  ;;  %v895_v61 = vrot.slane %v829_v35, %v1951_v55  ;;  %v809_v13 = vsel %vm808_vm6, %v767_v48, %v807_v2 }
 0x10f   : > { %v832_v58 = vand.u32 2147483647, %v2007_v39  ;;  %v900_v52 = vrot.slane %v830_v46, %v1948_v54  ;;  %v789_v12 = vrot.slane %v2007_v39, %v1948_v54  ;;  %v926_v15 = vsel %vm808_vm6, %v887_v51, %v925_v3 }
 0x110   : > { %v2013_v45 = vpop.eup %1519  ;;  %v904_v44 = vrot.slane %v831_v36, %v1951_v55  ;;  %v776_v16 = vsel %vm739_vm3, %v775_v56, %v771_v5  ;;  %v785_v10 = vsel %vm739_vm3, %v784_v57, %v780_v6  ;;  %v896_v22 = vsel %vm739_vm3, %v895_v61, %v891_v1 }
 0x111   : > { %v833_v49 = vand.u32 2147483647, %v2013_v45  ;;  %v793_v62 = vrot.slane %v2013_v45, %v1951_v55  ;;  %v909_v24 = vrot.slane %v832_v58, %v1948_v54  ;;  %v811_v19 = vsel %vm810_vm7, %v776_v16, %v809_v13 }
 0x112   : > { %v905_v23 = vsel %vm739_vm3, %v904_v44, %v900_v52  ;;  %v927_v31 = vsel %vm810_vm7, %v896_v22, %v926_v15  ;;  %v813_v33 = vsel %vm812_vm8, %v785_v10, %v811_v19  ;;  %v950_v29 = vsub.s32 3, %v1705_v4 }
 0x113   : > { %v913_v9 = vrot.slane %v833_v49, %v1951_v55  ;;  %v794_v26 = vsel %vm739_vm3, %v793_v62, %v789_v12  ;;  %v928_v38 = vsel %vm812_vm8, %v905_v23, %v927_v31  ;;  %v954_v48 = vsub.s32 4, %v1705_v4 }
 0x114   : > { %v2037_v8 = vpop.eup %1521  ;;  %v815_v37 = vsel %vm814_vm9, %v794_v26, %v813_v33  ;;  %v958_v57 = vsub.s32 5, %v1705_v4  ;;  %v942_v58 = vsub.s32 1, %v1705_v4  ;;  %v962_v44 = vsub.s32 6, %v1705_v4 }
 0x115   : > { %v834_v14 = vand.u32 2147483647, %v2037_v8  ;;  %v798_v27 = vrot.slane %v2037_v8, %v1948_v54  ;;  %v914_v30 = vsel %vm739_vm3, %v913_v9, %v909_v24  ;;  %v966_v3 = vsub.s32 7, %v1705_v4 }
 0x116   : > { %v2052_v20 = vpop.eup %1523  ;;  %v929_v42 = vsel %vm814_vm9, %v914_v30, %v928_v38  ;;  %v946_v5 = vsub.s32 2, %v1705_v4 }
 0x117   : > { %v835_v18 = vand.u32 2147483647, %v2052_v20  ;;  %v802_v28 = vrot.slane %v2052_v20, %v1951_v55  ;;  %v918_v34 = vrot.slane %v834_v14, %v1948_v54 }
 0x119   : > { %v922_v35 = vrot.slane %v835_v18, %v1951_v55  ;;  %v803_v36 = vsel %vm739_vm3, %v802_v28, %v798_v27 }
 0x11a   : > { %v817_v40 = vsel %vm816_vm10, %v803_v36, %v815_v37 }
 0x11b   : > { %v923_v41 = vsel %vm739_vm3, %v922_v35, %v918_v34  ;;  %819 = vst.msk [vmem:[%s245_s27] sm:$0xff] %vm397_vm0, %v817_v40 }
 0x11c   : > { %v930_v43 = vsel %vm816_vm10, %v923_v41, %v929_v42 }
 0x11d   : > { %v932_v46 = vsel %vm397_vm0, %v930_v43, 0.0 }
 0x11e   : > { %933 = vadd.xlane.f32.xlu1 %v932_v46 }
 0x1ab   : > { %v934_v2 = vpop.xlane.xlu1 %933 }
 0x1ac   : > { %v951_v49 = vrot.slane %v934_v2, %v950_v29  ;;  %v939_v51 = vrot.slane %v934_v2, %v1714_v7  ;;  %v955_v56 = vrot.slane %v934_v2, %v954_v48  ;;  %v959_v61 = vrot.slane %v934_v2, %v958_v57 }
 0x1ad   : > { %v943_v62 = vrot.slane %v934_v2, %v942_v58  ;;  %v963_v1 = vrot.slane %v934_v2, %v962_v44  ;;  %v967_v6 = vrot.slane %v934_v2, %v966_v3  ;;  %v947_v12 = vrot.slane %v934_v2, %v946_v5 }
 0x1ae   : > { %1525 = vrcp.f32 %v951_v49 }
 0x1af   : > { %1527 = vrcp.f32 %v939_v51 }
 0x1b0   : > { %1529 = vrcp.f32 %v955_v56 }
 0x1b1   : > { %1531 = vrcp.f32 %v959_v61 }
 0x1b2   : > { %1533 = vrcp.f32 %v943_v62 }
 0x1b3   : > { %1535 = vrcp.f32 %v963_v1 }
 0x1b4   : > { %1537 = vrcp.f32 %v967_v6 }
 0x1b5   : > { %1539 = vrcp.f32 %v947_v12 }
 0x1b8   : > { %v1526_v7 = vpop.eup %1525 }
 0x1b9   : > { %v1528_v52 = vpop.eup %1527  ;;  %v987_v9 = vmul.f32 %v1526_v7, %v1973_v11 }
 0x1ba   : > { %v1530_v13 = vpop.eup %1529  ;;  %v977_v14 = vmul.f32 %v1528_v52, %v1939_v47  ;;  %v978_v10 = vmul.f32 %v1528_v52, %v1941_v50 }
 0x1bb   : > { %1040 = vperm.xlu0 %1393, %v987_v9   ;;  %v990_v15 = vmul.f32 %v1530_v13, %v1985_v25  ;;  %v1532_v16 = vpop.eup %1531 }
 0x1bc   : > { %1019 = vperm.xlu1 %1394, %v977_v14   ;;  %v1534_v4 = vpop.eup %1533  ;;  %v993_v22 = vmul.f32 %v1532_v16, %v1998_v32 }
 0x1bd   : > { %v1536_v23 = vpop.eup %1535  ;;  %v980_v11 = vmul.f32 %v1534_v4, %v1943_v60  ;;  %v981_v26 = vmul.f32 %v1534_v4, %v1945_v53  ;;  %v986_v60 = vmul.f32 %v1526_v7, %v1961_v0  ;;  %v992_v53 = vmul.f32 %v1532_v16, %v1992_v17 }
 0x1be   : > { %v996_v47 = vmul.f32 %v1536_v23, %v2013_v45  ;;  %v1538_v24 = vpop.eup %1537  ;;  %v989_v45 = vmul.f32 %v1530_v13, %v1981_v21  ;;  %v995_v27 = vmul.f32 %v1536_v23, %v2007_v39  ;;  %v1607_v0 = vmov 0.0|0.0  }
 0x1bf   : > { %1046 = vperm.xlu0 %1393, %v990_v15   ;;  %v1540_v25 = vpop.eup %1539  ;;  %v999_v50 = vmul.f32 %v1538_v24, %v2052_v20  ;;  %v998_v20 = vmul.f32 %v1538_v24, %v2037_v8  ;;  %1346 = vmatprep.subr.bf16.mxu0 %v1607_v0  ;;  %v1609_v17 = vmov 0.0  }
 0x1c0   : > { %1022 = vperm.xlu1 %1394, %v978_v10   ;;  %v983_v18 = vmul.f32 %v1540_v25, %v1955_v59  ;;  %v984_v32 = vmul.f32 %v1540_v25, %v1959_v63  ;;  %v1000_v59 = vld [vmem:[%s2196_s4] sm:$0xff]  ;;  %v1001_v63 = vld [vmem:[%s2196_s4 + $0x8] sm:$0xff]  ;;  %1343 = vmatprep.mubr.msk.f32.mxu0 %vm1608_vm11, %v1609_v17 }
 0x1c1   : > { %v1347_v21 = vpack.c.bf16 %v1001_v63, %v1000_v59 }
 0x1c3   : > { %1052 = vperm.xlu0 %1393, %v993_v22   ;;  %1348 = vmatpush3.bf16.msra.mxu0 %v1347_v21 }
 0x1c4   : > { %1025 = vperm.xlu1 %1394, %v980_v11  }
 0x1c7   : > { %1058 = vperm.xlu0 %1393, %v996_v47  }
 0x1c8   : > { %1028 = vperm.xlu1 %1394, %v981_v26  }
 0x1cb   : > { %1064 = vperm.xlu0 %1393, %v999_v50  }
 0x1cc   : > { %1031 = vperm.xlu1 %1394, %v983_v18  }
 0x1d0   : > { %1034 = vperm.xlu1 %1394, %v984_v32  }
 0x1d4   : > { %1037 = vperm.xlu1 %1394, %v986_v60  }
 0x1d8   : > { %1043 = vperm.xlu1 %1394, %v989_v45  }
 0x1dc   : > { %1049 = vperm.xlu1 %1394, %v992_v53  }
 0x1e0   : > { %1055 = vperm.xlu1 %1394, %v995_v27  }
 0x1e4   : > { %1061 = vperm.xlu1 %1394, %v998_v20  }
 0x23a   : > { %v1041_v30 = vpop.permute.xlu0 %1040 }
 0x23b   : > { %v1020_v39 = vpop.permute.xlu1 %1019  ;;  %v1100_v49 = vrot.slane %v1041_v30, %v1951_v55 }
 0x23c   : > { %v1069_v51 = vrot.slane %v1020_v39, %v1948_v54 }
 0x23e   : > { %v1047_v33 = vpop.permute.xlu0 %1046 }
 0x23f   : > { %v1023_v28 = vpop.permute.xlu1 %1022  ;;  %v1109_v58 = vrot.slane %v1047_v33, %v1951_v55 }
 0x240   : > { %v1073_v43 = vrot.slane %v1023_v28, %v1951_v55 }
 0x242   : > { %v1053_v36 = vpop.permute.xlu0 %1052  ;;  %v1074_v62 = vsel %vm739_vm3, %v1073_v43, %v1069_v51 }
 0x243   : > { %v1026_v19 = vpop.permute.xlu1 %1025  ;;  %v1118_v1 = vrot.slane %v1053_v36, %v1951_v55 }
 0x244   : > { %v1078_v46 = vrot.slane %v1026_v19, %v1948_v54 }
 0x246   : > { %v1059_v40 = vpop.permute.xlu0 %1058 }
 0x247   : > { %v1029_v8 = vpop.permute.xlu1 %1028  ;;  %v1127_v7 = vrot.slane %v1059_v40, %v1951_v55 }
 0x248   : > { %v1082_v38 = vrot.slane %v1029_v8, %v1951_v55 }
 0x24a   : > { %v1083_v56 = vsel %vm739_vm3, %v1082_v38, %v1078_v46  ;;  %v1065_v52 = vpop.permute.xlu0 %1064 }
 0x24b   : > { %v1032_v31 = vpop.permute.xlu1 %1031  ;;  %v1138_v6 = vsel %vm804_vm4, %v1083_v56, %v1074_v62  ;;  %v1136_v10 = vrot.slane %v1065_v52, %v1951_v55 }
 0x24c   : > { %v1087_v48 = vrot.slane %v1032_v31, %v1948_v54 }
 0x24f   : > { %v1035_v34 = vpop.permute.xlu1 %1034 }
 0x250   : > { %v1091_v41 = vrot.slane %v1035_v34, %v1951_v55 }
 0x252   : > { %v1092_v61 = vsel %vm739_vm3, %v1091_v41, %v1087_v48 }
 0x253   : > { %v1038_v35 = vpop.permute.xlu1 %1037  ;;  %v1139_v12 = vsel %vm806_vm5, %v1092_v61, %v1138_v6 }
 0x254   : > { %v1096_v29 = vrot.slane %v1038_v35, %v1948_v54 }
 0x256   : > { %v1101_v3 = vsel %vm739_vm3, %v1100_v49, %v1096_v29 }
 0x257   : > { %v1044_v37 = vpop.permute.xlu1 %1043  ;;  %v1140_v14 = vsel %vm808_vm6, %v1101_v3, %v1139_v12 }
 0x258   : > { %v1105_v2 = vrot.slane %v1044_v37, %v1948_v54 }
 0x25a   : > { %v1110_v9 = vsel %vm739_vm3, %v1109_v58, %v1105_v2 }
 0x25b   : > { %v1050_v42 = vpop.permute.xlu1 %1049  ;;  %v1141_v4 = vsel %vm810_vm7, %v1110_v9, %v1140_v14 }
 0x25c   : > { %v1114_v57 = vrot.slane %v1050_v42, %v1948_v54 }
 0x25e   : > { %v1119_v13 = vsel %vm739_vm3, %v1118_v1, %v1114_v57 }
 0x25f   : > { %v1056_v44 = vpop.permute.xlu1 %1055  ;;  %v1142_v23 = vsel %vm812_vm8, %v1119_v13, %v1141_v4 }
 0x260   : > { %v1123_v5 = vrot.slane %v1056_v44, %v1948_v54 }
 0x262   : > { %v1128_v15 = vsel %vm739_vm3, %v1127_v7, %v1123_v5 }
 0x263   : > { %v1062_v16 = vpop.permute.xlu1 %1061  ;;  %v1143_v47 = vsel %vm814_vm9, %v1128_v15, %v1142_v23 }
 0x264   : > { %v1132_v22 = vrot.slane %v1062_v16, %v1948_v54 }
 0x266   : > { %v1137_v11 = vsel %vm739_vm3, %v1136_v10, %v1132_v22 }
 0x267   : > { %v1144_v24 = vsel %vm816_vm10, %v1137_v11, %v1143_v47 }
 0x268   : > { %1344 = vmatmul.mubr.msk.f32.vlgmr.msra.gmra.mrb[0].mxu0 %vm397_vm0, %v1144_v24 }
 0x269   : > { %1554 = shalt.err (!%p1551_p3)
}
 0x26a   : > { %s1555_s3 = scalar_lea.hbm %s2147_s17, 128  ;;  %s1559_s27 = scalar_lea.hbm %s2197_s5, 256 }
 0x26b   : > { %p1556_p4 = scmp.ne.s32.totalorder %s2147_s17, %s1555_s3  ;;  %p1560_p9 = scmp.lt.u32.totalorder %s2147_s17, %s2197_s5 }
 0x26c   : > { %p1561_p10 = scmp.lt.u32.totalorder %s1559_s27, %s1555_s3  ;;  %p1563_p12 = scmp.lt.u32.totalorder %s1555_s3, %s2147_s17 }
 0x26d   : > { %p1557_p7 = pnand %p1556_p4, %p1687_p5 }
 0x26e   : > { %p1562_p11 = por %p1561_p10, %p1560_p9 }
 0x26f   : > { %p1558_p8 = pneg %p1557_p7 }
 0x270   : > { %p1564_p13 = por %p1563_p12, %p1562_p11 }
 0x272   : > { %p1565_p0 = pnand %p1564_p13, %p1558_p8 }
 0x274   : > { %1568 = shalt.err (!%p1565_p0)
}
 0x275   : > { %1349 = dma.vmem_to_hbm [thread:$0]  (%p1687_p5), %s1238_s18, 128, %s2147_s17, %s1220_s19   ;;  %vm1217_vm0 = vcmask 7168  }
 0x276   : > { %s259_s20 = scalar_lea.vmem %s2198_s6, %s1328_s13 }
 0x33b   : > { %v1213_v54 = vpop.f32.mrb[0].mxu0 }
 0x33c   : > { %1218 = vst.msk [vmem:[%s259_s20] sm:$0xff] %vm1217_vm0, %v1213_v54  ;;  %v1345_v55 = vpop.f32.mrb[1].mxu0 }
 0x33d PF: > { %p1355_p1 = scmp.ge.s32.totalorder %s1603_s26, 2  ;;  %s1252_s29 = sand.u32 1, %s1591_s23  }
 0x33e   : > { %s1253_s8 = scalar_lea.sflag [#allocation4], %s1252_s29 }
 0x33f   : > { %p1352_p2 = pnand %p1355_p1, %p1691_p6 }
 0x341   : > { %1586 = dma.done.wait (!%p1352_p2), %s1253_s8, 128  }
 0x342   : > { %1588 = vsyncadd (!%p1352_p2), %s1253_s8, 4294967168  ;;  %p19_p5 = scmp.ge.s32.totalorder %s1674_s28, 4   ;;  %s2201_s23 = smov %s1595_s24 }
 0x343   : > { %s2202_s24 = smov %s1599_s25  ;;  %s2203_s25 = smov %s1685_s7 }
 0x344   : > { %s2204_s26 = smov %s1674_s28  ;;  %21 = sbr.rel (!%p19_p5) target bundleno = 6 (0x6), region = 87 }
 0x34b   :  { %1265 = vsyncpa [#allocation4], 1 }
 0x34c   :  { %1267 = vsyncpa [#allocation4 + $0x1], 1 }

// kernel: deep_idw_forward.9
= control target key start
LH: loop header
LB: loop body
LE: loop exit
PB: predicated region body
PF: predicated region fallthrough
CT: control target
= control target key end

     0   :  { %s885_s27 = smov 0   ;;  %s887_s28 = smov 0   ;;  %s989_s0 = inlined_call_operand.vmem [shape: f32[16,4], index: 0, kind: input, shape index: {}]   ;;  %s990_s1 = inlined_call_operand.vmem [shape: f32[16,1], index: 1, kind: input, shape index: {}]   ;;  %s991_s2 = inlined_call_operand.vmem [shape: f32[4,32], index: 2, kind: input, shape index: {}]   ;;  %s992_s3 = inlined_call_operand.vmem [shape: f32[1,32], index: 3, kind: input, shape index: {}]   ;;  %s993_s4 = inlined_call_operand.vmem [shape: f32[32,32], index: 4, kind: input, shape index: {}]   ;;  %s994_s5 = inlined_call_operand.vmem [shape: f32[1,32], index: 5, kind: input, shape index: {}]   ;;  %s995_s6 = inlined_call_operand.vmem [shape: f32[32,2], index: 6, kind: input, shape index: {}]   ;;  %s996_s7 = inlined_call_operand.vmem [shape: f32[1,2], index: 7, kind: input, shape index: {}]   ;;  %s997_s8 = inlined_call_operand.vmem [shape: f32[4,16,1], index: 8, kind: output, shape index: {}]  }
   0x1   :  { %s889_s29 = smov 0  }
   0x2 LB: > { %s898_s30 = sadd.s32 4294967295, %s834_s29   ;;  %s900_s9 = sadd.s32 1, %s834_s29   ;;  %s834_s29 = sphi %s889_s29, %s1001_s29   ;;  %s830_s28 = sphi %s887_s28, %s1000_s28   ;;  %s826_s27 = sphi %s885_s27, %s999_s27  }
   0x3   : > { %s200_s10 = ssub.s32 %s834_s29, %s900_s9  ;;  %s203_s11 = sadd.s32 1, %s830_s28 }
   0x4   : > { %p201_p0 = scmp.eq.s32.totalorder %s200_s10, 0  ;;  %p213_p1 = scmp.ne.s32.totalorder %s830_s28, %s826_s27 }
   0x5   : > { %p214_p2 = scmp.eq.s32.totalorder %s898_s30, 1  ;;  %p713_p3 = scmp.ge.s32.totalorder %s834_s29, 1 }
   0x6   : > { %s908_s12 = scalar_select %p201_p0, %s830_s28, %s203_s11  }
   0x7   : > { %p910_p4 = por %p214_p2, %p213_p1  ;;  %p270_p5 = scmp.lt.s32.totalorder %s834_s29, 3 }
   0x9   : > { %p271_p6 = pnand %p713_p3, %p270_p5 }
   0xa   : > { %v315_v0 = vld [vmem:[%s991_s2] sm:$0xf] (!%p271_p6)  ;;  %vm327_vm0 = vcmask (!%p271_p6), 1043456   ;;  %p306_p7 = scmp.lt.s32.totalorder (!%p271_p6), %s898_s30, 1  ;;  %v836_v1 = vmov (!%p271_p6), 0.0   ;;  %vm837_vm1 = vmmov (!%p271_p6), 0  }
   0xb   : > { %274 = sbr.rel (%p271_p6) target bundleno = 812 (0x32c), region = 52  ;;  %743 = vmatprep.subr.mxu0 (!%p271_p6), %v836_v1  ;;  %745 = vmatprep.mubr.msk.f32.mxu0 (!%p271_p6), %vm837_vm1, %v836_v1  ;;  %v402_v2 = vld [vmem:[%s993_s4] sm:$0xff] (!%p271_p6)  ;;  %v403_v3 = vld [vmem:[%s993_s4 + $0x8] sm:$0xff] (!%p271_p6)  ;;  %v838_v4 = vmov (!%p271_p6), 0.0|0.0   ;;  %vm323_vm2 = vcmask (!%p271_p6), 31744   ;;  %v404_v7 = vld [vmem:[%s993_s4 + $0x10] sm:$0xff] (!%p271_p6) }
   0xc   : > { %744 = vmatpush3.msk.msra.mxu0 (!%p271_p6), %vm327_vm0, %v315_v0  ;;  %770 = vmatprep.subr.bf16.mxu1 (!%p271_p6), %v838_v4  ;;  %v771_v5 = vpack.c.bf16 (!%p271_p6), %v403_v3, %v402_v2  ;;  %v405_v8 = vld [vmem:[%s993_s4 + $0x18] sm:$0xff] (!%p271_p6)  ;;  %v488_v10 = vld [vmem:[%s995_s6] sm:$0xff] (!%p271_p6)  ;;  %v489_v11 = vld [vmem:[%s995_s6 + $0x8] sm:$0xff] (!%p271_p6)  ;;  %vm413_vm3 = vcmask (!%p271_p6), 261120   ;;  %s303_s29 = sand.u32 (!%p271_p6), 1, %s826_s27   ;;  %vm582_vm4 = vcmask (!%p271_p6), 7168  }
   0xd   : > { %756 = vmatprep.mubr.msk.f32.mxu1 (!%p271_p6), %vm837_vm1, %v836_v1  ;;  %776 = vmatprep.subr.bf16.mxu0 (!%p271_p6), %v838_v4  ;;  %v774_v9 = vpack.c.bf16 (!%p271_p6), %v405_v8, %v404_v7  ;;  %v777_v12 = vpack.c.bf16 (!%p271_p6), %v489_v11, %v488_v10  ;;  %v717_v13 = vld [vmem:[%s992_s3] ss:$0 sm:$0xff] (!%p271_p6)  ;;  %v490_v18 = vld [vmem:[%s995_s6 + $0x10] sm:$0xff] (!%p271_p6)  ;;  %v491_v19 = vld [vmem:[%s995_s6 + $0x18] sm:$0xff] (!%p271_p6)  ;;  %s714_s10 = sshll.u32 (!%p271_p6), %s303_s29, 5  ;;  %s839_s16 = smov (!%p271_p6), 127  }
   0xe   : > { %772 = vmatpush3.bf16.msra.mxu1 (!%p271_p6), %v771_v5  ;;  %v780_v20 = vpack.c.bf16 (!%p271_p6), %v491_v19, %v490_v18  ;;  %v720_v21 = vld [vmem:[%s994_s5] ss:$0 sm:$0xff] (!%p271_p6)  ;;  %s305_s15 = scalar_lea.vmem (!%p271_p6), [#allocation2], %s714_s10 }
   0xf   : > { %773 = vmatprep.subr.bf16.mxu1 (!%p271_p6), %v838_v4  ;;  %v722_v26 = vld [vmem:[%s996_s7] ss:$0 sm:$0xff] (!%p271_p6) }
  0x12   : > { %s926_s20 = scalar_select %p306_p7, %s898_s30, 1  ;;  %775 = vmatpush3.bf16.msra.mxu1 %v774_v9 }
  0x14   : > { %s715_s21 = sshll.u32 %s926_s20, 3  ;;  %s728_s20 = sshll.u32 (%p910_p4), %s898_s30, 3 }
  0x15   : > { %s309_s24 = scalar_lea.vmem %s989_s0, %s715_s21  ;;  %s313_s18 = scalar_lea.vmem %s990_s1, %s715_s21 }
  0x16   : > { %v314_v6 = vld [vmem:[%s309_s24] sm:$0xff]  ;;  %s602_s22 = scalar_lea.vmem (%p910_p4), %s997_s8, %s728_s20 }
  0x17   : > { %746 = vmatmul.mubr.msk.f32.vlgmr.msra.gmra.mrb[0].mxu0 %vm323_vm2, %v314_v6  ;;  %v575_v33 = vld [vmem:[%s313_s18] sm:$0xff] }
  0x18   : > { %767 = vmatprep.mubr.msk.f32.mxu0 %vm837_vm1, %v836_v1  ;;  %778 = vmatpush3.bf16.msra.mxu0 %v777_v12 }
  0x19   : > { %779 = vmatprep.subr.bf16.mxu0 %v838_v4 }
  0x1c   : > { %781 = vmatpush3.bf16.msra.mxu0 %v780_v20 }
  0xea   : > { %v397_v14 = vpop.f32.mrb[0].mxu0 }
  0xeb   : > { %v398_v15 = vadd.f32 %v717_v13, %v397_v14  ;;  %v747_v16 = vpop.f32.mrb[1].mxu0 }
  0xed   : > { %v401_v17 = vmax.f32 %v398_v15, 0.0 }
  0xef   : > { %757 = vmatmul.mubr.msk.f32.vlgmr.msra.gmra.mrb[0].mxu1 %vm413_vm3, %v401_v17 }
 0x1c2   : > { %v483_v22 = vpop.f32.mrb[0].mxu1 }
 0x1c3   : > { %v484_v23 = vadd.f32 %v720_v21, %v483_v22  ;;  %v758_v24 = vpop.f32.mrb[1].mxu1 }
 0x1c5   : > { %v487_v25 = vmax.f32 %v484_v23, 0.0 }
 0x1c7   : > { %768 = vmatmul.mubr.msk.f32.vlgmr.msra.gmra.mrb[2].mxu0 %vm413_vm3, %v487_v25 }
 0x29a   : > { %v568_v27 = vpop.f32.mrb[2].mxu0 }
 0x29b   : > { %v569_v28 = vadd.f32 %v722_v26, %v568_v27  ;;  %v769_v29 = vpop.f32.mrb[3].mxu0 }
 0x29d   : > { %v572_v30 = vmul.f32 0.5, %v569_v28  ;;  %724 = vst.msk [vmem:[%s305_s15 + $0x8] sm:$0xff] %vm582_vm4, %v569_v28 }
 0x29f   : > { %v573_v31 = vmul.f32 1.442695, %v572_v30 }
 0x2a1   : > { %810 = vpow2.f32 %v573_v31 }
 0x2a4   : > { %v638_v39 = vld [vmem:[%s305_s15 + $0x8] sm:$0xff] (%p910_p4) }
 0x2a5   : > { %639 = vst [vmem:[%s602_s22 + $0x10] sm:$0xff] (%p910_p4), %v638_v39 }
 0x2ab   : > { %v811_v32 = vpop.eup %810 }
 0x2ac   : > { %577 = vrot.lane.b32.xlu0 %v811_v32, %s839_s16 }
 0x2b0   : > { %589 = vrot.lane.b32.xlu0 %v569_v28, %s839_s16 }
 0x31d   : > { %600 = sbr.rel (!%p910_p4) target bundleno = 812 (0x32c), region = 56 }
 0x31e   : > { %v578_v34 = vpop.permute.xlu0 %577 }
 0x31f   : > { %v580_v35 = vmul.f32 %v578_v34, %v575_v33  ;;  %725 = vst.msk [vmem:[%s305_s15 + $0x10] sm:$0xff] %vm582_vm4, %v578_v34 }
 0x321   : > { %v581_v36 = vadd.f32 %v580_v35, %v569_v28 }
 0x322   : > { %v590_v37 = vpop.permute.xlu0 %589 }
 0x323   : > { %583 = vst.msk [vmem:[%s305_s15] sm:$0xff] %vm582_vm4, %v581_v36  ;;  %726 = vst.msk [vmem:[%s305_s15 + $0x18] sm:$0xff] %vm582_vm4, %v590_v37 }
 0x326   : > { %v640_v40 = vld [vmem:[%s305_s15 + $0x10] sm:$0xff] }
 0x327   : > { %641 = vst [vmem:[%s602_s22 + $0x20] sm:$0xff] %v640_v40 }
 0x32a   : > { %v636_v38 = vld [vmem:[%s305_s15] sm:$0xff]  ;;  %v642_v41 = vld [vmem:[%s305_s15 + $0x18] sm:$0xff] }
 0x32b   : > { %637 = vst [vmem:[%s602_s22] sm:$0xff] %v636_v38  ;;  %643 = vst [vmem:[%s602_s22 + $0x30] sm:$0xff] %v642_v41 }
 0x32c PF: > { %p15_p8 = scmp.ge.s32.totalorder %s900_s9, 4   ;;  %s999_s27 = smov %s830_s28 }
 0x32d   : > { %s1000_s28 = smov %s908_s12  ;;  %s1001_s29 = smov %s900_s9 }
 0x32e   :  { %17 = sbr.rel (!%p15_p8) target bundleno = 2 (0x2), region = 126 }

// kernel: deep_idw_forward.13
= control target key start
LH: loop header
LB: loop body
LE: loop exit
PB: predicated region body
PF: predicated region fallthrough
CT: control target
= control target key end

     0   :  { %s716_s24 = smov 0   ;;  %s779_s0 = inlined_call_operand.vmem [shape: f32[16,1], index: 0, kind: input, shape index: {}]   ;;  %s780_s1 = inlined_call_operand.vmem [shape: f32[1,32], index: 1, kind: input, shape index: {}]   ;;  %s781_s2 = inlined_call_operand.vmem [shape: f32[1,32], index: 2, kind: input, shape index: {}]   ;;  %s782_s3 = inlined_call_operand.vmem [shape: f32[32,32], index: 3, kind: input, shape index: {}]   ;;  %s783_s4 = inlined_call_operand.vmem [shape: f32[1,32], index: 4, kind: input, shape index: {}]   ;;  %s784_s5 = inlined_call_operand.vmem [shape: f32[32,4], index: 5, kind: input, shape index: {}]   ;;  %s785_s6 = inlined_call_operand.vmem [shape: f32[1,4], index: 6, kind: input, shape index: {}]   ;;  %s786_s7 = inlined_call_operand.vmem [shape: f32[16,4], index: 7, kind: output, shape index: {}]  }
   0x1 LB: > { %s587_s25 = sadd.s32 4294967295, %s671_s24   ;;  %p591_p0 = scmp.ge.s32.totalorder %s671_s24, 1  ;;  %s671_s24 = sphi %s716_s24, %s17_s24  }
   0x2   : > { %p236_p1 = scmp.lt.s32.totalorder %s671_s24, 3 }
   0x4   : > { %p237_p2 = pnand %p591_p0, %p236_p1 }
   0x5   : > { %v275_v0 = vld [vmem:[%s780_s1] sm:$0x1] (!%p237_p2)  ;;  %vm287_vm0 = vcmask (!%p237_p2), 1040384   ;;  %p266_p3 = scmp.lt.s32.totalorder (!%p237_p2), %s587_s25, 1  ;;  %v673_v1 = vmov (!%p237_p2), 0.0   ;;  %vm674_vm1 = vmmov (!%p237_p2), 0  }
   0x6   : > { %240 = sbr.rel (%p237_p2) target bundleno = 664 (0x298), region = 48  ;;  %615 = vmatprep.subr.mxu0 (!%p237_p2), %v673_v1  ;;  %617 = vmatprep.mubr.msk.f32.mxu0 (!%p237_p2), %vm674_vm1, %v673_v1  ;;  %v362_v2 = vld [vmem:[%s782_s3] sm:$0xff] (!%p237_p2)  ;;  %v363_v3 = vld [vmem:[%s782_s3 + $0x8] sm:$0xff] (!%p237_p2)  ;;  %v675_v4 = vmov (!%p237_p2), 0.0|0.0   ;;  %vm283_vm2 = vcmask (!%p237_p2), 7168   ;;  %v364_v7 = vld [vmem:[%s782_s3 + $0x10] sm:$0xff] (!%p237_p2) }
   0x7   : > { %616 = vmatpush3.msk.msra.mxu0 (!%p237_p2), %vm287_vm0, %v275_v0  ;;  %642 = vmatprep.subr.bf16.mxu1 (!%p237_p2), %v675_v4  ;;  %v643_v5 = vpack.c.bf16 (!%p237_p2), %v363_v3, %v362_v2  ;;  %v365_v8 = vld [vmem:[%s782_s3 + $0x18] sm:$0xff] (!%p237_p2)  ;;  %v448_v10 = vld [vmem:[%s784_s5] sm:$0xff] (!%p237_p2)  ;;  %v449_v11 = vld [vmem:[%s784_s5 + $0x8] sm:$0xff] (!%p237_p2)  ;;  %vm373_vm3 = vcmask (!%p237_p2), 261120   ;;  %vm532_vm4 = vcmask (!%p237_p2), 31744  }
   0x8   : > { %628 = vmatprep.mubr.msk.f32.mxu1 (!%p237_p2), %vm674_vm1, %v673_v1  ;;  %648 = vmatprep.subr.bf16.mxu0 (!%p237_p2), %v675_v4  ;;  %v646_v9 = vpack.c.bf16 (!%p237_p2), %v365_v8, %v364_v7  ;;  %v649_v12 = vpack.c.bf16 (!%p237_p2), %v449_v11, %v448_v10  ;;  %v594_v13 = vld [vmem:[%s781_s2] ss:$0 sm:$0xff] (!%p237_p2)  ;;  %v450_v18 = vld [vmem:[%s784_s5 + $0x10] sm:$0xff] (!%p237_p2)  ;;  %v451_v19 = vld [vmem:[%s784_s5 + $0x18] sm:$0xff] (!%p237_p2) }
   0x9   : > { %644 = vmatpush3.bf16.msra.mxu1 (!%p237_p2), %v643_v5  ;;  %v652_v20 = vpack.c.bf16 (!%p237_p2), %v451_v19, %v450_v18  ;;  %v597_v21 = vld [vmem:[%s783_s4] ss:$0 sm:$0xff] (!%p237_p2) }
   0xa   : > { %645 = vmatprep.subr.bf16.mxu1 (!%p237_p2), %v675_v4  ;;  %v599_v26 = vld [vmem:[%s785_s6] ss:$0 sm:$0xff] (!%p237_p2) }
   0xd   : > { %s788_s25 = smov (!%p266_p3, %s587_s25), 1  ;;  %647 = vmatpush3.bf16.msra.mxu1 %v646_v9 }
   0xe   : > { %s592_s9 = sshll.u32 %s788_s25, 3 }
   0xf   : > { %s269_s12 = scalar_lea.vmem %s779_s0, %s592_s9  ;;  %s273_s13 = scalar_lea.vmem %s786_s7, %s592_s9 }
  0x10   : > { %v274_v6 = vld [vmem:[%s269_s12] sm:$0xff] }
  0x11   : > { %618 = vmatmul.mubr.msk.f32.vlgmr.msra.gmra.mrb[0].mxu0 %vm283_vm2, %v274_v6 }
  0x12   : > { %639 = vmatprep.mubr.msk.f32.mxu0 %vm674_vm1, %v673_v1  ;;  %650 = vmatpush3.bf16.msra.mxu0 %v649_v12 }
  0x13   : > { %651 = vmatprep.subr.bf16.mxu0 %v675_v4 }
  0x16   : > { %653 = vmatpush3.bf16.msra.mxu0 %v652_v20 }
  0xe4   : > { %v357_v14 = vpop.f32.mrb[0].mxu0 }
  0xe5   : > { %v358_v15 = vadd.f32 %v594_v13, %v357_v14  ;;  %v619_v16 = vpop.f32.mrb[1].mxu0 }
  0xe7   : > { %v361_v17 = vmax.f32 %v358_v15, 0.0 }
  0xe9   : > { %629 = vmatmul.mubr.msk.f32.vlgmr.msra.gmra.mrb[0].mxu1 %vm373_vm3, %v361_v17 }
 0x1bc   : > { %v443_v22 = vpop.f32.mrb[0].mxu1 }
 0x1bd   : > { %v444_v23 = vadd.f32 %v597_v21, %v443_v22  ;;  %v630_v24 = vpop.f32.mrb[1].mxu1 }
 0x1bf   : > { %v447_v25 = vmax.f32 %v444_v23, 0.0 }
 0x1c1   : > { %640 = vmatmul.mubr.msk.f32.vlgmr.msra.gmra.mrb[2].mxu0 %vm373_vm3, %v447_v25 }
 0x294   : > { %v528_v27 = vpop.f32.mrb[2].mxu0 }
 0x295   : > { %v529_v28 = vadd.f32 %v599_v26, %v528_v27  ;;  %v641_v29 = vpop.f32.mrb[3].mxu0 }
 0x297   : > { %533 = vst.msk [vmem:[%s273_s13] sm:$0xff] %vm532_vm4, %v529_v28 }
 0x298 PF: > { %s17_s24 = sadd.s32 1, %s671_s24  }
 0x299   : > { %p14_p4 = scmp.ge.s32.totalorder %s17_s24, 4  }
 0x29b   :  { %16 = sbr.rel (!%p14_p4) target bundleno = 1 (0x1), region = 78 }

// kernel: deep_idw_forward.11
= control target key start
LH: loop header
LB: loop body
LE: loop exit
PB: predicated region body
PF: predicated region fallthrough
CT: control target
= control target key end

     0   :  { %s2448_s27 = smov 0   ;;  %s2808_s0 = inlined_call_operand.vmem [shape: f32[16,16], index: 0, kind: input, shape index: {}]   ;;  %s2809_s1 = inlined_call_operand.vmem [shape: f32[16,1], index: 1, kind: input, shape index: {}]   ;;  %s2810_s2 = inlined_call_operand.vmem [shape: f32[6,16,32], index: 2, kind: input, shape index: {}]   ;;  %s2811_s3 = inlined_call_operand.vmem [shape: f32[6,1,32], index: 3, kind: input, shape index: {}]   ;;  %s2812_s4 = inlined_call_operand.vmem [shape: f32[6,32,32], index: 4, kind: input, shape index: {}]   ;;  %s2813_s5 = inlined_call_operand.vmem [shape: f32[6,1,32], index: 5, kind: input, shape index: {}]   ;;  %s2814_s6 = inlined_call_operand.vmem [shape: f32[6,32,1], index: 6, kind: input, shape index: {}]   ;;  %s2815_s7 = inlined_call_operand.vmem [shape: f32[6,1,1], index: 7, kind: input, shape index: {}]   ;;  %s2816_s8 = inlined_call_operand.vmem [shape: f32[16,1], index: 8, kind: output, shape index: {}]  }
   0x1 LB: > { %s1928_s28 = sadd.s32 4294967295, %s2398_s27   ;;  %p1932_p0 = scmp.ge.s32.totalorder %s2398_s27, 1  ;;  %s2398_s27 = sphi %s2448_s27, %s18_s27  }
   0x2   : > { %p270_p1 = scmp.lt.s32.totalorder %s2398_s27, 3 }
   0x4   : > { %p271_p2 = pnand %p1932_p0, %p270_p1 }
   0x5   : > { %v319_v0 = vld [vmem:[%s2810_s2] sm:$0xff] (!%p271_p2)  ;;  %v320_v1 = vld [vmem:[%s2810_s2 + $0x8] sm:$0xff] (!%p271_p2)  ;;  %p306_p3 = scmp.lt.s32.totalorder (!%p271_p2), %s1928_s28, 1  ;;  %v2400_v2 = vmov (!%p271_p2), 0.0|0.0   ;;  %vm2401_vm0 = vmmov (!%p271_p2), 0   ;;  %v2402_v4 = vmov (!%p271_p2), 0.0  }
   0x6   : > { %274 = sbr.rel (%p271_p2) target bundleno = 1788 (0x6fc), region = 52  ;;  %2291 = vmatprep.subr.bf16.mxu0 (!%p271_p2), %v2400_v2  ;;  %v2292_v3 = vpack.c.bf16 (!%p271_p2), %v320_v1, %v319_v0  ;;  %2121 = vmatprep.mubr.msk.f32.mxu0 (!%p271_p2), %vm2401_vm0, %v2402_v4  ;;  %v403_v5 = vld [vmem:[%s2812_s4] sm:$0xff] (!%p271_p2)  ;;  %v404_v6 = vld [vmem:[%s2812_s4 + $0x8] sm:$0xff] (!%p271_p2)  ;;  %vm328_vm1 = vcmask (!%p271_p2), 130048   ;;  %v405_v9 = vld [vmem:[%s2812_s4 + $0x10] sm:$0xff] (!%p271_p2)  ;;  %vm414_vm2 = vcmask (!%p271_p2), 261120  }
   0x7   : > { %2294 = vmatprep.subr.bf16.mxu1 (!%p271_p2), %v2400_v2  ;;  %v2295_v7 = vpack.c.bf16 (!%p271_p2), %v404_v6, %v403_v5  ;;  %2132 = vmatprep.mubr.msk.f32.mxu1 (!%p271_p2), %vm2401_vm0, %v2402_v4  ;;  %v406_v10 = vld [vmem:[%s2812_s4 + $0x18] sm:$0xff] (!%p271_p2)  ;;  %v489_v12 = vld [vmem:[%s2814_s6] sm:$0xff] (!%p271_p2)  ;;  %v490_v13 = vld [vmem:[%s2814_s6 + $0x8] sm:$0xff] (!%p271_p2)  ;;  %vm1861_vm3 = vcmask (!%p271_p2), 7168  }
   0x8   : > { %2293 = vmatpush3.bf16.msra.mxu0 (!%p271_p2), %v2292_v3  ;;  %v2298_v11 = vpack.c.bf16 (!%p271_p2), %v406_v10, %v405_v9  ;;  %v2301_v14 = vpack.c.bf16 (!%p271_p2), %v490_v13, %v489_v12  ;;  %v1936_v15 = vld [vmem:[%s2811_s3] ss:$0 sm:$0xff] (!%p271_p2)  ;;  %v1942_v16 = vld [vmem:[%s2810_s2 + $0x10] sm:$0xff] (!%p271_p2)  ;;  %v1943_v17 = vld [vmem:[%s2810_s2 + $0x18] sm:$0xff] (!%p271_p2) }
   0x9   : > { %2296 = vmatpush3.bf16.msra.mxu1 (!%p271_p2), %v2295_v7  ;;  %2300 = vmatprep.subr.bf16.mxu0 (!%p271_p2), %v2400_v2  ;;  %v2307_v21 = vpack.c.bf16 (!%p271_p2), %v1943_v17, %v1942_v16  ;;  %v491_v23 = vld [vmem:[%s2814_s6 + $0x10] sm:$0xff] (!%p271_p2)  ;;  %v492_v24 = vld [vmem:[%s2814_s6 + $0x18] sm:$0xff] (!%p271_p2)  ;;  %v1938_v26 = vld [vmem:[%s2813_s5] ss:$0 sm:$0xff] (!%p271_p2) }
   0xa   : > { %2297 = vmatprep.subr.bf16.mxu1 (!%p271_p2), %v2400_v2  ;;  %v2304_v25 = vpack.c.bf16 (!%p271_p2), %v492_v24, %v491_v23  ;;  %v1947_v27 = vld [vmem:[%s2812_s4 + $0x20] sm:$0xff] (!%p271_p2)  ;;  %v1948_v28 = vld [vmem:[%s2812_s4 + $0x28] sm:$0xff] (!%p271_p2)  ;;  %v1949_v35 = vld [vmem:[%s2812_s4 + $0x30] sm:$0xff] (!%p271_p2) }
   0xb   : > { %v2310_v32 = vpack.c.bf16 (!%p271_p2), %v1948_v28, %v1947_v27  ;;  %v1945_v33 = vld [vmem:[%s2811_s3 + $0x1] ss:$0 sm:$0xff] (!%p271_p2)  ;;  %v1950_v36 = vld [vmem:[%s2812_s4 + $0x38] sm:$0xff] (!%p271_p2)  ;;  %v1962_v42 = vld [vmem:[%s2810_s2 + $0x28] sm:$0xff] (!%p271_p2) }
   0xc   : > { %v2313_v40 = vpack.c.bf16 (!%p271_p2), %v1950_v36, %v1949_v35  ;;  %v1961_v41 = vld [vmem:[%s2810_s2 + $0x20] sm:$0xff] (!%p271_p2)  ;;  %v1955_v46 = vld [vmem:[%s2814_s6 + $0x28] sm:$0xff] (!%p271_p2)  ;;  %v1956_v48 = vld [vmem:[%s2814_s6 + $0x30] sm:$0xff] (!%p271_p2) }
   0xd   : > { %s2818_s28 = smov (!%p306_p3, %s1928_s28), 1  ;;  %2299 = vmatpush3.bf16.msra.mxu1 %v2298_v11  ;;  %v2322_v44 = vpack.c.bf16 %v1962_v42, %v1961_v41  ;;  %v1954_v45 = vld [vmem:[%s2814_s6 + $0x20] sm:$0xff]  ;;  %v1957_v49 = vld [vmem:[%s2814_s6 + $0x38] sm:$0xff]  ;;  %v1967_v55 = vld [vmem:[%s2812_s4 + $0x48] sm:$0xff] }
   0xe   : > { %s2474_s15 = sshll.u32 %s2818_s28, 3  ;;  %2306 = vmatprep.subr.bf16.mxu1 %v2400_v2  ;;  %v2316_v47 = vpack.c.bf16 %v1955_v46, %v1954_v45  ;;  %v2319_v50 = vpack.c.bf16 %v1957_v49, %v1956_v48  ;;  %v1952_v53 = vld [vmem:[%s2813_s5 + $0x1] ss:$0 sm:$0xff]  ;;  %v1964_v60 = vld [vmem:[%s2811_s3 + $0x2] ss:$0 sm:$0xff]  ;;  %v1968_v62 = vld [vmem:[%s2812_s4 + $0x50] sm:$0xff] }
   0xf   : > { %s309_s18 = scalar_lea.vmem %s2808_s0, %s2474_s15  ;;  %v1966_v54 = vld [vmem:[%s2812_s4 + $0x40] sm:$0xff]  ;;  %v1969_v63 = vld [vmem:[%s2812_s4 + $0x58] sm:$0xff]  ;;  %v1980_v6 = vld [vmem:[%s2810_s2 + $0x30] sm:$0xff]  ;;  %s313_s17 = scalar_lea.vmem %s2809_s1, %s2474_s15 }
  0x10   : > { %v2482_v8 = vld [vmem:[%s309_s18] sm:$0xff]  ;;  %v2325_v59 = vpack.c.bf16 %v1967_v55, %v1966_v54  ;;  %v2328_v5 = vpack.c.bf16 %v1969_v63, %v1968_v62  ;;  %v1981_v7 = vld [vmem:[%s2810_s2 + $0x38] sm:$0xff]  ;;  %v1974_v12 = vld [vmem:[%s2814_s6 + $0x48] sm:$0xff]  ;;  %s317_s11 = scalar_lea.vmem %s2816_s8, %s2474_s15 }
  0x11   : > { %2122 = vmatmul.mubr.msk.f32.vlgmr.msra.gmra.mrb[0].mxu0 %vm328_vm1, %v2482_v8  ;;  %v2337_v10 = vpack.c.bf16 %v1981_v7, %v1980_v6  ;;  %v1973_v11 = vld [vmem:[%s2814_s6 + $0x40] sm:$0xff]  ;;  %v1987_v28 = vld [vmem:[%s2812_s4 + $0x70] sm:$0xff]  ;;  %v2000_v35 = vld [vmem:[%s2810_s2 + $0x48] sm:$0xff] }
  0x12   : > { %2143 = vmatprep.mubr.msk.f32.mxu0 %vm2401_vm0, %v2402_v4  ;;  %2302 = vmatpush3.bf16.msra.mxu0 %v2301_v14  ;;  %v2331_v13 = vpack.c.bf16 %v1974_v12, %v1973_v11  ;;  %v1975_v14 = vld [vmem:[%s2814_s6 + $0x50] sm:$0xff]  ;;  %v1995_v42 = vld [vmem:[%s2814_s6 + $0x78] sm:$0xff]  ;;  %v1990_v46 = vld [vmem:[%s2813_s5 + $0x3] ss:$0 sm:$0xff] }
  0x13   : > { %2303 = vmatprep.subr.bf16.mxu0 %v2400_v2  ;;  %v1994_v41 = vld [vmem:[%s2814_s6 + $0x70] sm:$0xff]  ;;  %v2005_v48 = vld [vmem:[%s2812_s4 + $0x88] sm:$0xff]  ;;  %v2002_v54 = vld [vmem:[%s2811_s3 + $0x4] ss:$0 sm:$0xff] }
  0x14   : > { %v2018_v62 = vld [vmem:[%s2810_s2 + $0x50] sm:$0xff]  ;;  %v2019_v63 = vld [vmem:[%s2810_s2 + $0x58] sm:$0xff]  ;;  %v1848_v12 = vld [vmem:[%s313_s17] sm:$0xff] }
  0x15   : > { %v2013_v7 = vld [vmem:[%s2814_s6 + $0x90] sm:$0xff] }
  0x16   : > { %2305 = vmatpush3.bf16.msra.mxu0 %v2304_v25 }
  0x17   : > { %2309 = vmatprep.subr.bf16.mxu0 %v2400_v2 }
  0xe4   : > { %v398_v18 = vpop.f32.mrb[0].mxu0 }
  0xe5   : > { %v399_v19 = vadd.f32 %v1936_v15, %v398_v18  ;;  %v2123_v20 = vpop.f32.mrb[1].mxu0  ;;  %v1976_v15 = vld [vmem:[%s2814_s6 + $0x58] sm:$0xff] }
  0xe6   : > { %v2334_v16 = vpack.c.bf16 %v1976_v15, %v1975_v14  ;;  %v1985_v20 = vld [vmem:[%s2812_s4 + $0x60] sm:$0xff] }
  0xe7   : > { %v402_v22 = vmax.f32 %v399_v19, 0.0  ;;  %v1971_v19 = vld [vmem:[%s2813_s5 + $0x2] ss:$0 sm:$0xff] }
  0xe9   : > { %2133 = vmatmul.mubr.msk.f32.vlgmr.msra.gmra.mrb[0].mxu1 %vm414_vm2, %v402_v22 }
  0xea   : > { %2308 = vmatpush3.bf16.msra.mxu1 %v2307_v21  ;;  %2150 = vmatprep.mubr.msk.f32.mxu1 %vm2401_vm0, %v2402_v4  ;;  %v1986_v21 = vld [vmem:[%s2812_s4 + $0x68] sm:$0xff] }
  0xeb   : > { %2315 = vmatprep.subr.bf16.mxu1 %v2400_v2  ;;  %v2340_v25 = vpack.c.bf16 %v1986_v21, %v1985_v20 }
  0xed   : > { %2151 = vmatmul.mubr.msk.f32.vlgmr.msra.gmra.mrb[2].mxu1 %vm328_vm1, %v2482_v8 }
  0xee   : > { %2172 = vmatprep.mubr.msk.f32.mxu1 %vm2401_vm0, %v2402_v4  ;;  %2317 = vmatpush3.bf16.msra.mxu1 %v2316_v47  ;;  %v2004_v47 = vld [vmem:[%s2812_s4 + $0x80] sm:$0xff] }
  0xef   : > { %2318 = vmatprep.subr.bf16.mxu1 %v2400_v2 }
  0xf2   : > { %2320 = vmatpush3.bf16.msra.mxu1 %v2319_v50 }
  0xf3   : > { %2324 = vmatprep.subr.bf16.mxu1 %v2400_v2 }
 0x1bc   : > { %v484_v29 = vpop.f32.mrb[0].mxu1 }
 0x1bd   : > { %v485_v30 = vadd.f32 %v1938_v26, %v484_v29  ;;  %v2134_v31 = vpop.f32.mrb[1].mxu1  ;;  %v1983_v26 = vld [vmem:[%s2811_s3 + $0x3] ss:$0 sm:$0xff]  ;;  %v1988_v29 = vld [vmem:[%s2812_s4 + $0x78] sm:$0xff] }
 0x1bf   : > { %v488_v34 = vmax.f32 %v485_v30, 0.0 }
 0x1c0   : > { %v650_v37 = vpop.f32.mrb[2].mxu1 }
 0x1c1   : > { %2144 = vmatmul.mubr.msk.f32.vlgmr.msra.gmra.mrb[2].mxu0 %vm414_vm2, %v488_v34  ;;  %v651_v38 = vadd.f32 %v1945_v33, %v650_v37  ;;  %v2152_v39 = vpop.f32.mrb[3].mxu1  ;;  %v2343_v33 = vpack.c.bf16 %v1988_v29, %v1987_v28  ;;  %v1999_v34 = vld [vmem:[%s2810_s2 + $0x40] sm:$0xff] }
 0x1c2   : > { %2311 = vmatpush3.bf16.msra.mxu0 %v2310_v32  ;;  %2161 = vmatprep.mubr.msk.f32.mxu0 %vm2401_vm0, %v2402_v4  ;;  %v2352_v37 = vpack.c.bf16 %v2000_v35, %v1999_v34  ;;  %v1993_v39 = vld [vmem:[%s2814_s6 + $0x68] sm:$0xff] }
 0x1c3   : > { %2312 = vmatprep.subr.bf16.mxu0 %v2400_v2  ;;  %v654_v43 = vmax.f32 %v651_v38, 0.0  ;;  %v1992_v38 = vld [vmem:[%s2814_s6 + $0x60] sm:$0xff] }
 0x1c6   : > { %2314 = vmatpush3.bf16.msra.mxu0 %v2313_v40  ;;  %v2346_v40 = vpack.c.bf16 %v1993_v39, %v1992_v38  ;;  %v2030_v38 = vld [vmem:[%s2814_s6 + $0xa0] sm:$0xff]  ;;  %v2031_v39 = vld [vmem:[%s2814_s6 + $0xa8] sm:$0xff] }
 0x1c7   : > { %2321 = vmatprep.subr.bf16.mxu0 %v2400_v2 }
 0x1c9   : > { %2162 = vmatmul.mubr.msk.f32.vlgmr.msra.gmra.mrb[4].mxu0 %vm414_vm2, %v654_v43  ;;  %v2349_v43 = vpack.c.bf16 %v1995_v42, %v1994_v41  ;;  %v2033_v41 = vld [vmem:[%s2814_s6 + $0xb8] sm:$0xff] }
 0x1ca   : > { %2323 = vmatpush3.bf16.msra.mxu0 %v2322_v44  ;;  %2179 = vmatprep.mubr.msk.f32.mxu0 %vm2401_vm0, %v2402_v4 }
 0x1cb   : > { %2330 = vmatprep.subr.bf16.mxu0 %v2400_v2 }
 0x1cd   : > { %2180 = vmatmul.mubr.msk.f32.vlgmr.msra.gmra.mrb[6].mxu0 %vm328_vm1, %v2482_v8 }
 0x1ce   : > { %2201 = vmatprep.mubr.msk.f32.mxu0 %vm2401_vm0, %v2402_v4  ;;  %2332 = vmatpush3.bf16.msra.mxu0 %v2331_v13  ;;  %v1997_v13 = vld [vmem:[%s2815_s7 + $0x3] ss:$0 sm:$0xff] }
 0x1cf   : > { %2333 = vmatprep.subr.bf16.mxu0 %v2400_v2 }
 0x1d2   : > { %2335 = vmatpush3.bf16.msra.mxu0 %v2334_v16 }
 0x1d3   : > { %2339 = vmatprep.subr.bf16.mxu0 %v2400_v2 }
 0x294   : > { %v2577_v51 = vpop.f32.mrb[2].mxu0 }
 0x295   : > { %v2145_v52 = vpop.f32.mrb[3].mxu0 }
 0x29c   : > { %v737_v56 = vpop.f32.mrb[4].mxu0 }
 0x29d   : > { %v738_v57 = vadd.f32 %v1952_v53, %v737_v56  ;;  %v2163_v58 = vpop.f32.mrb[5].mxu0  ;;  %v2355_v53 = vpack.c.bf16 %v2005_v48, %v2004_v47  ;;  %v2006_v56 = vld [vmem:[%s2812_s4 + $0x90] sm:$0xff] }
 0x29f   : > { %v741_v61 = vmax.f32 %v738_v57, 0.0  ;;  %v2007_v57 = vld [vmem:[%s2812_s4 + $0x98] sm:$0xff] }
 0x2a0   : > { %v905_v0 = vpop.f32.mrb[6].mxu0 }
 0x2a1   : > { %2173 = vmatmul.mubr.msk.f32.vlgmr.msra.gmra.mrb[4].mxu1 %vm414_vm2, %v741_v61  ;;  %v906_v1 = vadd.f32 %v1964_v60, %v905_v0  ;;  %v2181_v3 = vpop.f32.mrb[7].mxu0  ;;  %v2358_v61 = vpack.c.bf16 %v2007_v57, %v2006_v56 }
 0x2a2   : > { %2326 = vmatpush3.bf16.msra.mxu1 %v2325_v59  ;;  %2190 = vmatprep.mubr.msk.f32.mxu1 %vm2401_vm0, %v2402_v4  ;;  %v2011_v3 = vld [vmem:[%s2814_s6 + $0x80] sm:$0xff] }
 0x2a3   : > { %2327 = vmatprep.subr.bf16.mxu1 %v2400_v2  ;;  %v909_v9 = vmax.f32 %v906_v1, 0.0  ;;  %v2367_v1 = vpack.c.bf16 %v2019_v63, %v2018_v62 }
 0x2a6   : > { %2329 = vmatpush3.bf16.msra.mxu1 %v2328_v5  ;;  %v2012_v5 = vld [vmem:[%s2814_s6 + $0x88] sm:$0xff] }
 0x2a7   : > { %2336 = vmatprep.subr.bf16.mxu1 %v2400_v2  ;;  %v2361_v6 = vpack.c.bf16 %v2012_v5, %v2011_v3 }
 0x2a9   : > { %2191 = vmatmul.mubr.msk.f32.vlgmr.msra.gmra.mrb[6].mxu1 %vm414_vm2, %v909_v9 }
 0x2aa   : > { %2338 = vmatpush3.bf16.msra.mxu1 %v2337_v10  ;;  %2208 = vmatprep.mubr.msk.f32.mxu1 %vm2401_vm0, %v2402_v4  ;;  %v1940_v10 = vld [vmem:[%s2815_s7] ss:$0 sm:$0xff] }
 0x2ab   : > { %2345 = vmatprep.subr.bf16.mxu1 %v2400_v2  ;;  %v570_v11 = vadd.f32 %v1940_v10, %v2577_v51  ;;  %v2009_v51 = vld [vmem:[%s2813_s5 + $0x4] ss:$0 sm:$0xff] }
 0x2ad   : > { %2209 = vmatmul.mubr.msk.f32.vlgmr.msra.gmra.mrb[8].mxu1 %vm328_vm1, %v2482_v8  ;;  %v1849_v15 = vmul.f32 %v1848_v12, %v570_v11 }
 0x2ae   : > { %2230 = vmatprep.mubr.msk.f32.mxu1 %vm2401_vm0, %v2402_v4  ;;  %2347 = vmatpush3.bf16.msra.mxu1 %v2346_v40  ;;  %v2376_v40 = vpack.c.bf16 %v2031_v39, %v2030_v38 }
 0x2af   : > { %2348 = vmatprep.subr.bf16.mxu1 %v2400_v2 }
 0x2b2   : > { %2350 = vmatpush3.bf16.msra.mxu1 %v2349_v43  ;;  %v2016_v43 = vld [vmem:[%s2815_s7 + $0x4] ss:$0 sm:$0xff] }
 0x2b3   : > { %2354 = vmatprep.subr.bf16.mxu1 %v2400_v2 }
 0x374   : > { %v2630_v17 = vpop.f32.mrb[4].mxu1 }
 0x375   : > { %v2174_v18 = vpop.f32.mrb[5].mxu1 }
 0x37c   : > { %v992_v22 = vpop.f32.mrb[6].mxu1 }
 0x37d   : > { %v993_v23 = vadd.f32 %v1971_v19, %v992_v22  ;;  %v2192_v24 = vpop.f32.mrb[7].mxu1  ;;  %v1959_v19 = vld [vmem:[%s2815_s7 + $0x1] ss:$0 sm:$0xff] }
 0x37e   : > { %v825_v21 = vadd.f32 %v1959_v19, %v2630_v17  ;;  %v2024_v24 = vld [vmem:[%s2812_s4 + $0xa8] sm:$0xff]  ;;  %v2021_v17 = vld [vmem:[%s2811_s3 + $0x5] ss:$0 sm:$0xff] }
 0x37f   : > { %v996_v27 = vmax.f32 %v993_v23, 0.0  ;;  %v2023_v23 = vld [vmem:[%s2812_s4 + $0xa0] sm:$0xff] }
 0x380   : > { %v1160_v30 = vpop.f32.mrb[8].mxu1  ;;  %v2370_v29 = vpack.c.bf16 %v2024_v24, %v2023_v23 }
 0x381   : > { %2202 = vmatmul.mubr.msk.f32.vlgmr.msra.gmra.mrb[8].mxu0 %vm414_vm2, %v996_v27  ;;  %v1161_v31 = vadd.f32 %v1983_v26, %v1160_v30  ;;  %v2210_v32 = vpop.f32.mrb[9].mxu1 }
 0x382   : > { %2341 = vmatpush3.bf16.msra.mxu0 %v2340_v25  ;;  %2219 = vmatprep.mubr.msk.f32.mxu0 %vm2401_vm0, %v2402_v4  ;;  %v2026_v32 = vld [vmem:[%s2812_s4 + $0xb8] sm:$0xff] }
 0x383   : > { %2342 = vmatprep.subr.bf16.mxu0 %v2400_v2  ;;  %v1164_v36 = vmax.f32 %v1161_v31, 0.0  ;;  %v2025_v31 = vld [vmem:[%s2812_s4 + $0xb0] sm:$0xff] }
 0x386   : > { %2344 = vmatpush3.bf16.msra.mxu0 %v2343_v33 }
 0x387   : > { %2351 = vmatprep.subr.bf16.mxu0 %v2400_v2 }
 0x389   : > { %2220 = vmatmul.mubr.msk.f32.vlgmr.msra.gmra.mrb[10].mxu0 %vm414_vm2, %v1164_v36  ;;  %v2373_v36 = vpack.c.bf16 %v2026_v32, %v2025_v31 }
 0x38a   : > { %2353 = vmatpush3.bf16.msra.mxu0 %v2352_v37  ;;  %2237 = vmatprep.mubr.msk.f32.mxu0 %vm2401_vm0, %v2402_v4 }
 0x38b   : > { %2360 = vmatprep.subr.bf16.mxu0 %v2400_v2 }
 0x38d   : > { %2238 = vmatmul.mubr.msk.f32.vlgmr.msra.gmra.mrb[12].mxu0 %vm328_vm1, %v2482_v8 }
 0x38e   : > { %2259 = vmatprep.mubr.msk.f32.mxu0 %vm2401_vm0, %v2402_v4  ;;  %2362 = vmatpush3.bf16.msra.mxu0 %v2361_v6 }
 0x38f   : > { %2363 = vmatprep.subr.bf16.mxu0 %v2400_v2 }
 0x454   : > { %v2683_v44 = vpop.f32.mrb[8].mxu0 }
 0x455   : > { %v2203_v45 = vpop.f32.mrb[9].mxu0 }
 0x45c   : > { %v1247_v49 = vpop.f32.mrb[10].mxu0 }
 0x45d   : > { %v1248_v50 = vadd.f32 %v1990_v46, %v1247_v49  ;;  %v2221_v52 = vpop.f32.mrb[11].mxu0 }
 0x45e   : > { %v1978_v52 = vld [vmem:[%s2815_s7 + $0x2] ss:$0 sm:$0xff] }
 0x45f   : > { %v1251_v55 = vmax.f32 %v1248_v50, 0.0  ;;  %v1080_v57 = vadd.f32 %v1978_v52, %v2683_v44 }
 0x460   : > { %v1415_v58 = vpop.f32.mrb[12].mxu0 }
 0x461   : > { %2231 = vmatmul.mubr.msk.f32.vlgmr.msra.gmra.mrb[10].mxu1 %vm414_vm2, %v1251_v55  ;;  %v1416_v59 = vadd.f32 %v2002_v54, %v1415_v58  ;;  %v2239_v60 = vpop.f32.mrb[13].mxu0 }
 0x462   : > { %2356 = vmatpush3.bf16.msra.mxu1 %v2355_v53  ;;  %2248 = vmatprep.mubr.msk.f32.mxu1 %vm2401_vm0, %v2402_v4 }
 0x463   : > { %2357 = vmatprep.subr.bf16.mxu1 %v2400_v2  ;;  %v1419_v0 = vmax.f32 %v1416_v59, 0.0 }
 0x466   : > { %2359 = vmatpush3.bf16.msra.mxu1 %v2358_v61  ;;  %v2035_v61 = vld [vmem:[%s2815_s7 + $0x5] ss:$0 sm:$0xff] }
 0x467   : > { %2366 = vmatprep.subr.bf16.mxu1 %v2400_v2 }
 0x469   : > { %2249 = vmatmul.mubr.msk.f32.vlgmr.msra.gmra.mrb[12].mxu1 %vm414_vm2, %v1419_v0 }
 0x46a   : > { %2368 = vmatpush3.bf16.msra.mxu1 %v2367_v1  ;;  %2266 = vmatprep.mubr.msk.f32.mxu1 %vm2401_vm0, %v2402_v4 }
 0x46b   : > { %2375 = vmatprep.subr.bf16.mxu1 %v2400_v2 }
 0x46d   : > { %2267 = vmatmul.mubr.msk.f32.vlgmr.msra.gmra.mrb[14].mxu1 %vm328_vm1, %v2482_v8  ;;  %v2014_v8 = vld [vmem:[%s2814_s6 + $0x98] sm:$0xff] }
 0x46e   : > { %2288 = vmatprep.mubr.msk.f32.mxu1 %vm2401_vm0, %v2402_v4  ;;  %v2364_v9 = vpack.c.bf16 %v2014_v8, %v2013_v7  ;;  %2377 = vmatpush3.bf16.msra.mxu1 %v2376_v40 }
 0x46f   : > { %2378 = vmatprep.subr.bf16.mxu1 %v2400_v2 }
 0x470   : > { %2365 = vmatpush3.bf16.msra.mxu0 %v2364_v9 }
 0x471   : > { %2369 = vmatprep.subr.bf16.mxu0 %v2400_v2 }
 0x534   : > { %v1334_v14 = vpop.f32.mrb[10].mxu1 }
 0x535   : > { %v1335_v16 = vadd.f32 %v1997_v13, %v1334_v14  ;;  %v2232_v18 = vpop.f32.mrb[11].mxu1 }
 0x537   : > { %v1850_v20 = vadd.f32 %v1849_v15, %v1335_v16 }
 0x539   : > { %v1851_v22 = vmax.f32 %v1850_v20, 0.0 }
 0x53b   : > { %v1852_v25 = vmul.f32 %v1851_v22, %v825_v21 }
 0x53c   : > { %v1502_v26 = vpop.f32.mrb[12].mxu1 }
 0x53d   : > { %v1503_v27 = vadd.f32 %v2009_v51, %v1502_v26  ;;  %v2250_v28 = vpop.f32.mrb[13].mxu1 }
 0x53f   : > { %v1506_v30 = vmax.f32 %v1503_v27, 0.0 }
 0x540   : > { %v1670_v33 = vpop.f32.mrb[14].mxu1 }
 0x541   : > { %2260 = vmatmul.mubr.msk.f32.vlgmr.msra.gmra.mrb[14].mxu0 %vm414_vm2, %v1506_v30  ;;  %v1671_v34 = vadd.f32 %v2021_v17, %v1670_v33  ;;  %v2268_v35 = vpop.f32.mrb[15].mxu1 }
 0x542   : > { %2371 = vmatpush3.bf16.msra.mxu0 %v2370_v29  ;;  %2277 = vmatprep.mubr.msk.f32.mxu0 %vm2401_vm0, %v2402_v4  ;;  %v2032_v4 = vld [vmem:[%s2814_s6 + $0xb0] sm:$0xff] }
 0x543   : > { %2372 = vmatprep.subr.bf16.mxu0 %v2400_v2  ;;  %v1674_v37 = vmax.f32 %v1671_v34, 0.0  ;;  %v2379_v42 = vpack.c.bf16 %v2033_v41, %v2032_v4  ;;  %v2028_v2 = vld [vmem:[%s2813_s5 + $0x5] ss:$0 sm:$0xff] }
 0x545   : > { %2380 = vmatpush3.bf16.msra.mxu1 %v2379_v42 }
 0x546   : > { %2374 = vmatpush3.bf16.msra.mxu0 %v2373_v36 }
 0x549   : > { %2278 = vmatmul.mubr.msk.f32.vlgmr.msra.gmra.mrb[16].mxu0 %vm414_vm2, %v1674_v37 }
 0x614   : > { %v1589_v45 = vpop.f32.mrb[14].mxu0 }
 0x615   : > { %v1590_v46 = vadd.f32 %v2016_v43, %v1589_v45  ;;  %v2261_v47 = vpop.f32.mrb[15].mxu0 }
 0x617   : > { %v1853_v48 = vadd.f32 %v1852_v25, %v1590_v46 }
 0x619   : > { %v1854_v49 = vadd.f32 %v1853_v48, %v1848_v12 }
 0x61b   : > { %v1855_v50 = vmul.f32 %v1854_v49, %v825_v21 }
 0x61c   : > { %v1757_v53 = vpop.f32.mrb[16].mxu0 }
 0x61d   : > { %v1856_v54 = vadd.f32 %v1855_v50, %v1590_v46  ;;  %v1758_v55 = vadd.f32 %v2028_v2, %v1757_v53  ;;  %v2279_v56 = vpop.f32.mrb[17].mxu0 }
 0x61f   : > { %v1857_v58 = vmax.f32 %v1856_v54, 0.0  ;;  %v1761_v59 = vmax.f32 %v1758_v55, 0.0 }
 0x621   : > { %2289 = vmatmul.mubr.msk.f32.vlgmr.msra.gmra.mrb[16].mxu1 %vm414_vm2, %v1761_v59  ;;  %v1858_v60 = vmul.f32 %v1857_v58, %v1080_v57 }
 0x6f4   : > { %v1844_v62 = vpop.f32.mrb[16].mxu1 }
 0x6f5   : > { %v1845_v63 = vadd.f32 %v2035_v61, %v1844_v62  ;;  %v2290_v0 = vpop.f32.mrb[17].mxu1 }
 0x6f7   : > { %v1859_v1 = vadd.f32 %v1858_v60, %v1845_v63 }
 0x6f9   : > { %v1860_v3 = vadd.f32 %v1859_v1, %v1854_v49 }
 0x6fb   : > { %1862 = vst.msk [vmem:[%s317_s11] sm:$0xff] %vm1861_vm3, %v1860_v3 }
 0x6fc PF: > { %s18_s27 = sadd.s32 1, %s2398_s27  }
 0x6fd   : > { %p15_p4 = scmp.ge.s32.totalorder %s18_s27, 4  }
 0x6ff   :  { %17 = sbr.rel (!%p15_p4) target bundleno = 1 (0x1), region = 115 }

// kernel: deep_idw_forward.7
= control target key start
LH: loop header
LB: loop body
LE: loop exit
PB: predicated region body
PF: predicated region fallthrough
CT: control target
= control target key end

     0   :  { %s887_s27 = smov 0   ;;  %s889_s28 = smov 0   ;;  %s994_s0 = inlined_call_operand.vmem [shape: f32[16,16], index: 0, kind: input, shape index: {}]   ;;  %s995_s1 = inlined_call_operand.vmem [shape: f32[16,3], index: 1, kind: input, shape index: {}]   ;;  %s996_s2 = inlined_call_operand.vmem [shape: f32[16,32], index: 2, kind: input, shape index: {}]   ;;  %s997_s3 = inlined_call_operand.vmem [shape: f32[1,32], index: 3, kind: input, shape index: {}]   ;;  %s998_s4 = inlined_call_operand.vmem [shape: f32[32,32], index: 4, kind: input, shape index: {}]   ;;  %s999_s5 = inlined_call_operand.vmem [shape: f32[1,32], index: 5, kind: input, shape index: {}]   ;;  %s1000_s6 = inlined_call_operand.vmem [shape: f32[32,6], index: 6, kind: input, shape index: {}]   ;;  %s1001_s7 = inlined_call_operand.vmem [shape: f32[1,6], index: 7, kind: input, shape index: {}]   ;;  %s1002_s8 = inlined_call_operand.vmem [shape: f32[4,16,3], index: 8, kind: output, shape index: {}]  }
   0x1   :  { %s891_s29 = smov 0  }
   0x2 LB: > { %s900_s30 = sadd.s32 4294967295, %s836_s29   ;;  %s902_s9 = sadd.s32 1, %s836_s29   ;;  %s836_s29 = sphi %s891_s29, %s1006_s29   ;;  %s832_s28 = sphi %s889_s28, %s1005_s28   ;;  %s828_s27 = sphi %s887_s27, %s1004_s27  }
   0x3   : > { %s200_s10 = ssub.s32 %s836_s29, %s902_s9  ;;  %s203_s11 = sadd.s32 1, %s832_s28 }
   0x4   : > { %p201_p0 = scmp.eq.s32.totalorder %s200_s10, 0  ;;  %p213_p1 = scmp.ne.s32.totalorder %s832_s28, %s828_s27 }
   0x5   : > { %p214_p2 = scmp.eq.s32.totalorder %s900_s30, 1  ;;  %p710_p3 = scmp.ge.s32.totalorder %s836_s29, 1 }
   0x6   : > { %s910_s12 = scalar_select %p201_p0, %s832_s28, %s203_s11  }
   0x7   : > { %p912_p4 = por %p214_p2, %p213_p1  ;;  %p270_p5 = scmp.lt.s32.totalorder %s836_s29, 3 }
   0x9   : > { %p271_p6 = pnand %p710_p3, %p270_p5 }
   0xa   : > { %v315_v0 = vld [vmem:[%s996_s2] sm:$0xff] (!%p271_p6)  ;;  %v316_v1 = vld [vmem:[%s996_s2 + $0x8] sm:$0xff] (!%p271_p6)  ;;  %p306_p7 = scmp.lt.s32.totalorder (!%p271_p6), %s900_s30, 1  ;;  %v838_v2 = vmov (!%p271_p6), 0.0|0.0   ;;  %vm839_vm0 = vmmov (!%p271_p6), 0   ;;  %v840_v4 = vmov (!%p271_p6), 0.0  }
   0xb   : > { %274 = sbr.rel (%p271_p6) target bundleno = 812 (0x32c), region = 52  ;;  %769 = vmatprep.subr.bf16.mxu0 (!%p271_p6), %v838_v2  ;;  %v770_v3 = vpack.c.bf16 (!%p271_p6), %v316_v1, %v315_v0  ;;  %744 = vmatprep.mubr.msk.f32.mxu0 (!%p271_p6), %vm839_vm0, %v840_v4  ;;  %v399_v5 = vld [vmem:[%s998_s4] sm:$0xff] (!%p271_p6)  ;;  %v400_v6 = vld [vmem:[%s998_s4 + $0x8] sm:$0xff] (!%p271_p6)  ;;  %vm324_vm1 = vcmask (!%p271_p6), 130048   ;;  %v401_v9 = vld [vmem:[%s998_s4 + $0x10] sm:$0xff] (!%p271_p6)  ;;  %vm410_vm2 = vcmask (!%p271_p6), 261120  }
   0xc   : > { %772 = vmatprep.subr.bf16.mxu1 (!%p271_p6), %v838_v2  ;;  %v773_v7 = vpack.c.bf16 (!%p271_p6), %v400_v6, %v399_v5  ;;  %755 = vmatprep.mubr.msk.f32.mxu1 (!%p271_p6), %vm839_vm0, %v840_v4  ;;  %v402_v10 = vld [vmem:[%s998_s4 + $0x18] sm:$0xff] (!%p271_p6)  ;;  %v485_v12 = vld [vmem:[%s1000_s6] sm:$0xff] (!%p271_p6)  ;;  %v486_v13 = vld [vmem:[%s1000_s6 + $0x8] sm:$0xff] (!%p271_p6)  ;;  %s303_s11 = sand.u32 (!%p271_p6), 1, %s828_s27   ;;  %vm579_vm3 = vcmask (!%p271_p6), 23552   ;;  %s841_s18 = smov (!%p271_p6), 125  }
   0xd   : > { %771 = vmatpush3.bf16.msra.mxu0 (!%p271_p6), %v770_v3  ;;  %v776_v11 = vpack.c.bf16 (!%p271_p6), %v402_v10, %v401_v9  ;;  %v779_v14 = vpack.c.bf16 (!%p271_p6), %v486_v13, %v485_v12  ;;  %v714_v15 = vld [vmem:[%s997_s3] ss:$0 sm:$0xff] (!%p271_p6)  ;;  %v487_v20 = vld [vmem:[%s1000_s6 + $0x10] sm:$0xff] (!%p271_p6)  ;;  %v488_v21 = vld [vmem:[%s1000_s6 + $0x18] sm:$0xff] (!%p271_p6)  ;;  %s711_s14 = sshll.u32 (!%p271_p6), %s303_s11, 5 }
   0xe   : > { %774 = vmatpush3.bf16.msra.mxu1 (!%p271_p6), %v773_v7  ;;  %778 = vmatprep.subr.bf16.mxu0 (!%p271_p6), %v838_v2  ;;  %v782_v22 = vpack.c.bf16 (!%p271_p6), %v488_v21, %v487_v20  ;;  %v716_v23 = vld [vmem:[%s999_s5] ss:$0 sm:$0xff] (!%p271_p6)  ;;  %s305_s17 = scalar_lea.vmem (!%p271_p6), [#allocation2], %s711_s14 }
   0xf   : > { %775 = vmatprep.subr.bf16.mxu1 (!%p271_p6), %v838_v2  ;;  %v718_v28 = vld [vmem:[%s1001_s7] ss:$0 sm:$0xff] (!%p271_p6) }
  0x12   : > { %s931_s22 = scalar_select %p306_p7, %s900_s30, 1  ;;  %777 = vmatpush3.bf16.msra.mxu1 %v776_v11 }
  0x14   : > { %s712_s23 = sshll.u32 %s931_s22, 3  ;;  %s724_s22 = sshll.u32 (%p912_p4), %s900_s30, 3 }
  0x15   : > { %s309_s26 = scalar_lea.vmem %s994_s0, %s712_s23  ;;  %s313_s20 = scalar_lea.vmem %s995_s1, %s712_s23 }
  0x16   : > { %v314_v8 = vld [vmem:[%s309_s26] sm:$0xff]  ;;  %s599_s24 = scalar_lea.vmem (%p912_p4), %s1002_s8, %s724_s22 }
  0x17   : > { %745 = vmatmul.mubr.msk.f32.vlgmr.msra.gmra.mrb[0].mxu0 %vm324_vm1, %v314_v8  ;;  %v572_v35 = vld [vmem:[%s313_s20] sm:$0xff] }
  0x18   : > { %766 = vmatprep.mubr.msk.f32.mxu0 %vm839_vm0, %v840_v4  ;;  %780 = vmatpush3.bf16.msra.mxu0 %v779_v14 }
  0x19   : > { %781 = vmatprep.subr.bf16.mxu0 %v838_v2 }
  0x1c   : > { %783 = vmatpush3.bf16.msra.mxu0 %v782_v22 }
  0xea   : > { %v394_v16 = vpop.f32.mrb[0].mxu0 }
  0xeb   : > { %v395_v17 = vadd.f32 %v714_v15, %v394_v16  ;;  %v746_v18 = vpop.f32.mrb[1].mxu0 }
  0xed   : > { %v398_v19 = vmax.f32 %v395_v17, 0.0 }
  0xef   : > { %756 = vmatmul.mubr.msk.f32.vlgmr.msra.gmra.mrb[0].mxu1 %vm410_vm2, %v398_v19 }
 0x1c2   : > { %v480_v24 = vpop.f32.mrb[0].mxu1 }
 0x1c3   : > { %v481_v25 = vadd.f32 %v716_v23, %v480_v24  ;;  %v757_v26 = vpop.f32.mrb[1].mxu1 }
 0x1c5   : > { %v484_v27 = vmax.f32 %v481_v25, 0.0 }
 0x1c7   : > { %767 = vmatmul.mubr.msk.f32.vlgmr.msra.gmra.mrb[2].mxu0 %vm410_vm2, %v484_v27 }
 0x29a   : > { %v565_v29 = vpop.f32.mrb[2].mxu0 }
 0x29b   : > { %v566_v30 = vadd.f32 %v718_v28, %v565_v29  ;;  %v768_v31 = vpop.f32.mrb[3].mxu0 }
 0x29d   : > { %v569_v32 = vmul.f32 0.5, %v566_v30  ;;  %720 = vst.msk [vmem:[%s305_s17 + $0x8] sm:$0xff] %vm579_vm3, %v566_v30 }
 0x29f   : > { %v570_v33 = vmul.f32 1.442695, %v569_v32 }
 0x2a1   : > { %812 = vpow2.f32 %v570_v33 }
 0x2a4   : > { %v635_v41 = vld [vmem:[%s305_s17 + $0x8] sm:$0xff] (%p912_p4) }
 0x2a5   : > { %636 = vst [vmem:[%s599_s24 + $0x10] sm:$0xff] (%p912_p4), %v635_v41 }
 0x2ab   : > { %v813_v34 = vpop.eup %812 }
 0x2ac   : > { %574 = vrot.lane.b32.xlu0 %v813_v34, %s841_s18 }
 0x2b0   : > { %586 = vrot.lane.b32.xlu0 %v566_v30, %s841_s18 }
 0x31d   : > { %597 = sbr.rel (!%p912_p4) target bundleno = 812 (0x32c), region = 56 }
 0x31e   : > { %v575_v36 = vpop.permute.xlu0 %574 }
 0x31f   : > { %v577_v37 = vmul.f32 %v575_v36, %v572_v35  ;;  %721 = vst.msk [vmem:[%s305_s17 + $0x10] sm:$0xff] %vm579_vm3, %v575_v36 }
 0x321   : > { %v578_v38 = vadd.f32 %v577_v37, %v566_v30 }
 0x322   : > { %v587_v39 = vpop.permute.xlu0 %586 }
 0x323   : > { %580 = vst.msk [vmem:[%s305_s17] sm:$0xff] %vm579_vm3, %v578_v38  ;;  %722 = vst.msk [vmem:[%s305_s17 + $0x18] sm:$0xff] %vm579_vm3, %v587_v39 }
 0x326   : > { %v637_v42 = vld [vmem:[%s305_s17 + $0x10] sm:$0xff] }
 0x327   : > { %638 = vst [vmem:[%s599_s24 + $0x20] sm:$0xff] %v637_v42 }
 0x32a   : > { %v633_v40 = vld [vmem:[%s305_s17] sm:$0xff]  ;;  %v639_v43 = vld [vmem:[%s305_s17 + $0x18] sm:$0xff] }
 0x32b   : > { %634 = vst [vmem:[%s599_s24] sm:$0xff] %v633_v40  ;;  %640 = vst [vmem:[%s599_s24 + $0x30] sm:$0xff] %v639_v43 }
 0x32c PF: > { %p15_p8 = scmp.ge.s32.totalorder %s902_s9, 4   ;;  %s1004_s27 = smov %s832_s28 }
 0x32d   : > { %s1005_s28 = smov %s910_s12  ;;  %s1006_s29 = smov %s902_s9 }
 0x32e   :  { %17 = sbr.rel (!%p15_p8) target bundleno = 2 (0x2), region = 126 }

// kernel: deep_idw_forward.8
= control target key start
LH: loop header
LB: loop body
LE: loop exit
PB: predicated region body
PF: predicated region fallthrough
CT: control target
= control target key end

     0   :  { %12 = vsyncpa [#allocation3], 0  ;;  %s964_s0 = inlined_call_operand.vmem [shape: f32[16,3], index: 0, kind: input, shape index: {}]   ;;  %s965_s1 = inlined_call_operand.vmem [shape: f32[3,32], index: 1, kind: input, shape index: {}]   ;;  %s966_s2 = inlined_call_operand.vmem [shape: f32[1,32], index: 2, kind: input, shape index: {}]   ;;  %s967_s3 = inlined_call_operand.vmem [shape: f32[32,32], index: 3, kind: input, shape index: {}]   ;;  %s968_s4 = inlined_call_operand.vmem [shape: f32[1,32], index: 4, kind: input, shape index: {}]   ;;  %s969_s5 = inlined_call_operand.vmem [shape: f32[32,16], index: 5, kind: input, shape index: {}]   ;;  %s970_s6 = inlined_call_operand.vmem [shape: f32[1,16], index: 6, kind: input, shape index: {}]   ;;  %s971_s7 = inlined_call_operand.hbm [shape: f32[16,16], index: 7, kind: output, shape index: {}]  }
   0x1   :  { %14 = vsyncpa [#allocation3 + $0x1], 0  ;;  %s825_s24 = smov 0   ;;  %s827_s25 = smov 0  }
   0x2   :  { %s829_s26 = smov 0   ;;  %s831_s27 = smov 0  }
   0x3 LB: > { %s846_s28 = sadd.s32 4294967295, %s779_s27   ;;  %s607_s29 = sadd.s32 4294967294, %s779_s27   ;;  %s779_s27 = sphi %s831_s27, %s977_s27   ;;  %s775_s26 = sphi %s829_s26, %s976_s26   ;;  %s771_s25 = sphi %s827_s25, %s975_s25   ;;  %s767_s24 = sphi %s825_s24, %s974_s24  }
   0x4   : > { %s850_s30 = sadd.s32 1, %s779_s27   ;;  %s179_s8 = sadd.s32 1, %s775_s26 }
   0x5   : > { %s176_s9 = ssub.s32 %s779_s27, %s850_s30  ;;  %p189_p0 = scmp.ne.s32.totalorder %s775_s26, %s771_s25 }
   0x6   : > { %p177_p1 = scmp.eq.s32.totalorder %s176_s9, 0  ;;  %p190_p2 = scmp.eq.s32.totalorder %s846_s28, 1 }
   0x7   : > { %p195_p3 = scmp.ne.s32.totalorder %s771_s25, %s767_s24  ;;  %p196_p4 = scmp.eq.s32.totalorder %s607_s29, 1 }
   0x8   : > { %s861_s10 = scalar_select %p177_p1, %s775_s26, %s179_s8  }
   0x9   : > { %p863_p5 = por %p190_p2, %p189_p0  ;;  %p867_p6 = por %p196_p4, %p195_p3 }
   0xa   : > { %p610_p7 = scmp.ge.s32.totalorder %s779_s27, 1  ;;  %p239_p8 = scmp.lt.s32.totalorder %s779_s27, 3 }
   0xc   : > { %p240_p9 = pnand %p610_p7, %p239_p8 }
   0xd   : > { %v275_v0 = vld [vmem:[%s965_s1] sm:$0x7] (!%p240_p9)  ;;  %vm287_vm0 = vcmask (!%p240_p9), 1042432   ;;  %p270_p10 = scmp.lt.s32.totalorder (!%p240_p9), %s846_s28, 1  ;;  %v781_v1 = vmov (!%p240_p9), 0.0   ;;  %vm782_vm1 = vmmov (!%p240_p9), 0  }
   0xe   : > { %243 = sbr.rel (%p240_p9) target bundleno = 686 (0x2ae), region = 48  ;;  %636 = vmatprep.subr.mxu0 (!%p240_p9), %v781_v1  ;;  %638 = vmatprep.mubr.msk.f32.mxu0 (!%p240_p9), %vm782_vm1, %v781_v1  ;;  %v362_v2 = vld [vmem:[%s967_s3] sm:$0xff] (!%p240_p9)  ;;  %v363_v3 = vld [vmem:[%s967_s3 + $0x8] sm:$0xff] (!%p240_p9)  ;;  %v783_v4 = vmov (!%p240_p9), 0.0|0.0   ;;  %vm283_vm2 = vcmask (!%p240_p9), 23552   ;;  %v364_v7 = vld [vmem:[%s967_s3 + $0x10] sm:$0xff] (!%p240_p9) }
   0xf   : > { %637 = vmatpush3.msk.msra.mxu0 (!%p240_p9), %vm287_vm0, %v275_v0  ;;  %663 = vmatprep.subr.bf16.mxu1 (!%p240_p9), %v783_v4  ;;  %v664_v5 = vpack.c.bf16 (!%p240_p9), %v363_v3, %v362_v2  ;;  %v365_v8 = vld [vmem:[%s967_s3 + $0x18] sm:$0xff] (!%p240_p9)  ;;  %v448_v10 = vld [vmem:[%s969_s5] sm:$0xff] (!%p240_p9)  ;;  %v449_v11 = vld [vmem:[%s969_s5 + $0x8] sm:$0xff] (!%p240_p9)  ;;  %vm373_vm3 = vcmask (!%p240_p9), 261120   ;;  %s267_s9 = sand.u32 (!%p240_p9), 1, %s771_s25   ;;  %s621_s16 = sshll.u32 (!%p240_p9), %s846_s28, 7 }
  0x10   : > { %649 = vmatprep.mubr.msk.f32.mxu1 (!%p240_p9), %vm782_vm1, %v781_v1  ;;  %669 = vmatprep.subr.bf16.mxu0 (!%p240_p9), %v783_v4  ;;  %v667_v9 = vpack.c.bf16 (!%p240_p9), %v365_v8, %v364_v7  ;;  %v670_v12 = vpack.c.bf16 (!%p240_p9), %v449_v11, %v448_v10  ;;  %v613_v13 = vld [vmem:[%s966_s2] ss:$0 sm:$0xff] (!%p240_p9)  ;;  %v450_v18 = vld [vmem:[%s969_s5 + $0x10] sm:$0xff] (!%p240_p9)  ;;  %v451_v19 = vld [vmem:[%s969_s5 + $0x18] sm:$0xff] (!%p240_p9)  ;;  %s611_s13 = sshll.u32 (!%p240_p9), %s267_s9, 3  ;;  %vm532_vm4 = vcmask (!%p240_p9), 130048   ;;  %s922_s21 = scalar_lea.hbm (!%p240_p9), %s971_s7, %s621_s16 }
  0x11   : > { %665 = vmatpush3.bf16.msra.mxu1 (!%p240_p9), %v664_v5  ;;  %v673_v20 = vpack.c.bf16 (!%p240_p9), %v451_v19, %v450_v18  ;;  %v616_v21 = vld [vmem:[%s968_s4] ss:$0 sm:$0xff] (!%p240_p9)  ;;  %s269_s17 = scalar_lea.vmem (!%p240_p9), [#allocation2], %s611_s13  ;;  %s535_s22 = scalar_lea.sflag (!%p240_p9), [#allocation3], %s267_s9 }
  0x12   : > { %666 = vmatprep.subr.bf16.mxu1 (!%p240_p9), %v783_v4  ;;  %v618_v26 = vld [vmem:[%s970_s6] ss:$0 sm:$0xff] (!%p240_p9)  ;;  %s548_s18 = sshll.u32 (!%p240_p9), %s269_s17, 4  ;;  %s924_s18 = int_to_ptr.vmem [resolvable:$true] %s548_s18 }
  0x15   : > { %s271_s19 = scalar_select %p270_p10, %s846_s28, 1  ;;  %668 = vmatpush3.bf16.msra.mxu1 %v667_v9 }
  0x16   : > { %s784_s28 = smov [#allocation2]  }
  0x17   : > { %s612_s20 = sshll.u32 %s271_s19, 3  ;;  %s721_s29 = sshll.u32 %s784_s28, 4  ;;  %s722_s29 = int_to_ptr.vmem [resolvable:$false] %s721_s29 }
  0x18   : > { %s273_s23 = scalar_lea.vmem %s964_s0, %s612_s20  ;;  %s723_s8 = scalar_lea.vmem %s722_s29, 256 }
  0x19   : > { %v274_v6 = vld [vmem:[%s273_s23] sm:$0xff]  ;;  %s717_s23 = scalar_lea.vmem %s924_s18, 128  ;;  %p724_p0 = scmp.lt.s32.totalorder %s924_s18, %s722_s29 }
  0x1a   : > { %639 = vmatmul.mubr.msk.f32.vlgmr.msra.gmra.mrb[0].mxu0 %vm283_vm2, %v274_v6  ;;  %p718_p11 = scmp.ne.s32.totalorder %s924_s18, %s717_s23  ;;  %p725_p1 = scmp.lt.s32.totalorder %s723_s8, %s717_s23 }
  0x1b   : > { %660 = vmatprep.mubr.msk.f32.mxu0 %vm782_vm1, %v781_v1  ;;  %671 = vmatpush3.bf16.msra.mxu0 %v670_v12 }
  0x1c   : > { %672 = vmatprep.subr.bf16.mxu0 %v783_v4  ;;  %p719_p12 = pnand %p718_p11, %p863_p5  ;;  %p726_p2 = por %p725_p1, %p724_p0 }
  0x1e   : > { %p720_p13 = pneg %p719_p12 }
  0x1f   : > { %674 = vmatpush3.bf16.msra.mxu0 %v673_v20 }
  0x20   : > { %p727_p3 = pnand %p726_p2, %p720_p13 }
  0xed   : > { %v357_v14 = vpop.f32.mrb[0].mxu0 }
  0xee   : > { %v358_v15 = vadd.f32 %v613_v13, %v357_v14  ;;  %v640_v16 = vpop.f32.mrb[1].mxu0 }
  0xf0   : > { %v361_v17 = vmax.f32 %v358_v15, 0.0 }
  0xf2   : > { %650 = vmatmul.mubr.msk.f32.vlgmr.msra.gmra.mrb[0].mxu1 %vm373_vm3, %v361_v17 }
 0x1c5   : > { %v443_v22 = vpop.f32.mrb[0].mxu1 }
 0x1c6   : > { %v444_v23 = vadd.f32 %v616_v21, %v443_v22  ;;  %v651_v24 = vpop.f32.mrb[1].mxu1 }
 0x1c8   : > { %v447_v25 = vmax.f32 %v444_v23, 0.0 }
 0x1ca   : > { %661 = vmatmul.mubr.msk.f32.vlgmr.msra.gmra.mrb[2].mxu0 %vm373_vm3, %v447_v25 }
 0x29d   : > { %v528_v27 = vpop.f32.mrb[2].mxu0 }
 0x29e   : > { %v529_v28 = vadd.f32 %v618_v26, %v528_v27  ;;  %v662_v29 = vpop.f32.mrb[3].mxu0 }
 0x2a0   : > { %533 = vst.msk [vmem:[%s269_s17] sm:$0xff] %vm532_vm4, %v529_v28 }
 0x2a1   : > { %730 = shalt.err (!%p727_p3)
}
 0x2a2   : > { %s731_s9 = scalar_lea.hbm %s922_s21, 128  ;;  %s735_s15 = scalar_lea.hbm %s971_s7, 256 }
 0x2a3   : > { %p732_p4 = scmp.ne.s32.totalorder %s922_s21, %s731_s9  ;;  %p736_p9 = scmp.lt.u32.totalorder %s922_s21, %s971_s7 }
 0x2a4   : > { %p737_p10 = scmp.lt.u32.totalorder %s735_s15, %s731_s9  ;;  %p739_p12 = scmp.lt.u32.totalorder %s731_s9, %s922_s21 }
 0x2a5   : > { %p733_p7 = pnand %p732_p4, %p863_p5 }
 0x2a6   : > { %p738_p11 = por %p737_p10, %p736_p9 }
 0x2a7   : > { %p734_p8 = pneg %p733_p7 }
 0x2a8   : > { %p740_p13 = por %p739_p12, %p738_p11 }
 0x2aa   : > { %p741_p0 = pnand %p740_p13, %p734_p8 }
 0x2ac   : > { %744 = shalt.err (!%p741_p0)
}
 0x2ad   : > { %675 = dma.vmem_to_hbm [thread:$0]  (%p863_p5), %s924_s18, 128, %s922_s21, %s535_s22  }
 0x2ae PF: > { %p681_p1 = scmp.ge.s32.totalorder %s779_s27, 2  ;;  %s560_s19 = sand.u32 1, %s767_s24  }
 0x2af   : > { %s561_s20 = scalar_lea.sflag [#allocation3], %s560_s19 }
 0x2b0   : > { %p678_p2 = pnand %p681_p1, %p867_p6 }
 0x2b2   : > { %762 = dma.done.wait (!%p678_p2), %s561_s20, 128  }
 0x2b3   : > { %764 = vsyncadd (!%p678_p2), %s561_s20, 4294967168  ;;  %p17_p3 = scmp.ge.s32.totalorder %s850_s30, 4   ;;  %s974_s24 = smov %s771_s25 }
 0x2b4   : > { %s975_s25 = smov %s775_s26  ;;  %s976_s26 = smov %s861_s10 }
 0x2b5   : > { %s977_s27 = smov %s850_s30  ;;  %19 = sbr.rel (!%p17_p3) target bundleno = 3 (0x3), region = 83 }
 0x2bc   :  { %566 = vsyncpa [#allocation3], 1 }
 0x2bd   :  { %568 = vsyncpa [#allocation3 + $0x1], 1 }

</bundles_post_ra>
